<compile_context>
chip_gen: v7x
topology: tpu7x:2x2x1
jax: 0.10.0
libtpu: 0.0.40
codegen_flags: <defaults>
</compile_context>

<pallas_src>
import functools

import jax
import jax.numpy as jnp
from jax.experimental import pallas as pl
from jax.experimental.pallas import tpu as pltpu  # noqa: F401  (TPU backend)


# ----------------------------------------------------------------------------
# Fused decoder kernel (no grid: one invocation, everything in VMEM)
# ----------------------------------------------------------------------------
def _decoder_kernel(ids_ref, h0_ref, wemb_ref, wctx_ref, whh0_ref,
                    bias0_ref, bhn0_ref, wstack_ref, brest_ref,
                    wfc_ref, bfc_ref, logits_ref, state_ref):
    """Fused decoder forward; every operand is a full-array VMEM block.

    ids_ref:    (T*BP, 1)   i32   token ids, time-major, batch padded to BP=8
    h0_ref:     (L, BP, HP) f32   initial hidden state (zero padded)
    wemb_ref:   (VOCP, 3HP) bf16  embedding @ W_ih0[:E]   (gate blocks r|z|n)
    wctx_ref:   (HP, 3HP)   bf16  W_ih0[E:]               (context part)
    whh0_ref:   (HP, 3HP)   bf16  layer-0 recurrent weights
    bias0_ref:  (1, 3HP)    f32   b_ih0 + [b_hh0_r, b_hh0_z, 0]
    bhn0_ref:   (1, HP)     f32   b_hh0_n
    wstack_ref: (max(L-1,1), 2HP, 4HP) bf16  layers>=1: [W_ih;W_hh] as r|z|nx|nh
    brest_ref:  (max(L-1,1), 1, 4HP)   f32   fully folded biases per block
    wfc_ref:    (HP, VP)    bf16  fc weight
    bfc_ref:    (1, VP)     f32   fc bias
    logits_ref: (T*BP, VP)  f32   output logits, time-major
    state_ref:  (L, BP, HP) f32   final per-layer hidden state
    """
    L, BP, HP = h0_ref.shape
    TB = ids_ref.shape[0]
    T = TB // BP
    VOCP = wemb_ref.shape[0]

    # ---- hoisted, time-invariant work (off the serial chain) ---------------
    # Embedding lookup fused with the layer-0 x-projection: one one-hot matmul
    # against the pre-folded (vocab, 3HP) table.
    ids = ids_ref[...]                                           # (TB, 1) i32
    iota = jax.lax.broadcasted_iota(jnp.int32, (TB, VOCP), 1)
    onehot = jnp.where(ids == iota, 1.0, 0.0).astype(jnp.bfloat16)
    emb_proj = jnp.dot(onehot, wemb_ref[...],
                       preferred_element_type=jnp.float32)       # (TB, 3HP)

    # Context projection: context = state[-1] is repeated over T in the module,
    # so its projection is time-invariant -> compute once per batch row.
    ctx = h0_ref[L - 1]                                          # (BP, HP) f32
    ctxb = jnp.dot(ctx.astype(jnp.bfloat16), wctx_ref[...],
                   preferred_element_type=jnp.float32) + bias0_ref[...]

    whh0 = whh0_ref[...]                                         # (HP, 3HP)
    bhn0 = jnp.broadcast_to(bhn0_ref[...], (BP, HP))             # hoisted
    wstack = [wstack_ref[l] for l in range(L - 1)]               # (2HP, 4HP)
    brest = [jnp.broadcast_to(brest_ref[l], (BP, 4 * HP)) for l in range(L - 1)]

    # ---- skewed recurrence: layer l handles timestep t = s - l -------------
    h = [h0_ref[l] for l in range(L)]        # carried state, f32
    y_prev = [None] * L                      # layer outputs from wavefront s-1
    top = [None] * T                         # top-layer outputs by timestep

    for s in range(T + L - 1):               # statically unrolled
        y_cur = list(y_prev)
        for l in range(L):
            t = s - l
            if not (0 <= t < T):
                continue
            if l == 0:
                gx = emb_proj[t * BP:(t + 1) * BP, :] + ctxb     # (BP, 3HP)
                gh = jnp.dot(h[0].astype(jnp.bfloat16), whh0,
                             preferred_element_type=jnp.float32)
                r = jax.nn.sigmoid(gx[:, 0:HP] + gh[:, 0:HP])
                z = jax.nn.sigmoid(gx[:, HP:2 * HP] + gh[:, HP:2 * HP])
                n = jnp.tanh(gx[:, 2 * HP:] + r * (gh[:, 2 * HP:] + bhn0))
            else:
                xin = y_prev[l - 1]                              # (BP, HP) f32
                inp = jnp.concatenate([xin, h[l]], axis=1).astype(jnp.bfloat16)
                g = jnp.dot(inp, wstack[l - 1],
                            preferred_element_type=jnp.float32) + brest[l - 1]
                r = jax.nn.sigmoid(g[:, 0:HP])
                z = jax.nn.sigmoid(g[:, HP:2 * HP])
                n = jnp.tanh(g[:, 2 * HP:3 * HP] + r * g[:, 3 * HP:])
            hn = (1.0 - z) * n + z * h[l]
            h[l] = hn
            y_cur[l] = hn
            if l == L - 1:
                top[t] = hn
        y_prev = y_cur

    # ---- fc epilogue over the whole top-layer sequence (one matmul) --------
    seq = jnp.concatenate(top, axis=0).astype(jnp.bfloat16)      # (TB, HP)
    logits_ref[...] = jnp.dot(seq, wfc_ref[...],
                              preferred_element_type=jnp.float32) + bfc_ref[...]
    for l in range(L):
        state_ref[l] = h[l]


# ----------------------------------------------------------------------------
# Parameters: logical (unpadded, f32) init + packing into padded bf16 operands
# ----------------------------------------------------------------------------
def init_decoder_params(key, vocab_size, embedding_size, hidden_size, num_layers):
    """Logical parameters (unpadded, f32). Gate order r, z, n along columns."""
    H = hidden_size
    bound = 1.0 / (H ** 0.5)
    params = {}
    key, ke = jax.random.split(key)
    params["embedding"] = jax.random.normal(
        ke, (vocab_size, embedding_size), jnp.float32)
    layers = []
    for l in range(num_layers):
        in_sz = embedding_size + hidden_size if l == 0 else hidden_size
        key, k1, k2, k3, k4 = jax.random.split(key, 5)
        layers.append({
            "wih": jax.random.uniform(k1, (in_sz, 3 * H), jnp.float32, -bound, bound),
            "whh": jax.random.uniform(k2, (H, 3 * H), jnp.float32, -bound, bound),
            "bih": jax.random.uniform(k3, (3 * H,), jnp.float32, -bound, bound),
            "bhh": jax.random.uniform(k4, (3 * H,), jnp.float32, -bound, bound),
        })
    params["gru"] = layers
    key, kf1, kf2 = jax.random.split(key, 3)
    params["fc_w"] = jax.random.uniform(kf1, (H, vocab_size), jnp.float32, -bound, bound)
    params["fc_b"] = jax.random.uniform(kf2, (vocab_size,), jnp.float32, -bound, bound)
    return params


def _round_up(x, m):
    return (x + m - 1) // m * m


def _pad_gate_cols(w, H, HP):
    """(F, 3*H) -> (F, 3*HP): each gate block r|z|n at its own 128-aligned slot."""
    out = jnp.zeros((w.shape[0], 3 * HP), w.dtype)
    for g in range(3):
        out = out.at[:, g * HP:g * HP + H].set(w[:, g * H:(g + 1) * H])
    return out


def _pad_rows(w, FP):
    return jnp.pad(w, ((0, FP - w.shape[0]), (0, 0)))


def pack_decoder_params(params, embedding_size, hidden_size):
    """Zero-pad to 128-lane widths, fold biases/embedding, cast weights to bf16."""
    H = hidden_size
    E = embedding_size
    HP = _round_up(H, 128)
    vocab = params["embedding"].shape[0]
    V = params["fc_w"].shape[1]
    VOCP = _round_up(vocab, 128)
    VP = _round_up(V, 128)
    layers = params["gru"]
    L = len(layers)

    # Layer 0: split input weights into embedding / context parts and pre-fold
    # the embedding table with the embedding part (lookup + projection becomes
    # a single one-hot matmul inside the kernel).
    wih0 = layers[0]["wih"]                                   # (E+H, 3H)
    wemb = params["embedding"] @ wih0[:E, :]                  # (vocab, 3H) f32
    wemb = _pad_rows(_pad_gate_cols(wemb, H, HP), VOCP).astype(jnp.bfloat16)
    wctx = _pad_rows(_pad_gate_cols(wih0[E:, :], H, HP), HP).astype(jnp.bfloat16)
    whh0 = _pad_rows(_pad_gate_cols(layers[0]["whh"], H, HP), HP).astype(jnp.bfloat16)
    bhh0 = layers[0]["bhh"]
    bias0_log = layers[0]["bih"] + jnp.concatenate(
        [bhh0[:2 * H], jnp.zeros((H,), bhh0.dtype)])          # fold b_hh r,z
    bias0 = _pad_gate_cols(bias0_log[None, :], H, HP)         # (1, 3HP) f32
    bhn0 = jnp.pad(bhh0[2 * H:][None, :], ((0, 0), (0, HP - H)))  # (1, HP)

    # Layers 1..L-1: fused [W_ih ; W_hh] with gate blocks [r | z | n_x | n_h].
    wstacks, brests = [], []
    for l in range(1, L):
        wih, whh = layers[l]["wih"], layers[l]["whh"]         # (H, 3H) each
        bih, bhh = layers[l]["bih"], layers[l]["bhh"]
        w = jnp.zeros((2 * HP, 4 * HP), jnp.float32)
        b = jnp.zeros((4 * HP,), jnp.float32)
        for g in range(2):                                    # r, z: fully combined
            w = w.at[0:H, g * HP:g * HP + H].set(wih[:, g * H:(g + 1) * H])
            w = w.at[HP:HP + H, g * HP:g * HP + H].set(whh[:, g * H:(g + 1) * H])
            b = b.at[g * HP:g * HP + H].set(
                bih[g * H:(g + 1) * H] + bhh[g * H:(g + 1) * H])
        # n_x (input part) and n_h (hidden part) kept separate for r*(.) term.
        w = w.at[0:H, 2 * HP:2 * HP + H].set(wih[:, 2 * H:3 * H])
        b = b.at[2 * HP:2 * HP + H].set(bih[2 * H:3 * H])
        w = w.at[HP:HP + H, 3 * HP:3 * HP + H].set(whh[:, 2 * H:3 * H])
        b = b.at[3 * HP:3 * HP + H].set(bhh[2 * H:3 * H])
        wstacks.append(w)
        brests.append(b[None, :])
    if wstacks:
        wstack = jnp.stack(wstacks).astype(jnp.bfloat16)      # (L-1, 2HP, 4HP)
        brest = jnp.stack(brests)                             # (L-1, 1, 4HP)
    else:
        wstack = jnp.zeros((1, 2 * HP, 4 * HP), jnp.bfloat16)
        brest = jnp.zeros((1, 1, 4 * HP), jnp.float32)

    return {
        "wemb": wemb, "wctx": wctx, "whh0": whh0,
        "bias0": bias0, "bhn0": bhn0,
        "wstack": wstack, "brest": brest,
        "wfc": jnp.pad(params["fc_w"],
                       ((0, HP - H), (0, VP - V))).astype(jnp.bfloat16),
        "bfc": jnp.pad(params["fc_b"], (0, VP - V))[None, :],
    }


# ----------------------------------------------------------------------------
# Decoder forward (batch_first interface, like the PyTorch module)
# ----------------------------------------------------------------------------
@functools.partial(jax.jit, static_argnames=("vocab_size",))
def decoder_forward(packed, x_ids, state, *, vocab_size):
    """x_ids: (B, T) int32 token ids; state: (L, B, H) f32.
    Returns (logits (B, T, vocab_size), new_state (L, B, H))."""
    B, T = x_ids.shape
    L, _, H = state.shape
    HP = packed["whh0"].shape[0]
    VP = packed["wfc"].shape[1]
    BP = _round_up(max(B, 1), 8)                 # sublane-align the tiny batch

    # Time-major, batch-padded token ids; embedding gather + context concat
    # happen inside the kernel (no xcat materialization in HBM).
    ids_tm = jnp.zeros((T, BP), jnp.int32).at[:, :B].set(x_ids.T)
    ids_tm = ids_tm.reshape(T * BP, 1)
    h0 = jnp.zeros((L, BP, HP), jnp.float32).at[:, :B, :H].set(state)

    logits_flat, state_p = pl.pallas_call(
        _decoder_kernel,
        out_shape=(jax.ShapeDtypeStruct((T * BP, VP), jnp.float32),
                   jax.ShapeDtypeStruct((L, BP, HP), jnp.float32)),
    )(ids_tm, h0, packed["wemb"], packed["wctx"], packed["whh0"],
      packed["bias0"], packed["bhn0"], packed["wstack"], packed["brest"],
      packed["wfc"], packed["bfc"])

    # NOTE: in a real pipeline keep the padded lane-dense (.., VP) layout and
    # slice at the consumer; here we match the PyTorch module's output shape.
    logits = logits_flat.reshape(T, BP, VP).transpose(1, 0, 2)[:B, :, :vocab_size]
    new_state = state_p[:, :B, :H]
    return logits, new_state


# ----------------------------------------------------------------------------
# Pure-JAX reference (PyTorch eval-mode GRU semantics) for correctness check.
# Uses bf16-rounded weights to roughly match the kernel's MXU numerics.
# ----------------------------------------------------------------------------
def decoder_reference(params, x_ids, state):
    def w(a):
        return a.astype(jnp.bfloat16).astype(jnp.float32)

    H = state.shape[-1]
    B, T = x_ids.shape
    emb = jnp.take(params["embedding"], x_ids, axis=0)
    ctx = jnp.broadcast_to(state[-1][:, None, :], (B, T, H))
    x = jnp.concatenate([emb, ctx], axis=2)
    new_state = []
    for l, lp in enumerate(params["gru"]):
        wih, whh = w(lp["wih"]), w(lp["whh"])
        bih, bhh = lp["bih"], lp["bhh"]
        h = state[l]
        outs = []
        for t in range(T):
            gx = x[:, t, :] @ wih + bih
            gh = h @ whh + bhh
            r = jax.nn.sigmoid(gx[:, 0:H] + gh[:, 0:H])
            z = jax.nn.sigmoid(gx[:, H:2 * H] + gh[:, H:2 * H])
            n = jnp.tanh(gx[:, 2 * H:] + r * gh[:, 2 * H:])
            h = (1.0 - z) * n + z * h
            outs.append(h)
        x = jnp.stack(outs, axis=1)
        new_state.append(h)
    logits = x @ w(params["fc_w"]) + params["fc_b"]
    return logits, jnp.stack(new_state, axis=0)


if __name__ == "__main__":
    vocab_size = 50
    embedding_size = 32
    hidden_size = 64
    num_layers = 2
    batch = 2
    tar_len = 6

    key = jax.random.PRNGKey(0)
    key, kp, kx, ks = jax.random.split(key, 4)
    params = init_decoder_params(kp, vocab_size, embedding_size,
                                 hidden_size, num_layers)
    packed = pack_decoder_params(params, embedding_size, hidden_size)

    x_ids = jax.random.randint(kx, (batch, tar_len), 0, vocab_size, jnp.int32)
    state = jax.random.uniform(ks, (num_layers, batch, hidden_size),
                               jnp.float32, -1.0, 1.0)   # encoder hidden state

    logits, new_state = decoder_forward(packed, x_ids, state,
                                        vocab_size=vocab_size)
    jax.block_until_ready((logits, new_state))

    assert logits.shape == (batch, tar_len, vocab_size), logits.shape
    assert new_state.shape == (num_layers, batch, hidden_size), new_state.shape
    assert bool(jnp.all(jnp.isfinite(logits)))
    assert bool(jnp.all(jnp.isfinite(new_state)))

    ref_logits, ref_state = decoder_reference(params, x_ids, state)
    logit_err = float(jnp.max(jnp.abs(logits - ref_logits)))
    state_err = float(jnp.max(jnp.abs(new_state - ref_state)))
    assert logit_err < 5e-2, ("logits mismatch", logit_err)
    assert state_err < 5e-2, ("state mismatch", state_err)

    print("KERNEL_OK")
</pallas_src>

<mosaic_0001>
module attributes {stable_mosaic.version = 11 : i64} {
  func.func @_decoder_kernel(%arg0: memref<48x1xi32, #tpu.memory_space<vmem>>, %arg1: memref<2x8x128xf32, #tpu.memory_space<vmem>>, %arg2: memref<128x384xbf16, #tpu.memory_space<vmem>>, %arg3: memref<128x384xbf16, #tpu.memory_space<vmem>>, %arg4: memref<128x384xbf16, #tpu.memory_space<vmem>>, %arg5: memref<1x384xf32, #tpu.memory_space<vmem>>, %arg6: memref<1x128xf32, #tpu.memory_space<vmem>>, %arg7: memref<1x256x512xbf16, #tpu.memory_space<vmem>>, %arg8: memref<1x1x512xf32, #tpu.memory_space<vmem>>, %arg9: memref<128x128xbf16, #tpu.memory_space<vmem>>, %arg10: memref<1x128xf32, #tpu.memory_space<vmem>>, %arg11: memref<48x128xf32, #tpu.memory_space<vmem>>, %arg12: memref<2x8x128xf32, #tpu.memory_space<vmem>>) attributes {dimension_semantics = [], scalar_prefetch = 0 : i64, scratch_operands = 0 : i64, tpu.core_type = #tpu.core_type<tc>} {
    %c0 = arith.constant 0 : index
    %c0_0 = arith.constant 0 : index
    %0 = vector.load %arg0[%c0, %c0_0] : memref<48x1xi32, #tpu.memory_space<vmem>>, vector<48x1xi32>
    %1 = tpu.iota {dimensions = array<i32: 1>} : vector<48x128xi32>
    %2 = vector.broadcast %0 : vector<48x1xi32> to vector<48x128xi32>
    %3 = arith.cmpi eq, %2, %1 : vector<48x128xi32>
    %cst = arith.constant 1.000000e+00 : f32
    %cst_1 = arith.constant 0.000000e+00 : f32
    %4 = vector.broadcast %cst : f32 to vector<48x128xf32>
    %5 = vector.broadcast %cst_1 : f32 to vector<48x128xf32>
    %6 = arith.select %3, %4, %5 : vector<48x128xi1>, vector<48x128xf32>
    %7 = arith.truncf %6 : vector<48x128xf32> to vector<48x128xbf16>
    %c0_2 = arith.constant 0 : index
    %c0_3 = arith.constant 0 : index
    %8 = vector.load %arg2[%c0_2, %c0_3] : memref<128x384xbf16, #tpu.memory_space<vmem>>, vector<128x384xbf16>
    %cst_4 = arith.constant dense<0.000000e+00> : vector<48x384xf32>
    %9 = tpu.matmul %7, %8, %cst_4 {dimension_numbers = #tpu.dot_dimension_numbers<[1], [0], [0], [1], [0, 0, 1, 1], [], []>} : vector<48x128xbf16>, vector<128x384xbf16>, vector<48x384xf32> -> vector<48x384xf32>
    %c1 = arith.constant 1 : index
    %c0_5 = arith.constant 0 : index
    %c0_6 = arith.constant 0 : index
    %10 = vector.load %arg1[%c1, %c0_5, %c0_6] : memref<2x8x128xf32, #tpu.memory_space<vmem>>, vector<1x8x128xf32>
    %11 = vector.shape_cast %10 : vector<1x8x128xf32> to vector<8x128xf32>
    %12 = arith.truncf %11 : vector<8x128xf32> to vector<8x128xbf16>
    %c0_7 = arith.constant 0 : index
    %c0_8 = arith.constant 0 : index
    %13 = vector.load %arg3[%c0_7, %c0_8] : memref<128x384xbf16, #tpu.memory_space<vmem>>, vector<128x384xbf16>
    %cst_9 = arith.constant dense<0.000000e+00> : vector<8x384xf32>
    %14 = tpu.matmul %12, %13, %cst_9 {dimension_numbers = #tpu.dot_dimension_numbers<[1], [0], [0], [1], [0, 0, 1, 1], [], []>} : vector<8x128xbf16>, vector<128x384xbf16>, vector<8x384xf32> -> vector<8x384xf32>
    %c0_10 = arith.constant 0 : index
    %c0_11 = arith.constant 0 : index
    %15 = vector.load %arg5[%c0_10, %c0_11] : memref<1x384xf32, #tpu.memory_space<vmem>>, vector<1x384xf32>
    %16 = vector.broadcast %15 : vector<1x384xf32> to vector<8x384xf32>
    %17 = arith.addf %14, %16 : vector<8x384xf32>
    %c0_12 = arith.constant 0 : index
    %c0_13 = arith.constant 0 : index
    %18 = vector.load %arg4[%c0_12, %c0_13] : memref<128x384xbf16, #tpu.memory_space<vmem>>, vector<128x384xbf16>
    %c0_14 = arith.constant 0 : index
    %c0_15 = arith.constant 0 : index
    %19 = vector.load %arg6[%c0_14, %c0_15] : memref<1x128xf32, #tpu.memory_space<vmem>>, vector<1x128xf32>
    %20 = vector.shape_cast %19 : vector<1x128xf32> to vector<1x128xf32>
    %21 = vector.broadcast %20 : vector<1x128xf32> to vector<8x128xf32>
    %c0_16 = arith.constant 0 : index
    %c0_17 = arith.constant 0 : index
    %c0_18 = arith.constant 0 : index
    %22 = vector.load %arg7[%c0_16, %c0_17, %c0_18] : memref<1x256x512xbf16, #tpu.memory_space<vmem>>, vector<1x256x512xbf16>
    %23 = vector.shape_cast %22 : vector<1x256x512xbf16> to vector<256x512xbf16>
    %c0_19 = arith.constant 0 : index
    %c0_20 = arith.constant 0 : index
    %c0_21 = arith.constant 0 : index
    %24 = vector.load %arg8[%c0_19, %c0_20, %c0_21] : memref<1x1x512xf32, #tpu.memory_space<vmem>>, vector<1x1x512xf32>
    %25 = vector.shape_cast %24 : vector<1x1x512xf32> to vector<1x512xf32>
    %26 = vector.shape_cast %25 : vector<1x512xf32> to vector<1x512xf32>
    %27 = vector.broadcast %26 : vector<1x512xf32> to vector<8x512xf32>
    %c0_22 = arith.constant 0 : index
    %c0_23 = arith.constant 0 : index
    %c0_24 = arith.constant 0 : index
    %28 = vector.load %arg1[%c0_22, %c0_23, %c0_24] : memref<2x8x128xf32, #tpu.memory_space<vmem>>, vector<1x8x128xf32>
    %29 = vector.shape_cast %28 : vector<1x8x128xf32> to vector<8x128xf32>
    %c1_25 = arith.constant 1 : index
    %c0_26 = arith.constant 0 : index
    %c0_27 = arith.constant 0 : index
    %30 = vector.load %arg1[%c1_25, %c0_26, %c0_27] : memref<2x8x128xf32, #tpu.memory_space<vmem>>, vector<1x8x128xf32>
    %31 = vector.shape_cast %30 : vector<1x8x128xf32> to vector<8x128xf32>
    %32 = vector.extract_strided_slice %9 {offsets = [0, 0], sizes = [8, 384], strides = [1, 1]} : vector<48x384xf32> to vector<8x384xf32>
    %33 = arith.addf %32, %17 : vector<8x384xf32>
    %34 = arith.truncf %29 : vector<8x128xf32> to vector<8x128xbf16>
    %cst_28 = arith.constant dense<0.000000e+00> : vector<8x384xf32>
    %35 = tpu.matmul %34, %18, %cst_28 {dimension_numbers = #tpu.dot_dimension_numbers<[1], [0], [0], [1], [0, 0, 1, 1], [], []>} : vector<8x128xbf16>, vector<128x384xbf16>, vector<8x384xf32> -> vector<8x384xf32>
    %36 = vector.extract_strided_slice %33 {offsets = [0, 0], sizes = [8, 128], strides = [1, 1]} : vector<8x384xf32> to vector<8x128xf32>
    %37 = vector.extract_strided_slice %35 {offsets = [0, 0], sizes = [8, 128], strides = [1, 1]} : vector<8x384xf32> to vector<8x128xf32>
    %38 = arith.addf %36, %37 : vector<8x128xf32>
    %39 = arith.negf %38 : vector<8x128xf32>
    %40 = math.exp %39 : vector<8x128xf32>
    %cst_29 = arith.constant 1.000000e+00 : f32
    %41 = vector.broadcast %cst_29 : f32 to vector<8x128xf32>
    %42 = arith.addf %41, %40 : vector<8x128xf32>
    %43 = arith.divf %41, %42 : vector<8x128xf32>
    %44 = vector.extract_strided_slice %33 {offsets = [0, 128], sizes = [8, 128], strides = [1, 1]} : vector<8x384xf32> to vector<8x128xf32>
    %45 = vector.extract_strided_slice %35 {offsets = [0, 128], sizes = [8, 128], strides = [1, 1]} : vector<8x384xf32> to vector<8x128xf32>
    %46 = arith.addf %44, %45 : vector<8x128xf32>
    %47 = arith.negf %46 : vector<8x128xf32>
    %48 = math.exp %47 : vector<8x128xf32>
    %cst_30 = arith.constant 1.000000e+00 : f32
    %49 = vector.broadcast %cst_30 : f32 to vector<8x128xf32>
    %50 = arith.addf %49, %48 : vector<8x128xf32>
    %51 = arith.divf %49, %50 : vector<8x128xf32>
    %52 = vector.extract_strided_slice %33 {offsets = [0, 256], sizes = [8, 128], strides = [1, 1]} : vector<8x384xf32> to vector<8x128xf32>
    %53 = vector.extract_strided_slice %35 {offsets = [0, 256], sizes = [8, 128], strides = [1, 1]} : vector<8x384xf32> to vector<8x128xf32>
    %54 = arith.addf %53, %21 : vector<8x128xf32>
    %55 = arith.mulf %43, %54 : vector<8x128xf32>
    %56 = arith.addf %52, %55 : vector<8x128xf32>
    %57 = math.tanh %56 : vector<8x128xf32>
    %cst_31 = arith.constant 1.000000e+00 : f32
    %58 = vector.broadcast %cst_31 : f32 to vector<8x128xf32>
    %59 = arith.subf %58, %51 : vector<8x128xf32>
    %60 = arith.mulf %59, %57 : vector<8x128xf32>
    %61 = arith.mulf %51, %29 : vector<8x128xf32>
    %62 = arith.addf %60, %61 : vector<8x128xf32>
    %63 = vector.extract_strided_slice %9 {offsets = [8, 0], sizes = [8, 384], strides = [1, 1]} : vector<48x384xf32> to vector<8x384xf32>
    %64 = arith.addf %63, %17 : vector<8x384xf32>
    %65 = arith.truncf %62 : vector<8x128xf32> to vector<8x128xbf16>
    %cst_32 = arith.constant dense<0.000000e+00> : vector<8x384xf32>
    %66 = tpu.matmul %65, %18, %cst_32 {dimension_numbers = #tpu.dot_dimension_numbers<[1], [0], [0], [1], [0, 0, 1, 1], [], []>} : vector<8x128xbf16>, vector<128x384xbf16>, vector<8x384xf32> -> vector<8x384xf32>
    %67 = vector.extract_strided_slice %64 {offsets = [0, 0], sizes = [8, 128], strides = [1, 1]} : vector<8x384xf32> to vector<8x128xf32>
    %68 = vector.extract_strided_slice %66 {offsets = [0, 0], sizes = [8, 128], strides = [1, 1]} : vector<8x384xf32> to vector<8x128xf32>
    %69 = arith.addf %67, %68 : vector<8x128xf32>
    %70 = arith.negf %69 : vector<8x128xf32>
    %71 = math.exp %70 : vector<8x128xf32>
    %cst_33 = arith.constant 1.000000e+00 : f32
    %72 = vector.broadcast %cst_33 : f32 to vector<8x128xf32>
    %73 = arith.addf %72, %71 : vector<8x128xf32>
    %74 = arith.divf %72, %73 : vector<8x128xf32>
    %75 = vector.extract_strided_slice %64 {offsets = [0, 128], sizes = [8, 128], strides = [1, 1]} : vector<8x384xf32> to vector<8x128xf32>
    %76 = vector.extract_strided_slice %66 {offsets = [0, 128], sizes = [8, 128], strides = [1, 1]} : vector<8x384xf32> to vector<8x128xf32>
    %77 = arith.addf %75, %76 : vector<8x128xf32>
    %78 = arith.negf %77 : vector<8x128xf32>
    %79 = math.exp %78 : vector<8x128xf32>
    %cst_34 = arith.constant 1.000000e+00 : f32
    %80 = vector.broadcast %cst_34 : f32 to vector<8x128xf32>
    %81 = arith.addf %80, %79 : vector<8x128xf32>
    %82 = arith.divf %80, %81 : vector<8x128xf32>
    %83 = vector.extract_strided_slice %64 {offsets = [0, 256], sizes = [8, 128], strides = [1, 1]} : vector<8x384xf32> to vector<8x128xf32>
    %84 = vector.extract_strided_slice %66 {offsets = [0, 256], sizes = [8, 128], strides = [1, 1]} : vector<8x384xf32> to vector<8x128xf32>
    %85 = arith.addf %84, %21 : vector<8x128xf32>
    %86 = arith.mulf %74, %85 : vector<8x128xf32>
    %87 = arith.addf %83, %86 : vector<8x128xf32>
    %88 = math.tanh %87 : vector<8x128xf32>
    %cst_35 = arith.constant 1.000000e+00 : f32
    %89 = vector.broadcast %cst_35 : f32 to vector<8x128xf32>
    %90 = arith.subf %89, %82 : vector<8x128xf32>
    %91 = arith.mulf %90, %88 : vector<8x128xf32>
    %92 = arith.mulf %82, %62 : vector<8x128xf32>
    %93 = arith.addf %91, %92 : vector<8x128xf32>
    %94 = tpu.concatenate %62, %31 in 1 : vector<8x128xf32>, vector<8x128xf32> -> vector<8x256xf32>
    %95 = arith.truncf %94 : vector<8x256xf32> to vector<8x256xbf16>
    %cst_36 = arith.constant dense<0.000000e+00> : vector<8x512xf32>
    %96 = tpu.matmul %95, %23, %cst_36 {dimension_numbers = #tpu.dot_dimension_numbers<[1], [0], [0], [1], [0, 0, 1, 1], [], []>} : vector<8x256xbf16>, vector<256x512xbf16>, vector<8x512xf32> -> vector<8x512xf32>
    %97 = arith.addf %96, %27 : vector<8x512xf32>
    %98 = vector.extract_strided_slice %97 {offsets = [0, 0], sizes = [8, 128], strides = [1, 1]} : vector<8x512xf32> to vector<8x128xf32>
    %99 = arith.negf %98 : vector<8x128xf32>
    %100 = math.exp %99 : vector<8x128xf32>
    %cst_37 = arith.constant 1.000000e+00 : f32
    %101 = vector.broadcast %cst_37 : f32 to vector<8x128xf32>
    %102 = arith.addf %101, %100 : vector<8x128xf32>
    %103 = arith.divf %101, %102 : vector<8x128xf32>
    %104 = vector.extract_strided_slice %97 {offsets = [0, 128], sizes = [8, 128], strides = [1, 1]} : vector<8x512xf32> to vector<8x128xf32>
    %105 = arith.negf %104 : vector<8x128xf32>
    %106 = math.exp %105 : vector<8x128xf32>
    %cst_38 = arith.constant 1.000000e+00 : f32
    %107 = vector.broadcast %cst_38 : f32 to vector<8x128xf32>
    %108 = arith.addf %107, %106 : vector<8x128xf32>
    %109 = arith.divf %107, %108 : vector<8x128xf32>
    %110 = vector.extract_strided_slice %97 {offsets = [0, 256], sizes = [8, 128], strides = [1, 1]} : vector<8x512xf32> to vector<8x128xf32>
    %111 = vector.extract_strided_slice %97 {offsets = [0, 384], sizes = [8, 128], strides = [1, 1]} : vector<8x512xf32> to vector<8x128xf32>
    %112 = arith.mulf %103, %111 : vector<8x128xf32>
    %113 = arith.addf %110, %112 : vector<8x128xf32>
    %114 = math.tanh %113 : vector<8x128xf32>
    %cst_39 = arith.constant 1.000000e+00 : f32
    %115 = vector.broadcast %cst_39 : f32 to vector<8x128xf32>
    %116 = arith.subf %115, %109 : vector<8x128xf32>
    %117 = arith.mulf %116, %114 : vector<8x128xf32>
    %118 = arith.mulf %109, %31 : vector<8x128xf32>
    %119 = arith.addf %117, %118 : vector<8x128xf32>
    %120 = vector.extract_strided_slice %9 {offsets = [16, 0], sizes = [8, 384], strides = [1, 1]} : vector<48x384xf32> to vector<8x384xf32>
    %121 = arith.addf %120, %17 : vector<8x384xf32>
    %122 = arith.truncf %93 : vector<8x128xf32> to vector<8x128xbf16>
    %cst_40 = arith.constant dense<0.000000e+00> : vector<8x384xf32>
    %123 = tpu.matmul %122, %18, %cst_40 {dimension_numbers = #tpu.dot_dimension_numbers<[1], [0], [0], [1], [0, 0, 1, 1], [], []>} : vector<8x128xbf16>, vector<128x384xbf16>, vector<8x384xf32> -> vector<8x384xf32>
    %124 = vector.extract_strided_slice %121 {offsets = [0, 0], sizes = [8, 128], strides = [1, 1]} : vector<8x384xf32> to vector<8x128xf32>
    %125 = vector.extract_strided_slice %123 {offsets = [0, 0], sizes = [8, 128], strides = [1, 1]} : vector<8x384xf32> to vector<8x128xf32>
    %126 = arith.addf %124, %125 : vector<8x128xf32>
    %127 = arith.negf %126 : vector<8x128xf32>
    %128 = math.exp %127 : vector<8x128xf32>
    %cst_41 = arith.constant 1.000000e+00 : f32
    %129 = vector.broadcast %cst_41 : f32 to vector<8x128xf32>
    %130 = arith.addf %129, %128 : vector<8x128xf32>
    %131 = arith.divf %129, %130 : vector<8x128xf32>
    %132 = vector.extract_strided_slice %121 {offsets = [0, 128], sizes = [8, 128], strides = [1, 1]} : vector<8x384xf32> to vector<8x128xf32>
    %133 = vector.extract_strided_slice %123 {offsets = [0, 128], sizes = [8, 128], strides = [1, 1]} : vector<8x384xf32> to vector<8x128xf32>
    %134 = arith.addf %132, %133 : vector<8x128xf32>
    %135 = arith.negf %134 : vector<8x128xf32>
    %136 = math.exp %135 : vector<8x128xf32>
    %cst_42 = arith.constant 1.000000e+00 : f32
    %137 = vector.broadcast %cst_42 : f32 to vector<8x128xf32>
    %138 = arith.addf %137, %136 : vector<8x128xf32>
    %139 = arith.divf %137, %138 : vector<8x128xf32>
    %140 = vector.extract_strided_slice %121 {offsets = [0, 256], sizes = [8, 128], strides = [1, 1]} : vector<8x384xf32> to vector<8x128xf32>
    %141 = vector.extract_strided_slice %123 {offsets = [0, 256], sizes = [8, 128], strides = [1, 1]} : vector<8x384xf32> to vector<8x128xf32>
    %142 = arith.addf %141, %21 : vector<8x128xf32>
    %143 = arith.mulf %131, %142 : vector<8x128xf32>
    %144 = arith.addf %140, %143 : vector<8x128xf32>
    %145 = math.tanh %144 : vector<8x128xf32>
    %cst_43 = arith.constant 1.000000e+00 : f32
    %146 = vector.broadcast %cst_43 : f32 to vector<8x128xf32>
    %147 = arith.subf %146, %139 : vector<8x128xf32>
    %148 = arith.mulf %147, %145 : vector<8x128xf32>
    %149 = arith.mulf %139, %93 : vector<8x128xf32>
    %150 = arith.addf %148, %149 : vector<8x128xf32>
    %151 = tpu.concatenate %93, %119 in 1 : vector<8x128xf32>, vector<8x128xf32> -> vector<8x256xf32>
    %152 = arith.truncf %151 : vector<8x256xf32> to vector<8x256xbf16>
    %cst_44 = arith.constant dense<0.000000e+00> : vector<8x512xf32>
    %153 = tpu.matmul %152, %23, %cst_44 {dimension_numbers = #tpu.dot_dimension_numbers<[1], [0], [0], [1], [0, 0, 1, 1], [], []>} : vector<8x256xbf16>, vector<256x512xbf16>, vector<8x512xf32> -> vector<8x512xf32>
    %154 = arith.addf %153, %27 : vector<8x512xf32>
    %155 = vector.extract_strided_slice %154 {offsets = [0, 0], sizes = [8, 128], strides = [1, 1]} : vector<8x512xf32> to vector<8x128xf32>
    %156 = arith.negf %155 : vector<8x128xf32>
    %157 = math.exp %156 : vector<8x128xf32>
    %cst_45 = arith.constant 1.000000e+00 : f32
    %158 = vector.broadcast %cst_45 : f32 to vector<8x128xf32>
    %159 = arith.addf %158, %157 : vector<8x128xf32>
    %160 = arith.divf %158, %159 : vector<8x128xf32>
    %161 = vector.extract_strided_slice %154 {offsets = [0, 128], sizes = [8, 128], strides = [1, 1]} : vector<8x512xf32> to vector<8x128xf32>
    %162 = arith.negf %161 : vector<8x128xf32>
    %163 = math.exp %162 : vector<8x128xf32>
    %cst_46 = arith.constant 1.000000e+00 : f32
    %164 = vector.broadcast %cst_46 : f32 to vector<8x128xf32>
    %165 = arith.addf %164, %163 : vector<8x128xf32>
    %166 = arith.divf %164, %165 : vector<8x128xf32>
    %167 = vector.extract_strided_slice %154 {offsets = [0, 256], sizes = [8, 128], strides = [1, 1]} : vector<8x512xf32> to vector<8x128xf32>
    %168 = vector.extract_strided_slice %154 {offsets = [0, 384], sizes = [8, 128], strides = [1, 1]} : vector<8x512xf32> to vector<8x128xf32>
    %169 = arith.mulf %160, %168 : vector<8x128xf32>
    %170 = arith.addf %167, %169 : vector<8x128xf32>
    %171 = math.tanh %170 : vector<8x128xf32>
    %cst_47 = arith.constant 1.000000e+00 : f32
    %172 = vector.broadcast %cst_47 : f32 to vector<8x128xf32>
    %173 = arith.subf %172, %166 : vector<8x128xf32>
    %174 = arith.mulf %173, %171 : vector<8x128xf32>
    %175 = arith.mulf %166, %119 : vector<8x128xf32>
    %176 = arith.addf %174, %175 : vector<8x128xf32>
    %177 = vector.extract_strided_slice %9 {offsets = [24, 0], sizes = [8, 384], strides = [1, 1]} : vector<48x384xf32> to vector<8x384xf32>
    %178 = arith.addf %177, %17 : vector<8x384xf32>
    %179 = arith.truncf %150 : vector<8x128xf32> to vector<8x128xbf16>
    %cst_48 = arith.constant dense<0.000000e+00> : vector<8x384xf32>
    %180 = tpu.matmul %179, %18, %cst_48 {dimension_numbers = #tpu.dot_dimension_numbers<[1], [0], [0], [1], [0, 0, 1, 1], [], []>} : vector<8x128xbf16>, vector<128x384xbf16>, vector<8x384xf32> -> vector<8x384xf32>
    %181 = vector.extract_strided_slice %178 {offsets = [0, 0], sizes = [8, 128], strides = [1, 1]} : vector<8x384xf32> to vector<8x128xf32>
    %182 = vector.extract_strided_slice %180 {offsets = [0, 0], sizes = [8, 128], strides = [1, 1]} : vector<8x384xf32> to vector<8x128xf32>
    %183 = arith.addf %181, %182 : vector<8x128xf32>
    %184 = arith.negf %183 : vector<8x128xf32>
    %185 = math.exp %184 : vector<8x128xf32>
    %cst_49 = arith.constant 1.000000e+00 : f32
    %186 = vector.broadcast %cst_49 : f32 to vector<8x128xf32>
    %187 = arith.addf %186, %185 : vector<8x128xf32>
    %188 = arith.divf %186, %187 : vector<8x128xf32>
    %189 = vector.extract_strided_slice %178 {offsets = [0, 128], sizes = [8, 128], strides = [1, 1]} : vector<8x384xf32> to vector<8x128xf32>
    %190 = vector.extract_strided_slice %180 {offsets = [0, 128], sizes = [8, 128], strides = [1, 1]} : vector<8x384xf32> to vector<8x128xf32>
    %191 = arith.addf %189, %190 : vector<8x128xf32>
    %192 = arith.negf %191 : vector<8x128xf32>
    %193 = math.exp %192 : vector<8x128xf32>
    %cst_50 = arith.constant 1.000000e+00 : f32
    %194 = vector.broadcast %cst_50 : f32 to vector<8x128xf32>
    %195 = arith.addf %194, %193 : vector<8x128xf32>
    %196 = arith.divf %194, %195 : vector<8x128xf32>
    %197 = vector.extract_strided_slice %178 {offsets = [0, 256], sizes = [8, 128], strides = [1, 1]} : vector<8x384xf32> to vector<8x128xf32>
    %198 = vector.extract_strided_slice %180 {offsets = [0, 256], sizes = [8, 128], strides = [1, 1]} : vector<8x384xf32> to vector<8x128xf32>
    %199 = arith.addf %198, %21 : vector<8x128xf32>
    %200 = arith.mulf %188, %199 : vector<8x128xf32>
    %201 = arith.addf %197, %200 : vector<8x128xf32>
    %202 = math.tanh %201 : vector<8x128xf32>
    %cst_51 = arith.constant 1.000000e+00 : f32
    %203 = vector.broadcast %cst_51 : f32 to vector<8x128xf32>
    %204 = arith.subf %203, %196 : vector<8x128xf32>
    %205 = arith.mulf %204, %202 : vector<8x128xf32>
    %206 = arith.mulf %196, %150 : vector<8x128xf32>
    %207 = arith.addf %205, %206 : vector<8x128xf32>
    %208 = tpu.concatenate %150, %176 in 1 : vector<8x128xf32>, vector<8x128xf32> -> vector<8x256xf32>
    %209 = arith.truncf %208 : vector<8x256xf32> to vector<8x256xbf16>
    %cst_52 = arith.constant dense<0.000000e+00> : vector<8x512xf32>
    %210 = tpu.matmul %209, %23, %cst_52 {dimension_numbers = #tpu.dot_dimension_numbers<[1], [0], [0], [1], [0, 0, 1, 1], [], []>} : vector<8x256xbf16>, vector<256x512xbf16>, vector<8x512xf32> -> vector<8x512xf32>
    %211 = arith.addf %210, %27 : vector<8x512xf32>
    %212 = vector.extract_strided_slice %211 {offsets = [0, 0], sizes = [8, 128], strides = [1, 1]} : vector<8x512xf32> to vector<8x128xf32>
    %213 = arith.negf %212 : vector<8x128xf32>
    %214 = math.exp %213 : vector<8x128xf32>
    %cst_53 = arith.constant 1.000000e+00 : f32
    %215 = vector.broadcast %cst_53 : f32 to vector<8x128xf32>
    %216 = arith.addf %215, %214 : vector<8x128xf32>
    %217 = arith.divf %215, %216 : vector<8x128xf32>
    %218 = vector.extract_strided_slice %211 {offsets = [0, 128], sizes = [8, 128], strides = [1, 1]} : vector<8x512xf32> to vector<8x128xf32>
    %219 = arith.negf %218 : vector<8x128xf32>
    %220 = math.exp %219 : vector<8x128xf32>
    %cst_54 = arith.constant 1.000000e+00 : f32
    %221 = vector.broadcast %cst_54 : f32 to vector<8x128xf32>
    %222 = arith.addf %221, %220 : vector<8x128xf32>
    %223 = arith.divf %221, %222 : vector<8x128xf32>
    %224 = vector.extract_strided_slice %211 {offsets = [0, 256], sizes = [8, 128], strides = [1, 1]} : vector<8x512xf32> to vector<8x128xf32>
    %225 = vector.extract_strided_slice %211 {offsets = [0, 384], sizes = [8, 128], strides = [1, 1]} : vector<8x512xf32> to vector<8x128xf32>
    %226 = arith.mulf %217, %225 : vector<8x128xf32>
    %227 = arith.addf %224, %226 : vector<8x128xf32>
    %228 = math.tanh %227 : vector<8x128xf32>
    %cst_55 = arith.constant 1.000000e+00 : f32
    %229 = vector.broadcast %cst_55 : f32 to vector<8x128xf32>
    %230 = arith.subf %229, %223 : vector<8x128xf32>
    %231 = arith.mulf %230, %228 : vector<8x128xf32>
    %232 = arith.mulf %223, %176 : vector<8x128xf32>
    %233 = arith.addf %231, %232 : vector<8x128xf32>
    %234 = vector.extract_strided_slice %9 {offsets = [32, 0], sizes = [8, 384], strides = [1, 1]} : vector<48x384xf32> to vector<8x384xf32>
    %235 = arith.addf %234, %17 : vector<8x384xf32>
    %236 = arith.truncf %207 : vector<8x128xf32> to vector<8x128xbf16>
    %cst_56 = arith.constant dense<0.000000e+00> : vector<8x384xf32>
    %237 = tpu.matmul %236, %18, %cst_56 {dimension_numbers = #tpu.dot_dimension_numbers<[1], [0], [0], [1], [0, 0, 1, 1], [], []>} : vector<8x128xbf16>, vector<128x384xbf16>, vector<8x384xf32> -> vector<8x384xf32>
    %238 = vector.extract_strided_slice %235 {offsets = [0, 0], sizes = [8, 128], strides = [1, 1]} : vector<8x384xf32> to vector<8x128xf32>
    %239 = vector.extract_strided_slice %237 {offsets = [0, 0], sizes = [8, 128], strides = [1, 1]} : vector<8x384xf32> to vector<8x128xf32>
    %240 = arith.addf %238, %239 : vector<8x128xf32>
    %241 = arith.negf %240 : vector<8x128xf32>
    %242 = math.exp %241 : vector<8x128xf32>
    %cst_57 = arith.constant 1.000000e+00 : f32
    %243 = vector.broadcast %cst_57 : f32 to vector<8x128xf32>
    %244 = arith.addf %243, %242 : vector<8x128xf32>
    %245 = arith.divf %243, %244 : vector<8x128xf32>
    %246 = vector.extract_strided_slice %235 {offsets = [0, 128], sizes = [8, 128], strides = [1, 1]} : vector<8x384xf32> to vector<8x128xf32>
    %247 = vector.extract_strided_slice %237 {offsets = [0, 128], sizes = [8, 128], strides = [1, 1]} : vector<8x384xf32> to vector<8x128xf32>
    %248 = arith.addf %246, %247 : vector<8x128xf32>
    %249 = arith.negf %248 : vector<8x128xf32>
    %250 = math.exp %249 : vector<8x128xf32>
    %cst_58 = arith.constant 1.000000e+00 : f32
    %251 = vector.broadcast %cst_58 : f32 to vector<8x128xf32>
    %252 = arith.addf %251, %250 : vector<8x128xf32>
    %253 = arith.divf %251, %252 : vector<8x128xf32>
    %254 = vector.extract_strided_slice %235 {offsets = [0, 256], sizes = [8, 128], strides = [1, 1]} : vector<8x384xf32> to vector<8x128xf32>
    %255 = vector.extract_strided_slice %237 {offsets = [0, 256], sizes = [8, 128], strides = [1, 1]} : vector<8x384xf32> to vector<8x128xf32>
    %256 = arith.addf %255, %21 : vector<8x128xf32>
    %257 = arith.mulf %245, %256 : vector<8x128xf32>
    %258 = arith.addf %254, %257 : vector<8x128xf32>
    %259 = math.tanh %258 : vector<8x128xf32>
    %cst_59 = arith.constant 1.000000e+00 : f32
    %260 = vector.broadcast %cst_59 : f32 to vector<8x128xf32>
    %261 = arith.subf %260, %253 : vector<8x128xf32>
    %262 = arith.mulf %261, %259 : vector<8x128xf32>
    %263 = arith.mulf %253, %207 : vector<8x128xf32>
    %264 = arith.addf %262, %263 : vector<8x128xf32>
    %265 = tpu.concatenate %207, %233 in 1 : vector<8x128xf32>, vector<8x128xf32> -> vector<8x256xf32>
    %266 = arith.truncf %265 : vector<8x256xf32> to vector<8x256xbf16>
    %cst_60 = arith.constant dense<0.000000e+00> : vector<8x512xf32>
    %267 = tpu.matmul %266, %23, %cst_60 {dimension_numbers = #tpu.dot_dimension_numbers<[1], [0], [0], [1], [0, 0, 1, 1], [], []>} : vector<8x256xbf16>, vector<256x512xbf16>, vector<8x512xf32> -> vector<8x512xf32>
    %268 = arith.addf %267, %27 : vector<8x512xf32>
    %269 = vector.extract_strided_slice %268 {offsets = [0, 0], sizes = [8, 128], strides = [1, 1]} : vector<8x512xf32> to vector<8x128xf32>
    %270 = arith.negf %269 : vector<8x128xf32>
    %271 = math.exp %270 : vector<8x128xf32>
    %cst_61 = arith.constant 1.000000e+00 : f32
    %272 = vector.broadcast %cst_61 : f32 to vector<8x128xf32>
    %273 = arith.addf %272, %271 : vector<8x128xf32>
    %274 = arith.divf %272, %273 : vector<8x128xf32>
    %275 = vector.extract_strided_slice %268 {offsets = [0, 128], sizes = [8, 128], strides = [1, 1]} : vector<8x512xf32> to vector<8x128xf32>
    %276 = arith.negf %275 : vector<8x128xf32>
    %277 = math.exp %276 : vector<8x128xf32>
    %cst_62 = arith.constant 1.000000e+00 : f32
    %278 = vector.broadcast %cst_62 : f32 to vector<8x128xf32>
    %279 = arith.addf %278, %277 : vector<8x128xf32>
    %280 = arith.divf %278, %279 : vector<8x128xf32>
    %281 = vector.extract_strided_slice %268 {offsets = [0, 256], sizes = [8, 128], strides = [1, 1]} : vector<8x512xf32> to vector<8x128xf32>
    %282 = vector.extract_strided_slice %268 {offsets = [0, 384], sizes = [8, 128], strides = [1, 1]} : vector<8x512xf32> to vector<8x128xf32>
    %283 = arith.mulf %274, %282 : vector<8x128xf32>
    %284 = arith.addf %281, %283 : vector<8x128xf32>
    %285 = math.tanh %284 : vector<8x128xf32>
    %cst_63 = arith.constant 1.000000e+00 : f32
    %286 = vector.broadcast %cst_63 : f32 to vector<8x128xf32>
    %287 = arith.subf %286, %280 : vector<8x128xf32>
    %288 = arith.mulf %287, %285 : vector<8x128xf32>
    %289 = arith.mulf %280, %233 : vector<8x128xf32>
    %290 = arith.addf %288, %289 : vector<8x128xf32>
    %291 = vector.extract_strided_slice %9 {offsets = [40, 0], sizes = [8, 384], strides = [1, 1]} : vector<48x384xf32> to vector<8x384xf32>
    %292 = arith.addf %291, %17 : vector<8x384xf32>
    %293 = arith.truncf %264 : vector<8x128xf32> to vector<8x128xbf16>
    %cst_64 = arith.constant dense<0.000000e+00> : vector<8x384xf32>
    %294 = tpu.matmul %293, %18, %cst_64 {dimension_numbers = #tpu.dot_dimension_numbers<[1], [0], [0], [1], [0, 0, 1, 1], [], []>} : vector<8x128xbf16>, vector<128x384xbf16>, vector<8x384xf32> -> vector<8x384xf32>
    %295 = vector.extract_strided_slice %292 {offsets = [0, 0], sizes = [8, 128], strides = [1, 1]} : vector<8x384xf32> to vector<8x128xf32>
    %296 = vector.extract_strided_slice %294 {offsets = [0, 0], sizes = [8, 128], strides = [1, 1]} : vector<8x384xf32> to vector<8x128xf32>
    %297 = arith.addf %295, %296 : vector<8x128xf32>
    %298 = arith.negf %297 : vector<8x128xf32>
    %299 = math.exp %298 : vector<8x128xf32>
    %cst_65 = arith.constant 1.000000e+00 : f32
    %300 = vector.broadcast %cst_65 : f32 to vector<8x128xf32>
    %301 = arith.addf %300, %299 : vector<8x128xf32>
    %302 = arith.divf %300, %301 : vector<8x128xf32>
    %303 = vector.extract_strided_slice %292 {offsets = [0, 128], sizes = [8, 128], strides = [1, 1]} : vector<8x384xf32> to vector<8x128xf32>
    %304 = vector.extract_strided_slice %294 {offsets = [0, 128], sizes = [8, 128], strides = [1, 1]} : vector<8x384xf32> to vector<8x128xf32>
    %305 = arith.addf %303, %304 : vector<8x128xf32>
    %306 = arith.negf %305 : vector<8x128xf32>
    %307 = math.exp %306 : vector<8x128xf32>
    %cst_66 = arith.constant 1.000000e+00 : f32
    %308 = vector.broadcast %cst_66 : f32 to vector<8x128xf32>
    %309 = arith.addf %308, %307 : vector<8x128xf32>
    %310 = arith.divf %308, %309 : vector<8x128xf32>
    %311 = vector.extract_strided_slice %292 {offsets = [0, 256], sizes = [8, 128], strides = [1, 1]} : vector<8x384xf32> to vector<8x128xf32>
    %312 = vector.extract_strided_slice %294 {offsets = [0, 256], sizes = [8, 128], strides = [1, 1]} : vector<8x384xf32> to vector<8x128xf32>
    %313 = arith.addf %312, %21 : vector<8x128xf32>
    %314 = arith.mulf %302, %313 : vector<8x128xf32>
    %315 = arith.addf %311, %314 : vector<8x128xf32>
    %316 = math.tanh %315 : vector<8x128xf32>
    %cst_67 = arith.constant 1.000000e+00 : f32
    %317 = vector.broadcast %cst_67 : f32 to vector<8x128xf32>
    %318 = arith.subf %317, %310 : vector<8x128xf32>
    %319 = arith.mulf %318, %316 : vector<8x128xf32>
    %320 = arith.mulf %310, %264 : vector<8x128xf32>
    %321 = arith.addf %319, %320 : vector<8x128xf32>
    %322 = tpu.concatenate %264, %290 in 1 : vector<8x128xf32>, vector<8x128xf32> -> vector<8x256xf32>
    %323 = arith.truncf %322 : vector<8x256xf32> to vector<8x256xbf16>
    %cst_68 = arith.constant dense<0.000000e+00> : vector<8x512xf32>
    %324 = tpu.matmul %323, %23, %cst_68 {dimension_numbers = #tpu.dot_dimension_numbers<[1], [0], [0], [1], [0, 0, 1, 1], [], []>} : vector<8x256xbf16>, vector<256x512xbf16>, vector<8x512xf32> -> vector<8x512xf32>
    %325 = arith.addf %324, %27 : vector<8x512xf32>
    %326 = vector.extract_strided_slice %325 {offsets = [0, 0], sizes = [8, 128], strides = [1, 1]} : vector<8x512xf32> to vector<8x128xf32>
    %327 = arith.negf %326 : vector<8x128xf32>
    %328 = math.exp %327 : vector<8x128xf32>
    %cst_69 = arith.constant 1.000000e+00 : f32
    %329 = vector.broadcast %cst_69 : f32 to vector<8x128xf32>
    %330 = arith.addf %329, %328 : vector<8x128xf32>
    %331 = arith.divf %329, %330 : vector<8x128xf32>
    %332 = vector.extract_strided_slice %325 {offsets = [0, 128], sizes = [8, 128], strides = [1, 1]} : vector<8x512xf32> to vector<8x128xf32>
    %333 = arith.negf %332 : vector<8x128xf32>
    %334 = math.exp %333 : vector<8x128xf32>
    %cst_70 = arith.constant 1.000000e+00 : f32
    %335 = vector.broadcast %cst_70 : f32 to vector<8x128xf32>
    %336 = arith.addf %335, %334 : vector<8x128xf32>
    %337 = arith.divf %335, %336 : vector<8x128xf32>
    %338 = vector.extract_strided_slice %325 {offsets = [0, 256], sizes = [8, 128], strides = [1, 1]} : vector<8x512xf32> to vector<8x128xf32>
    %339 = vector.extract_strided_slice %325 {offsets = [0, 384], sizes = [8, 128], strides = [1, 1]} : vector<8x512xf32> to vector<8x128xf32>
    %340 = arith.mulf %331, %339 : vector<8x128xf32>
    %341 = arith.addf %338, %340 : vector<8x128xf32>
    %342 = math.tanh %341 : vector<8x128xf32>
    %cst_71 = arith.constant 1.000000e+00 : f32
    %343 = vector.broadcast %cst_71 : f32 to vector<8x128xf32>
    %344 = arith.subf %343, %337 : vector<8x128xf32>
    %345 = arith.mulf %344, %342 : vector<8x128xf32>
    %346 = arith.mulf %337, %290 : vector<8x128xf32>
    %347 = arith.addf %345, %346 : vector<8x128xf32>
    %348 = tpu.concatenate %321, %347 in 1 : vector<8x128xf32>, vector<8x128xf32> -> vector<8x256xf32>
    %349 = arith.truncf %348 : vector<8x256xf32> to vector<8x256xbf16>
    %cst_72 = arith.constant dense<0.000000e+00> : vector<8x512xf32>
    %350 = tpu.matmul %349, %23, %cst_72 {dimension_numbers = #tpu.dot_dimension_numbers<[1], [0], [0], [1], [0, 0, 1, 1], [], []>} : vector<8x256xbf16>, vector<256x512xbf16>, vector<8x512xf32> -> vector<8x512xf32>
    %351 = arith.addf %350, %27 : vector<8x512xf32>
    %352 = vector.extract_strided_slice %351 {offsets = [0, 0], sizes = [8, 128], strides = [1, 1]} : vector<8x512xf32> to vector<8x128xf32>
    %353 = arith.negf %352 : vector<8x128xf32>
    %354 = math.exp %353 : vector<8x128xf32>
    %cst_73 = arith.constant 1.000000e+00 : f32
    %355 = vector.broadcast %cst_73 : f32 to vector<8x128xf32>
    %356 = arith.addf %355, %354 : vector<8x128xf32>
    %357 = arith.divf %355, %356 : vector<8x128xf32>
    %358 = vector.extract_strided_slice %351 {offsets = [0, 128], sizes = [8, 128], strides = [1, 1]} : vector<8x512xf32> to vector<8x128xf32>
    %359 = arith.negf %358 : vector<8x128xf32>
    %360 = math.exp %359 : vector<8x128xf32>
    %cst_74 = arith.constant 1.000000e+00 : f32
    %361 = vector.broadcast %cst_74 : f32 to vector<8x128xf32>
    %362 = arith.addf %361, %360 : vector<8x128xf32>
    %363 = arith.divf %361, %362 : vector<8x128xf32>
    %364 = vector.extract_strided_slice %351 {offsets = [0, 256], sizes = [8, 128], strides = [1, 1]} : vector<8x512xf32> to vector<8x128xf32>
    %365 = vector.extract_strided_slice %351 {offsets = [0, 384], sizes = [8, 128], strides = [1, 1]} : vector<8x512xf32> to vector<8x128xf32>
    %366 = arith.mulf %357, %365 : vector<8x128xf32>
    %367 = arith.addf %364, %366 : vector<8x128xf32>
    %368 = math.tanh %367 : vector<8x128xf32>
    %cst_75 = arith.constant 1.000000e+00 : f32
    %369 = vector.broadcast %cst_75 : f32 to vector<8x128xf32>
    %370 = arith.subf %369, %363 : vector<8x128xf32>
    %371 = arith.mulf %370, %368 : vector<8x128xf32>
    %372 = arith.mulf %363, %347 : vector<8x128xf32>
    %373 = arith.addf %371, %372 : vector<8x128xf32>
    %374 = tpu.concatenate %119, %176, %233, %290, %347, %373 in 0 : vector<8x128xf32>, vector<8x128xf32>, vector<8x128xf32>, vector<8x128xf32>, vector<8x128xf32>, vector<8x128xf32> -> vector<48x128xf32>
    %375 = arith.truncf %374 : vector<48x128xf32> to vector<48x128xbf16>
    %c0_76 = arith.constant 0 : index
    %c0_77 = arith.constant 0 : index
    %376 = vector.load %arg9[%c0_76, %c0_77] : memref<128x128xbf16, #tpu.memory_space<vmem>>, vector<128x128xbf16>
    %cst_78 = arith.constant dense<0.000000e+00> : vector<48x128xf32>
    %377 = tpu.matmul %375, %376, %cst_78 {dimension_numbers = #tpu.dot_dimension_numbers<[1], [0], [0], [1], [0, 0, 1, 1], [], []>} : vector<48x128xbf16>, vector<128x128xbf16>, vector<48x128xf32> -> vector<48x128xf32>
    %c0_79 = arith.constant 0 : index
    %c0_80 = arith.constant 0 : index
    %378 = vector.load %arg10[%c0_79, %c0_80] : memref<1x128xf32, #tpu.memory_space<vmem>>, vector<1x128xf32>
    %379 = vector.broadcast %378 : vector<1x128xf32> to vector<48x128xf32>
    %380 = arith.addf %377, %379 : vector<48x128xf32>
    %c0_81 = arith.constant 0 : index
    %c0_82 = arith.constant 0 : index
    %381 = vector.load %arg11[%c0_81, %c0_82] : memref<48x128xf32, #tpu.memory_space<vmem>>, vector<48x128xf32>
    tpu.vector_store %arg11[%c0_81, %c0_82], %380 {strides = array<i32>} : memref<48x128xf32, #tpu.memory_space<vmem>>, vector<48x128xf32>,
    %c0_83 = arith.constant 0 : index
    %c0_84 = arith.constant 0 : index
    %c0_85 = arith.constant 0 : index
    %382 = vector.load %arg12[%c0_83, %c0_84, %c0_85] : memref<2x8x128xf32, #tpu.memory_space<vmem>>, vector<1x8x128xf32>
    %383 = vector.shape_cast %382 : vector<1x8x128xf32> to vector<8x128xf32>
    %384 = vector.shape_cast %321 : vector<8x128xf32> to vector<1x8x128xf32>
    tpu.vector_store %arg12[%c0_83, %c0_84, %c0_85], %384 {strides = array<i32>} : memref<2x8x128xf32, #tpu.memory_space<vmem>>, vector<1x8x128xf32>,
    %c1_86 = arith.constant 1 : index
    %c0_87 = arith.constant 0 : index
    %c0_88 = arith.constant 0 : index
    %385 = vector.load %arg12[%c1_86, %c0_87, %c0_88] : memref<2x8x128xf32, #tpu.memory_space<vmem>>, vector<1x8x128xf32>
    %386 = vector.shape_cast %385 : vector<1x8x128xf32> to vector<8x128xf32>
    %387 = vector.shape_cast %373 : vector<8x128xf32> to vector<1x8x128xf32>
    tpu.vector_store %arg12[%c1_86, %c0_87, %c0_88], %387 {strides = array<i32>} : memref<2x8x128xf32, #tpu.memory_space<vmem>>, vector<1x8x128xf32>,
    return
  }
}

</mosaic_0001>

<bundles_post_ra>
// kernel: decoder_forward.1
= control target key start
LH: loop header
LB: loop body
LE: loop exit
PB: predicated region body
PF: predicated region fallthrough
CT: control target
= control target key end

     0   :  { %18 = vsyncpa [#allocation3], 0  ;;  %s5073_s0 = inlined_call_operand.vmem [shape: s32[48,1], index: 0, kind: input, shape index: {}]   ;;  %s5074_s1 = inlined_call_operand.vmem [shape: f32[2,8,128], index: 1, kind: input, shape index: {}]   ;;  %s5075_s2 = inlined_call_operand.hbm [shape: bf16[128,384], index: 2, kind: input, shape index: {}]   ;;  %s5076_s3 = inlined_call_operand.hbm [shape: bf16[128,384], index: 3, kind: input, shape index: {}]   ;;  %s5077_s4 = inlined_call_operand.hbm [shape: bf16[128,384], index: 4, kind: input, shape index: {}]   ;;  %s5078_s5 = inlined_call_operand.vmem [shape: f32[1,384], index: 5, kind: input, shape index: {}]   ;;  %s5079_s6 = inlined_call_operand.vmem [shape: f32[1,128], index: 6, kind: input, shape index: {}]   ;;  %s5080_s7 = inlined_call_operand.hbm [shape: bf16[1,256,512], index: 7, kind: input, shape index: {}]   ;;  %s5081_s8 = inlined_call_operand.vmem [shape: f32[1,1,512], index: 8, kind: input, shape index: {}]   ;;  %s5082_s9 = inlined_call_operand.vmem [shape: bf16[128,128], index: 9, kind: input, shape index: {}]   ;;  %s5083_s10 = inlined_call_operand.vmem [shape: f32[1,128], index: 10, kind: input, shape index: {}]   ;;  %s5084_s11 = inlined_call_operand.vmem [shape: f32[48,128], index: 11, kind: output, shape index: {0}]   ;;  %s5085_s12 = inlined_call_operand.vmem [shape: f32[2,8,128], index: 12, kind: output, shape index: {1}]  }
   0x1   :  { %19 = vsyncpa [#allocation5], 0 }
   0x2   :  { %20 = vsyncpa [#allocation8], 0  ;;  %s3647_s21 = smov [#allocation4]   ;;  %s3648_s23 = smov [#allocation2]  }
   0x3   :  { %s42_s22 = sshll.u32 %s3647_s21, 4  ;;  %s30_s24 = sshll.u32 %s3648_s23, 4  ;;  %s43_s22 = int_to_ptr.vmem [resolvable:$true] %s42_s22  ;;  %s3724_s24 = int_to_ptr.vmem [resolvable:$true] %s30_s24 }
   0x4   :  { %s3553_s27 = scalar_lea.hbm %s5076_s3, 3072 }
   0x5   :  { %p3554_p0 = scmp.ne.s32.totalorder %s5076_s3, %s3553_s27  ;;  %p3557_p1 = scmp.lt.u32.totalorder %s3553_s27, %s5076_s3 }
   0x7   :  { %p3559_p2 = pnand %p3557_p1, %p3554_p0 }
   0x9   :  { %3562 = shalt.err (!%p3559_p2)
}
   0xa   :  { %s3563_s14 = scalar_lea.vmem %s43_s22, 3072  ;;  %p3568_p4 = scmp.lt.s32.totalorder %s43_s22, %s43_s22 }
   0xb   :  { %p3564_p3 = scmp.ne.s32.totalorder %s43_s22, %s3563_s14  ;;  %p3569_p5 = scmp.lt.s32.totalorder %s3563_s14, %s3563_s14 }
   0xd   :  { %p3570_p6 = por %p3569_p5, %p3568_p4 }
   0xf   :  { %p3571_p7 = pnand %p3570_p6, %p3564_p3 }
  0x11   :  { %3574 = shalt.err (!%p3571_p7)
}
  0x12   :  { %s3649_s15 = smov 192   ;;  %s3650_s16 = smov 12  }
  0x13   :  { %48 = dma.hbm_to_vmem [thread:$0]  %s5076_s3, 3072, %s43_s22, [#allocation5], %s3649_s15, %s3649_s15, %s3650_s16  }
  0x14   :  { %s3575_s21 = scalar_lea.hbm %s5075_s2, 3072 }
  0x15   :  { %p3576_p8 = scmp.ne.s32.totalorder %s5075_s2, %s3575_s21  ;;  %p3579_p9 = scmp.lt.u32.totalorder %s3575_s21, %s5075_s2 }
  0x17   :  { %p3581_p10 = pnand %p3579_p9, %p3576_p8 }
  0x19   :  { %3584 = shalt.err (!%p3581_p10)
}
  0x1a   :  { %s3585_s28 = scalar_lea.vmem %s3724_s24, 3072  ;;  %p3590_p12 = scmp.lt.s32.totalorder %s3724_s24, %s3724_s24 }
  0x1b   :  { %p3586_p11 = scmp.ne.s32.totalorder %s3724_s24, %s3585_s28  ;;  %p3591_p13 = scmp.lt.s32.totalorder %s3585_s28, %s3585_s28 }
  0x1d   :  { %p3592_p0 = por %p3591_p13, %p3590_p12 }
  0x1f   :  { %p3593_p1 = pnand %p3592_p0, %p3586_p11 }
  0x21   :  { %3596 = shalt.err (!%p3593_p1)
}
  0x22   :  { %36 = dma.hbm_to_vmem [thread:$0]  %s5075_s2, 3072, %s3724_s24, [#allocation3], %s3649_s15, %s3649_s15, %s3650_s16  }
  0x23   :  { %s3651_s29 = smov [#allocation6]   ;;  %s3652_s13 = smov [#allocation7]  }
  0x24   :  { %s54_s30 = sshll.u32 %s3651_s29, 4  ;;  %s70_s14 = sshll.u32 %s3652_s13, 4  ;;  %s55_s30 = int_to_ptr.vmem [resolvable:$true] %s54_s30  ;;  %s3761_s14 = int_to_ptr.vmem [resolvable:$true] %s70_s14 }
  0x25   :  { %s3597_s19 = scalar_lea.hbm %s5077_s4, 3072 }
  0x26   :  { %p3598_p2 = scmp.ne.s32.totalorder %s5077_s4, %s3597_s19  ;;  %p3601_p3 = scmp.lt.u32.totalorder %s3597_s19, %s5077_s4 }
  0x28   :  { %p3603_p4 = pnand %p3601_p3, %p3598_p2 }
  0x2a   :  { %3606 = shalt.err (!%p3603_p4)
}
  0x2b   :  { %s3607_s2 = scalar_lea.vmem %s55_s30, 3072  ;;  %p3612_p6 = scmp.lt.s32.totalorder %s55_s30, %s55_s30 }
  0x2c   :  { %p3608_p5 = scmp.ne.s32.totalorder %s55_s30, %s3607_s2  ;;  %p3613_p7 = scmp.lt.s32.totalorder %s3607_s2, %s3607_s2 }
  0x2e   :  { %p3614_p8 = por %p3613_p7, %p3612_p6 }
  0x30   :  { %p3615_p9 = pnand %p3614_p8, %p3608_p5 }
  0x32   :  { %3618 = shalt.err (!%p3615_p9)
}
  0x33   :  { %60 = dma.hbm_to_vmem [thread:$0]  %s5077_s4, 3072, %s55_s30, [#allocation5], %s3649_s15, %s3649_s15, %s3650_s16  }
  0x34   :  { %s3619_s3 = scalar_lea.hbm %s5080_s7, 8192 }
  0x35   :  { %p3620_p10 = scmp.ne.s32.totalorder %s5080_s7, %s3619_s3  ;;  %p3623_p11 = scmp.lt.u32.totalorder %s3619_s3, %s5080_s7 }
  0x37   :  { %p3625_p12 = pnand %p3623_p11, %p3620_p10 }
  0x39   :  { %3628 = shalt.err (!%p3625_p12)
}
  0x3a   :  { %s3629_s18 = scalar_lea.vmem %s3761_s14, 8192  ;;  %p3634_p0 = scmp.lt.s32.totalorder %s3761_s14, %s3761_s14 }
  0x3b   :  { %p3630_p13 = scmp.ne.s32.totalorder %s3761_s14, %s3629_s18  ;;  %p3635_p1 = scmp.lt.s32.totalorder %s3629_s18, %s3629_s18 }
  0x3d   :  { %p3636_p2 = por %p3635_p1, %p3634_p0 }
  0x3f   :  { %p3637_p3 = pnand %p3636_p2, %p3630_p13 }
  0x41   :  { %3640 = shalt.err (!%p3637_p3)
}
  0x42   :  { %s3653_s4 = smov 256   ;;  %s3654_s15 = smov 16  }
  0x43   :  { %76 = dma.hbm_to_vmem [thread:$0]  %s5080_s7, 8192, %s3761_s14, [#allocation8], %s3653_s4, %s3653_s4, %s3654_s15  }
  0x44   :  { %3641 = dma.done.wait [#allocation3], 3072  }
  0x45   :  { %3642 = vsyncadd [#allocation3], 4294964224 }
  0x46   :  { %3643 = dma.done.wait [#allocation5], 6144  }
  0x47   :  { %3644 = vsyncadd [#allocation5], 4294961152 }
  0x48   :  { %3645 = dma.done.wait [#allocation8], 8192  }
  0x49   :  { %3646 = vsyncadd [#allocation8], 4294959104  ;;  %v5089_v0 = vmov 0   ;;  %v98_v1 = vld [vmem:[%s5073_s0 + $0x10] sm:$0xff]  ;;  %v96_v2 = vld [vmem:[%s5073_s0] sm:$0xff]  ;;  %v5091_v49 = vmov 0.0   ;;  %v102_v60 = vlaneseq }
  0x4a   :  { %3135 = vset.pattern.permute.xlu1 %v5089_v0  ;;  %3134 = vset.pattern.permute.xlu0 %v5089_v0  ;;  %v99_v3 = vld [vmem:[%s5073_s0 + $0x18] sm:$0xff]  ;;  %v97_v4 = vld [vmem:[%s5073_s0 + $0x8] sm:$0xff]  ;;  %v3136_v5 = vld [vmem:[#allocation4 + $0x4] ss:$12 sps:$4 sm:$0xff]   ;;  %vm3658_vm9 = vmmov 0  }
  0x4b   :  { %629 = vmatprep.mubr.bf16.mxu0 %v5089_v0  ;;  %329 = vmatprep.mubr.bf16.mxu1 %v5089_v0  ;;  %v3138_v6 = vld [vmem:[#allocation4] ss:$12 sps:$4 sm:$0xff]   ;;  %v3139_v7 = vld [vmem:[#allocation4 + $0x1c] ss:$12 sps:$4 sm:$0xff]   ;;  %v3141_v10 = vld [vmem:[#allocation4 + $0x18] ss:$12 sps:$4 sm:$0xff]  }
  0x4c   :  { %111 = vperm.xlu1 %3135, %v98_v1   ;;  %105 = vperm.xlu0 %3134, %v96_v2   ;;  %v101_v8 = vld [vmem:[%s5073_s0 + $0x28] sm:$0xff]  ;;  %v100_v9 = vld [vmem:[%s5073_s0 + $0x20] sm:$0xff]  ;;  %v3144_v12 = vld [vmem:[#allocation4 + $0x30] ss:$12 sps:$4 sm:$0xff]   ;;  %v103_v62 = vand.u32 127, %v102_v60 }
  0x4d   :  { %597 = vmatprep.subr.bf16.mxu0 %v3136_v5  ;;  %v3142_v11 = vld [vmem:[#allocation4 + $0x34] ss:$12 sps:$4 sm:$0xff]   ;;  %v3145_v13 = vld [vmem:[#allocation4 + $0x4c] ss:$12 sps:$4 sm:$0xff]   ;;  %v3159_v15 = vld [vmem:[#allocation2 + $0x4] ss:$12 sps:$4 sm:$0xff]  }
  0x4e   :  { %598 = vmatpush1.bf16.msra.mxu0 %v3138_v6  ;;  %v3147_v14 = vld [vmem:[#allocation4 + $0x48] ss:$12 sps:$4 sm:$0xff]   ;;  %v3162_v16 = vld [vmem:[#allocation2] ss:$12 sps:$4 sm:$0xff]   ;;  %v3148_v17 = vld [vmem:[#allocation4 + $0x64] ss:$12 sps:$4 sm:$0xff]   ;;  %297 = vmatprep.subr.bf16.mxu1 %v3159_v15 }
  0x4f   :  { %599 = vmatprep.subr.bf16.mxu0 %v3139_v7  ;;  %v3165_v18 = vld [vmem:[#allocation2 + $0x1c] ss:$12 sps:$4 sm:$0xff]   ;;  %298 = vmatpush1.bf16.msra.mxu1 %v3162_v16  ;;  %v3168_v19 = vld [vmem:[#allocation2 + $0x18] ss:$12 sps:$4 sm:$0xff]   ;;  %v3150_v20 = vld [vmem:[#allocation4 + $0x60] ss:$12 sps:$4 sm:$0xff]  }
  0x50   :  { %114 = vperm.xlu1 %3135, %v99_v3   ;;  %108 = vperm.xlu0 %3134, %v97_v4   ;;  %v3171_v21 = vld [vmem:[#allocation2 + $0x34] ss:$12 sps:$4 sm:$0xff]   ;;  %v3151_v22 = vld [vmem:[#allocation4 + $0x7c] ss:$12 sps:$4 sm:$0xff]   ;;  %v3177_v24 = vld [vmem:[#allocation2 + $0x4c] ss:$12 sps:$4 sm:$0xff]  }
  0x51   :  { %299 = vmatprep.subr.bf16.mxu1 %v3165_v18  ;;  %v3174_v23 = vld [vmem:[#allocation2 + $0x30] ss:$12 sps:$4 sm:$0xff]   ;;  %v3153_v25 = vld [vmem:[#allocation4 + $0x78] ss:$12 sps:$4 sm:$0xff]   ;;  %v3154_v26 = vld [vmem:[#allocation4 + $0x94] ss:$12 sps:$4 sm:$0xff]  }
  0x52   :  { %600 = vmatpush1.bf16.msra.mxu0 %v3141_v10  ;;  %v3180_v27 = vld [vmem:[#allocation2 + $0x48] ss:$12 sps:$4 sm:$0xff]   ;;  %v3183_v28 = vld [vmem:[#allocation2 + $0x64] ss:$12 sps:$4 sm:$0xff]   ;;  %v3157_v30 = vld [vmem:[#allocation4 + $0xac] ss:$12 sps:$4 sm:$0xff]  }
  0x53   :  { %601 = vmatprep.subr.bf16.mxu0 %v3142_v11  ;;  %300 = vmatpush1.bf16.msra.mxu1 %v3168_v19  ;;  %v3156_v29 = vld [vmem:[#allocation4 + $0x90] ss:$12 sps:$4 sm:$0xff]   ;;  %v3186_v31 = vld [vmem:[#allocation2 + $0x60] ss:$12 sps:$4 sm:$0xff]   ;;  %v3161_v32 = vld [vmem:[#allocation4 + $0xa8] ss:$12 sps:$4 sm:$0xff]  }
  0x54   :  { %120 = vperm.xlu1 %3135, %v101_v8   ;;  %117 = vperm.xlu0 %3134, %v100_v9   ;;  %v3189_v33 = vld [vmem:[#allocation2 + $0x7c] ss:$12 sps:$4 sm:$0xff]   ;;  %v3163_v35 = vld [vmem:[#allocation6 + $0x4] ss:$12 sps:$4 sm:$0xff]   ;;  %v3195_v38 = vld [vmem:[#allocation2 + $0x94] ss:$12 sps:$4 sm:$0xff]  }
  0x55   :  { %301 = vmatprep.subr.bf16.mxu1 %v3171_v21  ;;  %v2693_v34 = vld [vmem:[%s5074_s1 + $0x8] sm:$0xff]  ;;  %v3192_v36 = vld [vmem:[#allocation2 + $0x78] ss:$12 sps:$4 sm:$0xff]   ;;  %v3198_v41 = vld [vmem:[#allocation2 + $0x90] ss:$12 sps:$4 sm:$0xff]  }
  0x56   :  { %602 = vmatpush1.bf16.msra.mxu0 %v3144_v12  ;;  %v3820_v37 = vpack.c.bf16 %v2693_v34, %v2693_v34  ;;  %v3167_v39 = vld [vmem:[#allocation6] ss:$12 sps:$4 sm:$0xff]   ;;  %v3169_v40 = vld [vmem:[#allocation6 + $0x1c] ss:$12 sps:$4 sm:$0xff]   ;;  %v3173_v43 = vld [vmem:[#allocation6 + $0x18] ss:$12 sps:$4 sm:$0xff]  }
  0x57   :  { %603 = vmatprep.subr.bf16.mxu0 %v3145_v13  ;;  %302 = vmatpush1.bf16.msra.mxu1 %v3174_v23  ;;  %v3201_v42 = vld [vmem:[#allocation2 + $0xac] ss:$12 sps:$4 sm:$0xff]   ;;  %v3175_v44 = vld [vmem:[#allocation6 + $0x34] ss:$12 sps:$4 sm:$0xff]   ;;  %v3179_v46 = vld [vmem:[#allocation6 + $0x30] ss:$12 sps:$4 sm:$0xff]  }
  0x58   :  { %303 = vmatprep.subr.bf16.mxu1 %v3177_v24  ;;  %v3204_v45 = vld [vmem:[#allocation2 + $0xa8] ss:$12 sps:$4 sm:$0xff]   ;;  %v3181_v47 = vld [vmem:[#allocation6 + $0x4c] ss:$12 sps:$4 sm:$0xff]   ;;  %v3825_v50 = vld [vmem:[#allocation6 + $0x64] ss:$12 sps:$4 sm:$0xff]  }
  0x59   :  { %v3185_v48 = vld [vmem:[#allocation6 + $0x48] ss:$12 sps:$4 sm:$0xff]   ;;  %v3827_v51 = vld [vmem:[#allocation6 + $0x60] ss:$12 sps:$4 sm:$0xff]   ;;  %v3832_v53 = vld [vmem:[#allocation6 + $0x78] ss:$12 sps:$4 sm:$0xff]  }
  0x5a   :  { %604 = vmatpush1.bf16.msra.mxu0 %v3147_v14  ;;  %v3829_v52 = vld [vmem:[#allocation6 + $0x7c] ss:$12 sps:$4 sm:$0xff]   ;;  %v3836_v54 = vld [vmem:[#allocation6 + $0x94] ss:$12 sps:$4 sm:$0xff]   ;;  %v3841_v56 = vld [vmem:[#allocation6 + $0xac] ss:$12 sps:$4 sm:$0xff]  }
  0x5b   :  { %605 = vmatprep.subr.bf16.mxu0 %v3148_v17  ;;  %304 = vmatpush1.bf16.msra.mxu1 %v3180_v27  ;;  %v3838_v55 = vld [vmem:[#allocation6 + $0x90] ss:$12 sps:$4 sm:$0xff]   ;;  %v3844_v57 = vld [vmem:[#allocation6 + $0xa8] ss:$12 sps:$4 sm:$0xff]   ;;  %v3850_v58 = vld [vmem:[%s5074_s1] sm:$0xff] }
  0x5c   :  { %305 = vmatprep.subr.bf16.mxu1 %v3183_v28  ;;  %v3855_v59 = vpack.c.bf16 %v3850_v58, %v3850_v58  ;;  %v3208_v2 = vld [vmem:[#allocation2 + $0x8] ss:$12 sps:$4 sm:$0xff]   ;;  %v3657_v4 = vmov 1.0|1.0   ;;  %v3209_v6 = vld [vmem:[#allocation2 + $0x20] ss:$12 sps:$4 sm:$0xff]  }
  0x5d   :  { %v3210_v8 = vld [vmem:[#allocation2 + $0x38] ss:$12 sps:$4 sm:$0xff]   ;;  %v3211_v11 = vld [vmem:[#allocation2 + $0x50] ss:$12 sps:$4 sm:$0xff]   ;;  %v3212_v12 = vld [vmem:[#allocation2 + $0x68] ss:$12 sps:$4 sm:$0xff]  }
  0x5e   :  { %606 = vmatpush1.bf16.msra.mxu0 %v3150_v20  ;;  %v3213_v14 = vld [vmem:[#allocation2 + $0x80] ss:$12 sps:$4 sm:$0xff]   ;;  %v3214_v15 = vld [vmem:[#allocation2 + $0x98] ss:$12 sps:$4 sm:$0xff]   ;;  %v3215_v16 = vld [vmem:[#allocation2 + $0xb0] ss:$12 sps:$4 sm:$0xff]  }
  0x5f   :  { %607 = vmatprep.subr.bf16.mxu0 %v3151_v22  ;;  %306 = vmatpush1.bf16.msra.mxu1 %v3186_v31  ;;  %v3216_v17 = vld [vmem:[#allocation4 + $0x8] ss:$12 sps:$4 sm:$0xff]   ;;  %v3217_v18 = vld [vmem:[#allocation4 + $0x20] ss:$12 sps:$4 sm:$0xff]   ;;  %v3218_v19 = vld [vmem:[#allocation4 + $0x38] ss:$12 sps:$4 sm:$0xff]  }
  0x60   :  { %307 = vmatprep.subr.bf16.mxu1 %v3189_v33  ;;  %v3219_v20 = vld [vmem:[#allocation4 + $0x50] ss:$12 sps:$4 sm:$0xff]   ;;  %v3220_v21 = vld [vmem:[#allocation4 + $0x68] ss:$12 sps:$4 sm:$0xff]   ;;  %v3221_v22 = vld [vmem:[#allocation4 + $0x80] ss:$12 sps:$4 sm:$0xff]  }
  0x61   :  { %v3222_v23 = vld [vmem:[#allocation4 + $0x98] ss:$12 sps:$4 sm:$0xff]   ;;  %v3223_v24 = vld [vmem:[#allocation4 + $0xb0] ss:$12 sps:$4 sm:$0xff]  }
  0x62   :  { %608 = vmatpush1.bf16.msra.mxu0 %v3153_v25  ;;  %v3918_v25 = vld [vmem:[#allocation6 + $0x8] ss:$12 sps:$4 sm:$0xff]   ;;  %v3929_v27 = vld [vmem:[#allocation6 + $0x38] ss:$12 sps:$4 sm:$0xff]   ;;  %v3933_v28 = vld [vmem:[#allocation6 + $0x50] ss:$12 sps:$4 sm:$0xff]  }
  0x63   :  { %609 = vmatprep.subr.bf16.mxu0 %v3154_v26  ;;  %308 = vmatpush1.bf16.msra.mxu1 %v3192_v36  ;;  %v3923_v26 = vld [vmem:[#allocation6 + $0x20] ss:$12 sps:$4 sm:$0xff]   ;;  %5280 = vst [vmem:[#allocation12_spill] sm:$0xff] %v3933_v28  ;;  %v3945_v31 = vld [vmem:[#allocation6 + $0x98] ss:$12 sps:$4 sm:$0xff]  }
  0x64   :  { %309 = vmatprep.subr.bf16.mxu1 %v3195_v38  ;;  %5283 = vst [vmem:[#allocation15_spill] sm:$0xff] %v3945_v31 }
  0x66   :  { %610 = vmatpush1.bf16.msra.mxu0 %v3156_v29  ;;  %v3937_v29 = vld [vmem:[#allocation6 + $0x68] ss:$12 sps:$4 sm:$0xff]  }
  0x67   :  { %611 = vmatprep.subr.bf16.mxu0 %v3157_v30  ;;  %310 = vmatpush1.bf16.msra.mxu1 %v3198_v41  ;;  %5281 = vst [vmem:[#allocation13_spill] sm:$0xff] %v3937_v29  ;;  %v3941_v30 = vld [vmem:[#allocation6 + $0x80] ss:$12 sps:$4 sm:$0xff]  }
  0x68   :  { %311 = vmatprep.subr.bf16.mxu1 %v3201_v42  ;;  %5282 = vst [vmem:[#allocation14_spill] sm:$0xff] %v3941_v30  ;;  %v3972_v42 = vld [vmem:[#allocation7 + $0x4] ss:$16 sps:$4 sm:$0xff]  }
  0x69   :  { %5285 = vst [vmem:[#allocation17_spill] sm:$0xff] %v3972_v42 }
  0x6a   :  { %612 = vmatpush1.bf16.msra.mxu0 %v3161_v32  ;;  %v3949_v32 = vld [vmem:[#allocation6 + $0xb0] ss:$12 sps:$4 sm:$0xff]  }
  0x6b   :  { %936 = vmatprep.subr.bf16.mxu0 %v3163_v35  ;;  %312 = vmatpush1.bf16.msra.mxu1 %v3204_v45  ;;  %5284 = vst [vmem:[#allocation16_spill] sm:$0xff] %v3949_v32 }
  0x6c   :  { %2926 = vmatprep.subr.bf16.mxu1 %v5091_v49 }
  0x6d   :  { %630 = vmatmul.mubr.bf16.vlgmr.msra.gmra.mrb[0].mxu0 %v3820_v37 }
  0x6e   :  { %937 = vmatpush1.bf16.msra.mxu0 %v3167_v39  ;;  %968 = vmatprep.mubr.bf16.mxu0 %v5089_v0 }
  0x6f   :  { %938 = vmatprep.subr.bf16.mxu0 %v3169_v40 }
  0x72   :  { %939 = vmatpush1.bf16.msra.mxu0 %v3173_v43 }
  0x73   :  { %940 = vmatprep.subr.bf16.mxu0 %v3175_v44 }
  0x76   :  { %941 = vmatpush1.bf16.msra.mxu0 %v3179_v46 }
  0x77   :  { %942 = vmatprep.subr.bf16.mxu0 %v3181_v47 }
  0x7a   :  { %943 = vmatpush1.bf16.msra.mxu0 %v3185_v48 }
  0x7b   :  { %944 = vmatprep.subr.bf16.mxu0 %v3825_v50 }
  0x7e   :  { %945 = vmatpush1.bf16.msra.mxu0 %v3827_v51 }
  0x7f   :  { %946 = vmatprep.subr.bf16.mxu0 %v3829_v52 }
  0x82   :  { %947 = vmatpush1.bf16.msra.mxu0 %v3832_v53 }
  0x83   :  { %948 = vmatprep.subr.bf16.mxu0 %v3836_v54 }
  0x86   :  { %949 = vmatpush1.bf16.msra.mxu0 %v3838_v55 }
  0x87   :  { %950 = vmatprep.subr.bf16.mxu0 %v3841_v56 }
  0x8a   :  { %951 = vmatpush1.bf16.msra.mxu0 %v3844_v57 }
  0x8b   :  { %1043 = vmatprep.subr.bf16.mxu0 %v3163_v35 }
  0x8d   :  { %969 = vmatmul.mubr.bf16.vlgmr.msra.gmra.mrb[4].mxu0 %v3855_v59 }
  0x8e   :  { %1044 = vmatpush1.bf16.msra.mxu0 %v3167_v39  ;;  %1075 = vmatprep.mubr.bf16.mxu0 %v5089_v0 }
  0x8f   :  { %1045 = vmatprep.subr.bf16.mxu0 %v3169_v40 }
  0x92   :  { %1046 = vmatpush1.bf16.msra.mxu0 %v3173_v43  ;;  %v3974_v43 = vld [vmem:[#allocation7 + $0xc] ss:$16 sps:$4 sm:$0xff]  }
  0x93   :  { %1047 = vmatprep.subr.bf16.mxu0 %v3175_v44  ;;  %5286 = vst [vmem:[#allocation18_spill] sm:$0xff] %v3974_v43  ;;  %v3979_v44 = vshrl.u32 %v102_v60, 7 }
  0x95   :  { %v5088_v45 = vsub.s32 0, %v3979_v44 }
  0x96   :  { %1048 = vmatpush1.bf16.msra.mxu0 %v3179_v46  ;;  %v452_v46 = vld [vmem:[%s5078_s5] sm:$0x7] }
  0x97   :  { %1049 = vmatprep.subr.bf16.mxu0 %v3181_v47  ;;  %v5087_v47 = vsub.s32 1, %v3979_v44 }
  0x9a   :  { %1050 = vmatpush1.bf16.msra.mxu0 %v3185_v48  ;;  %v457_v48 = vrot.slane %v452_v46, %v5088_v45  ;;  %v4110_v45 = vld [vmem:[#allocation7 + $0xc0] ss:$16 sps:$4 sm:$0xff]  }
  0x9b   :  { %1051 = vmatprep.subr.bf16.mxu0 %v3825_v50 }
  0x9e   :  { %1052 = vmatpush1.bf16.msra.mxu0 %v3827_v51 }
  0x9f   :  { %1053 = vmatprep.subr.bf16.mxu0 %v3829_v52 }
  0xa2   :  { %1054 = vmatpush1.bf16.msra.mxu0 %v3832_v53 }
  0xa3   :  { %1055 = vmatprep.subr.bf16.mxu0 %v3836_v54 }
  0xa6   :  { %1056 = vmatpush1.bf16.msra.mxu0 %v3838_v55 }
  0xa7   :  { %1057 = vmatprep.subr.bf16.mxu0 %v3841_v56 }
  0xaa   :  { %1058 = vmatpush1.bf16.msra.mxu0 %v3844_v57 }
  0xab   :  { %1466 = vmatprep.subr.bf16.mxu0 %v3972_v42 }
  0xcb   :  { %v106_v61 = vpop.permute.xlu0 %105  ;;  %v112_v63 = vpop.permute.xlu1 %111 }
  0xcc   :  { %vm122_vm1 = vcmp.eq.s32.totalorder %v106_v61, %v103_v62  ;;  %vm124_vm3 = vcmp.eq.s32.totalorder %v112_v63, %v103_v62 }
  0xcf   :  { %v109_v1 = vpop.permute.xlu0 %108  ;;  %v115_v5 = vpop.permute.xlu1 %114 }
  0xd0   :  { %vm123_vm0 = vcmp.eq.s32.totalorder %v109_v1, %v103_v62  ;;  %vm125_vm4 = vcmp.eq.s32.totalorder %v115_v5, %v103_v62 }
  0xd1   :  { %vm3869_vm2 = vmpackc.low %vm123_vm0, %vm122_vm1 }
  0xd2   :  { %2682 = vmatmul.mubr.msk.bf16.vlgmr.msra.gmra.mrb[0].mxu1 %vm3869_vm2, %v3657_v4  ;;  %vm3877_vm5 = vmpackc.low %vm125_vm4, %vm124_vm3 }
  0xd3   :  { %2927 = vmatpush3.bf16.msra.mxu1 %v3208_v2  ;;  %339 = vmatprep.mubr.bf16.mxu1 %v5089_v0  ;;  %v121_v9 = vpop.permute.xlu1 %120  ;;  %v118_v10 = vpop.permute.xlu0 %117 }
  0xd4   :  { %2928 = vmatprep.subr.bf16.mxu1 %v5091_v49  ;;  %vm127_vm6 = vcmp.eq.s32.totalorder %v121_v9, %v103_v62  ;;  %vm126_vm7 = vcmp.eq.s32.totalorder %v118_v10, %v103_v62 }
  0xd5   :  { %vm3887_vm8 = vmpackc.low %vm127_vm6, %vm126_vm7 }
  0xd7   :  { %2929 = vmatpush3.bf16.msra.mxu1 %v3209_v6 }
  0xd8   :  { %2930 = vmatprep.subr.bf16.mxu1 %v5091_v49 }
  0xda   :  { %2684 = vmatmul.mubr.msk.bf16.gmra.mrb[4].mxu1 %vm3877_vm5, %v3657_v4 }
  0xdb   :  { %2931 = vmatpush3.bf16.msra.mxu1 %v3210_v8  ;;  %349 = vmatprep.mubr.bf16.mxu1 %v5089_v0  ;;  %v4112_v0 = vld [vmem:[#allocation7 + $0xc8] ss:$16 sps:$4 sm:$0xff]  }
  0xdc   :  { %2932 = vmatprep.subr.bf16.mxu1 %v5091_v49 }
  0xdf   :  { %2933 = vmatpush3.bf16.msra.mxu1 %v3211_v11 }
  0xe0   :  { %2934 = vmatprep.subr.bf16.mxu1 %v5091_v49 }
  0xe2   :  { %2686 = vmatmul.mubr.msk.bf16.gmra.mrb[8].mxu1 %vm3887_vm8, %v3657_v4 }
  0xe3   :  { %2935 = vmatpush3.bf16.msra.mxu1 %v3212_v12  ;;  %2942 = vmatprep.mubr.msk.bf16.mxu1 %vm3658_vm9, %v5091_v49 }
  0xe4   :  { %2936 = vmatprep.subr.bf16.mxu1 %v5091_v49 }
  0xe7   :  { %2937 = vmatpush3.bf16.msra.mxu1 %v3213_v14 }
  0xe8   :  { %2938 = vmatprep.subr.bf16.mxu1 %v5091_v49 }
  0xeb   :  { %2939 = vmatpush3.bf16.msra.mxu1 %v3214_v15 }
  0xec   :  { %2940 = vmatprep.subr.bf16.mxu1 %v5091_v49 }
  0xef   :  { %2941 = vmatpush3.bf16.msra.mxu1 %v3215_v16 }
  0xf0   :  { %2954 = vmatprep.subr.bf16.mxu1 %v5091_v49 }
  0xf2   :  { %2943 = vmatmul.mubr.msk.bf16.vlgmr.msra.gmra.mrb[12].mxu1 %vm3869_vm2, %v3657_v4 }
  0xf3   :  { %2955 = vmatpush3.bf16.msra.mxu1 %v3216_v17  ;;  %2946 = vmatprep.mubr.msk.bf16.mxu1 %vm3658_vm9, %v5091_v49 }
  0xf4   :  { %2956 = vmatprep.subr.bf16.mxu1 %v5091_v49 }
  0xf7   :  { %2957 = vmatpush3.bf16.msra.mxu1 %v3217_v18 }
  0xf8   :  { %2958 = vmatprep.subr.bf16.mxu1 %v5091_v49 }
  0xfa   :  { %2947 = vmatmul.mubr.msk.bf16.gmra.mrb[16].mxu1 %vm3877_vm5, %v3657_v4 }
  0xfb   :  { %2959 = vmatpush3.bf16.msra.mxu1 %v3218_v19  ;;  %2950 = vmatprep.mubr.msk.bf16.mxu1 %vm3658_vm9, %v5091_v49 }
  0xfc   :  { %2960 = vmatprep.subr.bf16.mxu1 %v5091_v49 }
  0xff   :  { %2961 = vmatpush3.bf16.msra.mxu1 %v3219_v20 }
 0x100   :  { %2962 = vmatprep.subr.bf16.mxu1 %v5091_v49 }
 0x102   :  { %2951 = vmatmul.mubr.msk.bf16.gmra.mrb[20].mxu1 %vm3887_vm8, %v3657_v4 }
 0x103   :  { %2963 = vmatpush3.bf16.msra.mxu1 %v3220_v21  ;;  %2970 = vmatprep.mubr.msk.bf16.mxu1 %vm3658_vm9, %v5091_v49 }
 0x104   :  { %2964 = vmatprep.subr.bf16.mxu1 %v5091_v49 }
 0x107   :  { %2965 = vmatpush3.bf16.msra.mxu1 %v3221_v22 }
 0x108   :  { %2966 = vmatprep.subr.bf16.mxu1 %v5091_v49 }
 0x10b   :  { %2967 = vmatpush3.bf16.msra.mxu1 %v3222_v23 }
 0x10c   :  { %2968 = vmatprep.subr.bf16.mxu1 %v5091_v49 }
 0x10f   :  { %2969 = vmatpush3.bf16.msra.mxu1 %v3223_v24 }
 0x110   :  { %2974 = vmatprep.subr.bf16.mxu1 %v5091_v49 }
 0x112   :  { %2971 = vmatmul.mubr.bf16.vlgmr.msra.gmra.mrb[24].mxu1 %v3820_v37 }
 0x113   :  { %2975 = vmatpush3.bf16.msra.mxu1 %v3918_v25  ;;  %2990 = vmatprep.mubr.msk.bf16.mxu1 %vm3658_vm9, %v5091_v49 }
 0x114   :  { %2976 = vmatprep.subr.bf16.mxu1 %v5091_v49 }
 0x117   :  { %2977 = vmatpush3.bf16.msra.mxu1 %v3923_v26 }
 0x118   :  { %2978 = vmatprep.subr.bf16.mxu1 %v5091_v49 }
 0x11b   :  { %2979 = vmatpush3.bf16.msra.mxu1 %v3929_v27 }
 0x11c   :  { %2980 = vmatprep.subr.bf16.mxu1 %v5091_v49 }
 0x11f   :  { %2981 = vmatpush3.bf16.msra.mxu1 %v3933_v28 }
 0x120   :  { %2982 = vmatprep.subr.bf16.mxu1 %v5091_v49 }
 0x123   :  { %2983 = vmatpush3.bf16.msra.mxu1 %v3937_v29 }
 0x124   :  { %2984 = vmatprep.subr.bf16.mxu1 %v5091_v49 }
 0x127   :  { %2985 = vmatpush3.bf16.msra.mxu1 %v3941_v30 }
 0x128   :  { %2986 = vmatprep.subr.bf16.mxu1 %v5091_v49 }
 0x12b   :  { %2987 = vmatpush3.bf16.msra.mxu1 %v3945_v31 }
 0x12c   :  { %2988 = vmatprep.subr.bf16.mxu1 %v5091_v49 }
 0x12f   :  { %2989 = vmatpush3.bf16.msra.mxu1 %v3949_v32 }
 0x130   :  { %2994 = vmatprep.subr.bf16.mxu1 %v5091_v49 }
 0x132   :  { %2991 = vmatmul.mubr.bf16.vlgmr.msra.gmra.mrb[28].mxu1 %v3855_v59  ;;  %v461_v59 = vrot.slane %v452_v46, %v5087_v47  ;;  %v4106_v47 = vld [vmem:[#allocation7 + $0xcc] ss:$16 sps:$4 sm:$0xff]  }
 0x133   :  { %2995 = vmatpush3.bf16.msra.mxu1 %v3918_v25  ;;  %3010 = vmatprep.mubr.msk.bf16.mxu1 %vm3658_vm9, %v5091_v49 }
 0x134   :  { %2996 = vmatprep.subr.bf16.mxu1 %v5091_v49 }
 0x137   :  { %2997 = vmatpush3.bf16.msra.mxu1 %v3923_v26 }
 0x138   :  { %2998 = vmatprep.subr.bf16.mxu1 %v5091_v49 }
 0x13b   :  { %2999 = vmatpush3.bf16.msra.mxu1 %v3929_v27 }
 0x13c   :  { %3000 = vmatprep.subr.bf16.mxu1 %v5091_v49 }
 0x13f   :  { %3001 = vmatpush3.bf16.msra.mxu1 %v3933_v28 }
 0x140   :  { %3002 = vmatprep.subr.bf16.mxu1 %v5091_v49  ;;  %v631_v33 = vpop.f32.mrb[0].mxu0 }
 0x141   :  { %v633_v34 = vpop.f32.mrb[1].mxu0  ;;  %v632_v61 = vadd.f32 %v631_v33, %v457_v48 }
 0x142   :  { %v635_v35 = vpop.f32.mrb[2].mxu0  ;;  %v634_v62 = vadd.f32 %v633_v34, %v461_v59 }
 0x143   :  { %3003 = vmatpush3.bf16.msra.mxu1 %v3937_v29  ;;  %v636_v36 = vpop.f32.mrb[3].mxu0 }
 0x144   :  { %3004 = vmatprep.subr.bf16.mxu1 %v5091_v49 }
 0x147   :  { %3005 = vmatpush3.bf16.msra.mxu1 %v3941_v30 }
 0x148   :  { %3006 = vmatprep.subr.bf16.mxu1 %v5091_v49 }
 0x14b   :  { %3007 = vmatpush3.bf16.msra.mxu1 %v3945_v31 }
 0x14c   :  { %3008 = vmatprep.subr.bf16.mxu1 %v5091_v49  ;;  %v4116_v49 = vld [vmem:[#allocation7 + $0xe4] ss:$16 sps:$4 sm:$0xff]  }
 0x14f   :  { %3009 = vmatpush3.bf16.msra.mxu1 %v3949_v32 }
 0x150   :  { %1507 = vmatprep.subr.bf16.mxu1 %v3974_v43 }
 0x160   :  { %v970_v38 = vpop.f32.mrb[4].mxu0 }
 0x161   :  { %v972_v39 = vpop.f32.mrb[5].mxu0 }
 0x162   :  { %v974_v40 = vpop.f32.mrb[6].mxu0 }
 0x163   :  { %v975_v41 = vpop.f32.mrb[7].mxu0 }
 0x1a5   :  { %v331_v63 = vpop.f32.mrb[0].mxu1 }
 0x1a6   :  { %v804_v1 = vadd.f32 %v632_v61, %v331_v63  ;;  %v333_v60 = vpop.f32.mrb[1].mxu1 }
 0x1a7   :  { %v805_v2 = vadd.f32 %v634_v62, %v333_v60  ;;  %v335_v3 = vpop.f32.mrb[2].mxu1  ;;  %v5086_v60 = vsub.s32 2, %v3979_v44 }
 0x1a8   :  { %v3990_v4 = vadd.f32 %v632_v61, %v335_v3  ;;  %v1017_v5 = vadd.f32 %v970_v38, %v804_v1  ;;  %v337_v6 = vpop.f32.mrb[3].mxu1 }
 0x1a9   :  { %v3992_v7 = vadd.f32 %v634_v62, %v337_v6  ;;  %v1024_v8 = vadd.f32 %v972_v39, %v805_v2 }
 0x1aa   :  { %v2743_v6 = vmul.f32 -1.442695, %v1017_v5 }
 0x1ac   :  { %3336 = vpow2.f32 %v2743_v6 }
 0x1ad   :  { %v341_v9 = vpop.f32.mrb[4].mxu1 }
 0x1ae   :  { %v3994_v10 = vadd.f32 %v632_v61, %v341_v9  ;;  %v343_v11 = vpop.f32.mrb[5].mxu1 }
 0x1af   :  { %v3996_v12 = vadd.f32 %v634_v62, %v343_v11  ;;  %v345_v13 = vpop.f32.mrb[6].mxu1 }
 0x1b0   :  { %5287 = vst [vmem:[#allocation19_spill] sm:$0xff] %v3994_v10  ;;  %v3998_v14 = vadd.f32 %v632_v61, %v345_v13  ;;  %v347_v15 = vpop.f32.mrb[7].mxu1  ;;  %v4152_v10 = vld [vmem:[#allocation7 + $0x144] ss:$16 sps:$4 sm:$0xff]  }
 0x1b1   :  { %5288 = vst [vmem:[#allocation20_spill] sm:$0xff] %v3996_v12  ;;  %v4000_v16 = vadd.f32 %v634_v62, %v347_v15  ;;  %v4148_v12 = vld [vmem:[#allocation7 + $0x128] ss:$16 sps:$4 sm:$0xff]   ;;  %5307 = vst [vmem:[#allocation39_spill] sm:$0xff] %v4152_v10 }
 0x1b2   :  { %5289 = vst [vmem:[#allocation21_spill] sm:$0xff] %v3998_v14  ;;  %v4142_v14 = vld [vmem:[#allocation7 + $0x12c] ss:$16 sps:$4 sm:$0xff]   ;;  %5306 = vst [vmem:[#allocation38_spill] sm:$0xff] %v4148_v12 }
 0x1b3   :  { %5290 = vst [vmem:[#allocation22_spill] sm:$0xff] %v4000_v16  ;;  %v4140_v16 = vld [vmem:[#allocation7 + $0x124] ss:$16 sps:$4 sm:$0xff]   ;;  %5304 = vst [vmem:[#allocation36_spill] sm:$0xff] %v4142_v14 }
 0x1b4   :  { %5303 = vst [vmem:[#allocation35_spill] sm:$0xff] %v4140_v16 }
 0x1b5   :  { %v351_v17 = vpop.f32.mrb[8].mxu1 }
 0x1b6   :  { %v4002_v18 = vadd.f32 %v632_v61, %v351_v17  ;;  %v353_v19 = vpop.f32.mrb[9].mxu1 }
 0x1b7   :  { %v4004_v20 = vadd.f32 %v634_v62, %v353_v19  ;;  %v355_v21 = vpop.f32.mrb[10].mxu1 }
 0x1b8   :  { %5291 = vst [vmem:[#allocation23_spill] sm:$0xff] %v4002_v18  ;;  %v4006_v22 = vadd.f32 %v632_v61, %v355_v21  ;;  %v357_v23 = vpop.f32.mrb[11].mxu1  ;;  %v465_v61 = vrot.slane %v452_v46, %v5086_v60  ;;  %v3337_v46 = vpop.eup %3336  ;;  %v4104_v60 = vld [vmem:[#allocation7 + $0xc4] ss:$16 sps:$4 sm:$0xff]   ;;  %v4134_v18 = vld [vmem:[#allocation7 + $0x100] ss:$16 sps:$4 sm:$0xff]  }
 0x1b9   :  { %5292 = vst [vmem:[#allocation24_spill] sm:$0xff] %v4004_v20  ;;  %v4008_v24 = vadd.f32 %v634_v62, %v357_v23  ;;  %v4130_v20 = vld [vmem:[#allocation7 + $0x10c] ss:$16 sps:$4 sm:$0xff]   ;;  %5301 = vst [vmem:[#allocation33_spill] sm:$0xff] %v4134_v18 }
 0x1ba   :  { %5293 = vst [vmem:[#allocation25_spill] sm:$0xff] %v4006_v22  ;;  %v4124_v22 = vld [vmem:[#allocation7 + $0xe8] ss:$16 sps:$4 sm:$0xff]   ;;  %5300 = vst [vmem:[#allocation32_spill] sm:$0xff] %v4130_v20 }
 0x1bb   :  { %5294 = vst [vmem:[#allocation26_spill] sm:$0xff] %v4008_v24  ;;  %v4122_v24 = vld [vmem:[#allocation7 + $0xe0] ss:$16 sps:$4 sm:$0xff]  }
 0x1c5   :  { %v394_v33 = vpop.f32.mrb[12].mxu1 }
 0x1c6   :  { %v2944_v34 = vpop.f32.mrb[13].mxu1 }
 0x1c7   :  { %v397_v35 = vpop.f32.mrb[14].mxu1  ;;  %v2744_v34 = vmul.f32 -1.442695, %v1024_v8 }
 0x1c8   :  { %v2945_v36 = vpop.f32.mrb[15].mxu1 }
 0x1c9   :  { %3338 = vpow2.f32 %v2744_v34  ;;  %v1021_v36 = vadd.f32 1.0, %v3337_v46  ;;  %v4040_v46 = vld [vmem:[#allocation7 + $0x24] ss:$16 sps:$4 sm:$0xff]  }
 0x1cb   :  { %3340 = vrcp.f32 %v1021_v36  ;;  %v4050_v36 = vld [vmem:[#allocation7 + $0x28] ss:$16 sps:$4 sm:$0xff]  }
 0x1cd   :  { %v402_v38 = vpop.f32.mrb[16].mxu1 }
 0x1ce   :  { %v2948_v39 = vpop.f32.mrb[17].mxu1 }
 0x1cf   :  { %v405_v40 = vpop.f32.mrb[18].mxu1 }
 0x1d0   :  { %v2949_v41 = vpop.f32.mrb[19].mxu1 }
 0x1d3   :  { %v3339_v5 = vpop.eup %3338 }
 0x1d5   :  { %v410_v48 = vpop.f32.mrb[20].mxu1  ;;  %v3341_v41 = vpop.eup %3340 }
 0x1d6   :  { %v2952_v59 = vpop.f32.mrb[21].mxu1 }
 0x1d7   :  { %v413_v63 = vpop.f32.mrb[22].mxu1 }
 0x1d8   :  { %v2953_v1 = vpop.f32.mrb[23].mxu1 }
 0x1e5   :  { %v672_v2 = vpop.f32.mrb[24].mxu1 }
 0x1e6   :  { %v673_v62 = vadd.f32 %v672_v2, %v465_v61  ;;  %v2972_v3 = vpop.f32.mrb[25].mxu1 }
 0x1e7   :  { %v675_v9 = vpop.f32.mrb[26].mxu1 }
 0x1e8   :  { %v2973_v11 = vpop.f32.mrb[27].mxu1  ;;  %v806_v13 = vadd.f32 %v673_v62, %v394_v33  ;;  %v4013_v15 = vadd.f32 %v673_v62, %v397_v35  ;;  %v4015_v17 = vadd.f32 %v673_v62, %v402_v38  ;;  %v4017_v19 = vadd.f32 %v673_v62, %v405_v40  ;;  %v4026_v33 = vld [vmem:[%s5079_s6] ss:$0 sm:$0xff] }
 0x1e9   :  { %v4019_v21 = vadd.f32 %v673_v62, %v410_v48  ;;  %v4021_v23 = vadd.f32 %v673_v62, %v413_v63  ;;  %v1028_v35 = vadd.f32 1.0, %v3339_v5  ;;  %v4032_v9 = vld [vmem:[#allocation7] ss:$16 sps:$4 sm:$0xff]   ;;  %v4034_v11 = vld [vmem:[#allocation7 + $0x8] ss:$16 sps:$4 sm:$0xff]  }
 0x1ea   :  { %5295 = vst [vmem:[#allocation27_spill] sm:$0xff] %v4015_v17  ;;  %5296 = vst [vmem:[#allocation28_spill] sm:$0xff] %v4017_v19  ;;  %v4054_v5 = vld [vmem:[#allocation7 + $0x44] ss:$16 sps:$4 sm:$0xff]   ;;  %v4136_v19 = vld [vmem:[#allocation7 + $0x108] ss:$16 sps:$4 sm:$0xff]  }
 0x1eb   :  { %5297 = vst [vmem:[#allocation29_spill] sm:$0xff] %v4019_v21  ;;  %5298 = vst [vmem:[#allocation30_spill] sm:$0xff] %v4021_v23  ;;  %3342 = vrcp.f32 %v1028_v35  ;;  %v4056_v35 = vld [vmem:[#allocation7 + $0x4c] ss:$16 sps:$4 sm:$0xff]   ;;  %v4128_v21 = vld [vmem:[#allocation7 + $0x104] ss:$16 sps:$4 sm:$0xff]  }
 0x1ec   :  { %v4118_v23 = vld [vmem:[#allocation7 + $0xec] ss:$16 sps:$4 sm:$0xff]   ;;  %5299 = vst [vmem:[#allocation31_spill] sm:$0xff] %v4128_v21  ;;  %5302 = vst [vmem:[#allocation34_spill] sm:$0xff] %v4136_v19  ;;  %v4146_v17 = vld [vmem:[#allocation7 + $0x120] ss:$16 sps:$4 sm:$0xff]  }
 0x1ed   :  { %5305 = vst [vmem:[#allocation37_spill] sm:$0xff] %v4146_v17 }
 0x1f5   :  { %v3343_v1 = vpop.eup %3342 }
 0x1f6   :  { %v1035_v61 = vsub.f32 1.0, %v3343_v1  ;;  %v1037_v3 = vmul.f32 %v3343_v1, %v3850_v58  ;;  %v4048_v58 = vld [vmem:[#allocation7 + $0x20] ss:$16 sps:$4 sm:$0xff]   ;;  %v4088_v1 = vld [vmem:[#allocation7 + $0x88] ss:$16 sps:$4 sm:$0xff]  }
 0x205   :  { %v1011_v38 = vpop.f32.mrb[28].mxu1 }
 0x206   :  { %v1031_v39 = vadd.f32 %v4026_v33, %v1011_v38  ;;  %v2992_v40 = vpop.f32.mrb[29].mxu1  ;;  %v4062_v38 = vld [vmem:[#allocation7 + $0x40] ss:$16 sps:$4 sm:$0xff]  }
 0x207   :  { %v1014_v48 = vpop.f32.mrb[30].mxu1  ;;  %v4068_v40 = vld [vmem:[#allocation7 + $0x64] ss:$16 sps:$4 sm:$0xff]  }
 0x208   :  { %v1032_v59 = vmul.f32 %v3341_v41, %v1031_v39  ;;  %v2993_v8 = vpop.f32.mrb[31].mxu1  ;;  %v4064_v39 = vld [vmem:[#allocation7 + $0x48] ss:$16 sps:$4 sm:$0xff]   ;;  %v4070_v41 = vld [vmem:[#allocation7 + $0x6c] ss:$16 sps:$4 sm:$0xff]  }
 0x209   :  { %v4076_v48 = vld [vmem:[#allocation7 + $0x68] ss:$16 sps:$4 sm:$0xff]   ;;  %v4082_v8 = vld [vmem:[#allocation7 + $0x8c] ss:$16 sps:$4 sm:$0xff]  }
 0x20a   :  { %v1033_v63 = vadd.f32 %v1032_v59, %v806_v13  ;;  %v4042_v13 = vld [vmem:[#allocation7 + $0x2c] ss:$16 sps:$4 sm:$0xff]   ;;  %v4080_v59 = vld [vmem:[#allocation7 + $0x84] ss:$16 sps:$4 sm:$0xff]  }
 0x20c   :  { %3344 = vtanh.f32 %v1033_v63  ;;  %v4086_v63 = vld [vmem:[#allocation7 + $0x80] ss:$16 sps:$4 sm:$0xff]  }
 0x216   :  { %v3345_v2 = vpop.eup %3344 }
 0x217   :  { %v1036_v62 = vmul.f32 %v3345_v2, %v1035_v61  ;;  %v4092_v61 = vld [vmem:[#allocation7 + $0xa4] ss:$16 sps:$4 sm:$0xff]   ;;  %v4094_v2 = vld [vmem:[#allocation7 + $0xac] ss:$16 sps:$4 sm:$0xff]  }
 0x219   :  { %v4030_v6 = vadd.f32 %v1037_v3, %v1036_v62  ;;  %v4098_v62 = vld [vmem:[#allocation7 + $0xa0] ss:$16 sps:$4 sm:$0xff]   ;;  %v4100_v3 = vld [vmem:[#allocation7 + $0xa8] ss:$16 sps:$4 sm:$0xff]  }
 0x21b   :  { %v4038_v34 = vpack.c.bf16 %v4030_v6, %v4030_v6 }
 0x21d   :  { %1076 = vmatmul.mubr.bf16.vlgmr.msra.gmra.mrb[8].mxu0 %v4038_v34  ;;  %3011 = vmatmul.mubr.bf16.vlgmr.msra.gmra.mrb[32].mxu1 %v4038_v34 }
 0x21e   :  { %1467 = vmatpush1.bf16.msra.mxu0 %v4032_v9  ;;  %1508 = vmatpush1.bf16.msra.mxu1 %v4034_v11 }
 0x21f   :  { %1468 = vmatprep.subr.bf16.mxu0 %v4040_v46  ;;  %1509 = vmatprep.subr.bf16.mxu1 %v4042_v13 }
 0x220   :  { %1498 = vmatprep.mubr.bf16.mxu0 %v3820_v37  ;;  %1539 = vmatprep.mubr.bf16.mxu1 %v3820_v37  ;;  %v4074_v37 = vld [vmem:[#allocation7 + $0x60] ss:$16 sps:$4 sm:$0xff]  }
 0x222   :  { %1469 = vmatpush1.bf16.msra.mxu0 %v4048_v58  ;;  %1510 = vmatpush1.bf16.msra.mxu1 %v4050_v36 }
 0x223   :  { %1470 = vmatprep.subr.bf16.mxu0 %v4054_v5  ;;  %1511 = vmatprep.subr.bf16.mxu1 %v4056_v35 }
 0x226   :  { %1471 = vmatpush1.bf16.msra.mxu0 %v4062_v38  ;;  %1512 = vmatpush1.bf16.msra.mxu1 %v4064_v39 }
 0x227   :  { %1472 = vmatprep.subr.bf16.mxu0 %v4068_v40  ;;  %1513 = vmatprep.subr.bf16.mxu1 %v4070_v41 }
 0x22a   :  { %1473 = vmatpush1.bf16.msra.mxu0 %v4074_v37  ;;  %1514 = vmatpush1.bf16.msra.mxu1 %v4076_v48 }
 0x22b   :  { %1474 = vmatprep.subr.bf16.mxu0 %v4080_v59  ;;  %1515 = vmatprep.subr.bf16.mxu1 %v4082_v8 }
 0x22e   :  { %1475 = vmatpush1.bf16.msra.mxu0 %v4086_v63  ;;  %1516 = vmatpush1.bf16.msra.mxu1 %v4088_v1 }
 0x22f   :  { %1476 = vmatprep.subr.bf16.mxu0 %v4092_v61  ;;  %1517 = vmatprep.subr.bf16.mxu1 %v4094_v2 }
 0x232   :  { %1477 = vmatpush1.bf16.msra.mxu0 %v4098_v62  ;;  %1518 = vmatpush1.bf16.msra.mxu1 %v4100_v3 }
 0x233   :  { %1478 = vmatprep.subr.bf16.mxu0 %v4104_v60  ;;  %1519 = vmatprep.subr.bf16.mxu1 %v4106_v47 }
 0x236   :  { %1479 = vmatpush1.bf16.msra.mxu0 %v4110_v45  ;;  %1520 = vmatpush1.bf16.msra.mxu1 %v4112_v0 }
 0x237   :  { %1480 = vmatprep.subr.bf16.mxu0 %v4116_v49  ;;  %1521 = vmatprep.subr.bf16.mxu1 %v4118_v23 }
 0x23a   :  { %1481 = vmatpush1.bf16.msra.mxu0 %v4122_v24  ;;  %1522 = vmatpush1.bf16.msra.mxu1 %v4124_v22 }
 0x23b   :  { %1482 = vmatprep.subr.bf16.mxu0 %v4128_v21  ;;  %1523 = vmatprep.subr.bf16.mxu1 %v4130_v20  ;;  %v4154_v21 = vld [vmem:[#allocation7 + $0x14c] ss:$16 sps:$4 sm:$0xff]   ;;  %v4158_v20 = vld [vmem:[#allocation7 + $0x140] ss:$16 sps:$4 sm:$0xff]  }
 0x23c   :  { %5308 = vst [vmem:[#allocation40_spill] sm:$0xff] %v4154_v21  ;;  %5309 = vst [vmem:[#allocation41_spill] sm:$0xff] %v4158_v20 }
 0x23e   :  { %1483 = vmatpush1.bf16.msra.mxu0 %v4134_v18  ;;  %1524 = vmatpush1.bf16.msra.mxu1 %v4136_v19  ;;  %v4160_v18 = vld [vmem:[#allocation7 + $0x148] ss:$16 sps:$4 sm:$0xff]   ;;  %v4164_v19 = vld [vmem:[#allocation7 + $0x164] ss:$16 sps:$4 sm:$0xff]  }
 0x23f   :  { %1484 = vmatprep.subr.bf16.mxu0 %v4140_v16  ;;  %1525 = vmatprep.subr.bf16.mxu1 %v4142_v14  ;;  %5310 = vst [vmem:[#allocation42_spill] sm:$0xff] %v4160_v18  ;;  %5311 = vst [vmem:[#allocation43_spill] sm:$0xff] %v4164_v19  ;;  %v4166_v16 = vld [vmem:[#allocation7 + $0x16c] ss:$16 sps:$4 sm:$0xff]   ;;  %v4170_v14 = vld [vmem:[#allocation7 + $0x160] ss:$16 sps:$4 sm:$0xff]  }
 0x240   :  { %5312 = vst [vmem:[#allocation44_spill] sm:$0xff] %v4166_v16  ;;  %5313 = vst [vmem:[#allocation45_spill] sm:$0xff] %v4170_v14 }
 0x242   :  { %1485 = vmatpush1.bf16.msra.mxu0 %v4146_v17  ;;  %1526 = vmatpush1.bf16.msra.mxu1 %v4148_v12  ;;  %v4172_v17 = vld [vmem:[#allocation7 + $0x168] ss:$16 sps:$4 sm:$0xff]   ;;  %v4176_v12 = vld [vmem:[#allocation7 + $0x184] ss:$16 sps:$4 sm:$0xff]  }
 0x243   :  { %1486 = vmatprep.subr.bf16.mxu0 %v4152_v10  ;;  %1527 = vmatprep.subr.bf16.mxu1 %v4154_v21  ;;  %5314 = vst [vmem:[#allocation46_spill] sm:$0xff] %v4172_v17  ;;  %5315 = vst [vmem:[#allocation47_spill] sm:$0xff] %v4176_v12  ;;  %v4178_v10 = vld [vmem:[#allocation7 + $0x18c] ss:$16 sps:$4 sm:$0xff]   ;;  %v4182_v21 = vld [vmem:[#allocation7 + $0x180] ss:$16 sps:$4 sm:$0xff]  }
 0x244   :  { %5316 = vst [vmem:[#allocation48_spill] sm:$0xff] %v4178_v10  ;;  %5317 = vst [vmem:[#allocation49_spill] sm:$0xff] %v4182_v21 }
 0x246   :  { %1487 = vmatpush1.bf16.msra.mxu0 %v4158_v20  ;;  %1528 = vmatpush1.bf16.msra.mxu1 %v4160_v18  ;;  %v4184_v20 = vld [vmem:[#allocation7 + $0x188] ss:$16 sps:$4 sm:$0xff]   ;;  %v4188_v18 = vld [vmem:[#allocation7 + $0x1a4] ss:$16 sps:$4 sm:$0xff]  }
 0x247   :  { %1488 = vmatprep.subr.bf16.mxu0 %v4164_v19  ;;  %1529 = vmatprep.subr.bf16.mxu1 %v4166_v16  ;;  %5318 = vst [vmem:[#allocation50_spill] sm:$0xff] %v4184_v20  ;;  %5319 = vst [vmem:[#allocation51_spill] sm:$0xff] %v4188_v18  ;;  %v4190_v19 = vld [vmem:[#allocation7 + $0x1ac] ss:$16 sps:$4 sm:$0xff]   ;;  %v4194_v16 = vld [vmem:[#allocation7 + $0x1a0] ss:$16 sps:$4 sm:$0xff]  }
 0x248   :  { %5320 = vst [vmem:[#allocation52_spill] sm:$0xff] %v4190_v19  ;;  %5321 = vst [vmem:[#allocation53_spill] sm:$0xff] %v4194_v16 }
 0x24a   :  { %1489 = vmatpush1.bf16.msra.mxu0 %v4170_v14  ;;  %1530 = vmatpush1.bf16.msra.mxu1 %v4172_v17  ;;  %v4196_v14 = vld [vmem:[#allocation7 + $0x1a8] ss:$16 sps:$4 sm:$0xff]   ;;  %v4200_v17 = vld [vmem:[#allocation7 + $0x1c4] ss:$16 sps:$4 sm:$0xff]  }
 0x24b   :  { %1490 = vmatprep.subr.bf16.mxu0 %v4176_v12  ;;  %1531 = vmatprep.subr.bf16.mxu1 %v4178_v10  ;;  %5322 = vst [vmem:[#allocation54_spill] sm:$0xff] %v4196_v14  ;;  %5323 = vst [vmem:[#allocation55_spill] sm:$0xff] %v4200_v17  ;;  %v4202_v12 = vld [vmem:[#allocation7 + $0x1cc] ss:$16 sps:$4 sm:$0xff]   ;;  %v4206_v10 = vld [vmem:[#allocation7 + $0x1c0] ss:$16 sps:$4 sm:$0xff]  }
 0x24c   :  { %5324 = vst [vmem:[#allocation56_spill] sm:$0xff] %v4202_v12  ;;  %5325 = vst [vmem:[#allocation57_spill] sm:$0xff] %v4206_v10 }
 0x24e   :  { %1491 = vmatpush1.bf16.msra.mxu0 %v4182_v21  ;;  %1532 = vmatpush1.bf16.msra.mxu1 %v4184_v20  ;;  %v4208_v21 = vld [vmem:[#allocation7 + $0x1c8] ss:$16 sps:$4 sm:$0xff]   ;;  %v4212_v20 = vld [vmem:[#allocation7 + $0x1e4] ss:$16 sps:$4 sm:$0xff]  }
 0x24f   :  { %1492 = vmatprep.subr.bf16.mxu0 %v4188_v18  ;;  %1533 = vmatprep.subr.bf16.mxu1 %v4190_v19  ;;  %5326 = vst [vmem:[#allocation58_spill] sm:$0xff] %v4208_v21  ;;  %v4214_v18 = vld [vmem:[#allocation7 + $0x1ec] ss:$16 sps:$4 sm:$0xff]   ;;  %v4218_v19 = vld [vmem:[#allocation7 + $0x1e0] ss:$16 sps:$4 sm:$0xff]  }
 0x250   :  { %5327 = vst [vmem:[#allocation59_spill] sm:$0xff] %v4214_v18  ;;  %5328 = vst [vmem:[#allocation60_spill] sm:$0xff] %v4218_v19 }
 0x252   :  { %1493 = vmatpush1.bf16.msra.mxu0 %v4194_v16  ;;  %1534 = vmatpush1.bf16.msra.mxu1 %v4196_v14  ;;  %v4220_v16 = vld [vmem:[#allocation7 + $0x1e8] ss:$16 sps:$4 sm:$0xff]  }
 0x253   :  { %1494 = vmatprep.subr.bf16.mxu0 %v4200_v17  ;;  %1535 = vmatprep.subr.bf16.mxu1 %v4202_v12  ;;  %5329 = vst [vmem:[#allocation61_spill] sm:$0xff] %v4220_v16  ;;  %v4226_v12 = vld [vmem:[#allocation6 + $0x4] ss:$12 sps:$4 sm:$0xff]   ;;  %v5331_v17 = vmov 0.0  }
 0x254   :  { %5330 = vst [vmem:[#allocation62_spill] sm:$0xff] %v4226_v12 }
 0x256   :  { %1495 = vmatpush1.bf16.msra.mxu0 %v4206_v10  ;;  %1536 = vmatpush1.bf16.msra.mxu1 %v4208_v21  ;;  %v4232_v21 = vld [vmem:[#allocation6] ss:$12 sps:$4 sm:$0xff]  }
 0x257   :  { %1496 = vmatprep.subr.bf16.mxu0 %v4212_v20  ;;  %1537 = vmatprep.subr.bf16.mxu1 %v4214_v18  ;;  %5332 = vst [vmem:[#allocation63_spill] sm:$0xff] %v4232_v21  ;;  %v4236_v18 = vld [vmem:[#allocation6 + $0x1c] ss:$12 sps:$4 sm:$0xff]  }
 0x258   :  { %5333 = vst [vmem:[#allocation64_spill] sm:$0xff] %v4236_v18 }
 0x25a   :  { %1497 = vmatpush1.bf16.msra.mxu0 %v4218_v19  ;;  %1538 = vmatpush1.bf16.msra.mxu1 %v4220_v16  ;;  %v5334_v16 = vmov 0  }
 0x25b   :  { %1571 = vmatprep.subr.bf16.mxu0 %v4226_v12  ;;  %3014 = vmatprep.subr.bf16.mxu1 %v5331_v17  ;;  %v4243_v12 = vld [vmem:[#allocation6 + $0x18] ss:$12 sps:$4 sm:$0xff]  }
 0x25c   :  { %5335 = vst [vmem:[#allocation65_spill] sm:$0xff] %v4243_v12 }
 0x25d   :  { %1499 = vmatmul.mubr.bf16.vlgmr.msra.gmra.mrb[12].mxu0 %v4038_v34  ;;  %1540 = vmatmul.mubr.bf16.vlgmr.msra.gmra.mrb[36].mxu1 %v4038_v34  ;;  %v4247_v34 = vld [vmem:[#allocation6 + $0x34] ss:$12 sps:$4 sm:$0xff]  }
 0x25e   :  { %1572 = vmatpush1.bf16.msra.mxu0 %v4232_v21  ;;  %3015 = vmatpush3.bf16.msra.mxu1 %v3918_v25  ;;  %5336 = vst [vmem:[#allocation66_spill] sm:$0xff] %v4247_v34 }
 0x25f   :  { %1573 = vmatprep.subr.bf16.mxu0 %v4236_v18  ;;  %3016 = vmatprep.subr.bf16.mxu1 %v5331_v17  ;;  %v4251_v18 = vld [vmem:[#allocation6 + $0x30] ss:$12 sps:$4 sm:$0xff]  }
 0x260   :  { %1603 = vmatprep.mubr.bf16.mxu0 %v5334_v16  ;;  %3030 = vmatprep.mubr.msk.bf16.mxu1 %vm3658_vm9, %v5331_v17  ;;  %5337 = vst [vmem:[#allocation67_spill] sm:$0xff] %v4251_v18  ;;  %v4255_v16 = vld [vmem:[#allocation6 + $0x4c] ss:$12 sps:$4 sm:$0xff]  }
 0x261   :  { %5338 = vst [vmem:[#allocation68_spill] sm:$0xff] %v4255_v16 }
 0x262   :  { %1574 = vmatpush1.bf16.msra.mxu0 %v4243_v12  ;;  %3017 = vmatpush3.bf16.msra.mxu1 %v3923_v26  ;;  %v4259_v12 = vld [vmem:[#allocation6 + $0x48] ss:$12 sps:$4 sm:$0xff]  }
 0x263   :  { %1575 = vmatprep.subr.bf16.mxu0 %v4247_v34  ;;  %3018 = vmatprep.subr.bf16.mxu1 %v5331_v17  ;;  %5339 = vst [vmem:[#allocation69_spill] sm:$0xff] %v4259_v12 }
 0x266   :  { %1576 = vmatpush1.bf16.msra.mxu0 %v4251_v18  ;;  %3019 = vmatpush3.bf16.msra.mxu1 %v3929_v27 }
 0x267   :  { %1577 = vmatprep.subr.bf16.mxu0 %v4255_v16  ;;  %3020 = vmatprep.subr.bf16.mxu1 %v5331_v17 }
 0x26a   :  { %1578 = vmatpush1.bf16.msra.mxu0 %v4259_v12  ;;  %3021 = vmatpush3.bf16.msra.mxu1 %v3933_v28 }
 0x26b   :  { %1579 = vmatprep.subr.bf16.mxu0 %v3825_v50  ;;  %3022 = vmatprep.subr.bf16.mxu1 %v5331_v17 }
 0x26e   :  { %1580 = vmatpush1.bf16.msra.mxu0 %v3827_v51  ;;  %3023 = vmatpush3.bf16.msra.mxu1 %v3937_v29 }
 0x26f   :  { %1581 = vmatprep.subr.bf16.mxu0 %v3829_v52  ;;  %3024 = vmatprep.subr.bf16.mxu1 %v5331_v17 }
 0x272   :  { %1582 = vmatpush1.bf16.msra.mxu0 %v3832_v53  ;;  %3025 = vmatpush3.bf16.msra.mxu1 %v3941_v30 }
 0x273   :  { %1583 = vmatprep.subr.bf16.mxu0 %v3836_v54  ;;  %3026 = vmatprep.subr.bf16.mxu1 %v5331_v17 }
 0x276   :  { %1584 = vmatpush1.bf16.msra.mxu0 %v3838_v55  ;;  %3027 = vmatpush3.bf16.msra.mxu1 %v3945_v31 }
 0x277   :  { %1585 = vmatprep.subr.bf16.mxu0 %v3841_v56  ;;  %3028 = vmatprep.subr.bf16.mxu1 %v5331_v17 }
 0x27a   :  { %1586 = vmatpush1.bf16.msra.mxu0 %v3844_v57  ;;  %3029 = vmatpush3.bf16.msra.mxu1 %v3949_v32 }
 0x27b   :  { %1675 = vmatprep.subr.bf16.mxu0 %v3972_v42  ;;  %1716 = vmatprep.subr.bf16.mxu1 %v3974_v43 }
 0x2f0   :  { %v1077_v50 = vpop.f32.mrb[8].mxu0  ;;  %v1118_v51 = vpop.f32.mrb[32].mxu1 }
 0x2f1   :  { %v1124_v52 = vadd.f32 %v1077_v50, %v3990_v4  ;;  %v1079_v53 = vpop.f32.mrb[9].mxu0  ;;  %v3012_v54 = vpop.f32.mrb[33].mxu1  ;;  %v1138_v16 = vadd.f32 %v4026_v33, %v1118_v51 }
 0x2f2   :  { %v1131_v55 = vadd.f32 %v1079_v53, %v3992_v7  ;;  %v1081_v31 = vpop.f32.mrb[10].mxu0  ;;  %v1121_v56 = vpop.f32.mrb[34].mxu1 }
 0x2f3   :  { %v2745_v30 = vmul.f32 -1.442695, %v1124_v52  ;;  %v1082_v29 = vpop.f32.mrb[11].mxu0  ;;  %v3013_v28 = vpop.f32.mrb[35].mxu1 }
 0x2f4   :  { %v2746_v57 = vmul.f32 -1.442695, %v1131_v55 }
 0x2f5   :  { %3346 = vpow2.f32 %v2745_v30 }
 0x2f6   :  { %3348 = vpow2.f32 %v2746_v57 }
 0x2ff   :  { %v3347_v32 = vpop.eup %3346 }
 0x300   :  { %v1128_v42 = vadd.f32 1.0, %v3347_v32  ;;  %v3349_v43 = vpop.eup %3348 }
 0x301   :  { %v1135_v12 = vadd.f32 1.0, %v3349_v43  ;;  %v5340_v43 = vsub.s32 0, %v3979_v44 }
 0x302   :  { %3350 = vrcp.f32 %v1128_v42  ;;  %v781_v42 = vld [vmem:[%s5081_s8] sm:$0xf] }
 0x303   :  { %3352 = vrcp.f32 %v1135_v12  ;;  %v4311_v12 = vrot.slane %v781_v42, %v5340_v43  ;;  %v5344_v43 = vld [vmem:[#allocation31_spill] sm:$0xff] }
 0x305   :  { %5341 = vst [vmem:[#allocation70_spill] sm:$0xff] %v4311_v12 }
 0x30c   :  { %v3351_v4 = vpop.eup %3350 }
 0x30d   :  { %v1139_v50 = vmul.f32 %v3351_v4, %v1138_v16  ;;  %v3353_v31 = vpop.eup %3352  ;;  %v5342_v16 = vsub.s32 1, %v3979_v44 }
 0x30e   :  { %v1142_v52 = vsub.f32 1.0, %v3353_v31  ;;  %v1144_v30 = vmul.f32 %v3353_v31, %v4030_v6 }
 0x30f   :  { %v1140_v7 = vadd.f32 %v1139_v50, %v4013_v15  ;;  %v4317_v15 = vrot.slane %v781_v42, %v5342_v16  ;;  %v5345_v16 = vld [vmem:[#allocation32_spill] sm:$0xff] }
 0x311   :  { %3354 = vtanh.f32 %v1140_v7  ;;  %5343 = vst [vmem:[#allocation71_spill] sm:$0xff] %v4317_v15 }
 0x31b   :  { %v3355_v29 = vpop.eup %3354 }
 0x31c   :  { %v1143_v28 = vmul.f32 %v3355_v29, %v1142_v52 }
 0x31e   :  { %v4286_v53 = vadd.f32 %v1144_v30, %v1143_v28 }
 0x320   :  { %v4290_v32 = vpack.c.bf16 %v4286_v53, %v4286_v53 }
 0x322   :  { %1604 = vmatmul.mubr.bf16.vlgmr.msra.gmra.mrb[16].mxu0 %v4290_v32  ;;  %3031 = vmatmul.mubr.bf16.vlgmr.msra.gmra.mrb[40].mxu1 %v4290_v32 }
 0x323   :  { %1676 = vmatpush1.bf16.msra.mxu0 %v4032_v9  ;;  %1717 = vmatpush1.bf16.msra.mxu1 %v4034_v11 }
 0x324   :  { %1677 = vmatprep.subr.bf16.mxu0 %v4040_v46  ;;  %1718 = vmatprep.subr.bf16.mxu1 %v4042_v13 }
 0x327   :  { %1678 = vmatpush1.bf16.msra.mxu0 %v4048_v58  ;;  %1719 = vmatpush1.bf16.msra.mxu1 %v4050_v36 }
 0x328   :  { %1679 = vmatprep.subr.bf16.mxu0 %v4054_v5  ;;  %1720 = vmatprep.subr.bf16.mxu1 %v4056_v35 }
 0x32b   :  { %1680 = vmatpush1.bf16.msra.mxu0 %v4062_v38  ;;  %1721 = vmatpush1.bf16.msra.mxu1 %v4064_v39 }
 0x32c   :  { %1681 = vmatprep.subr.bf16.mxu0 %v4068_v40  ;;  %1722 = vmatprep.subr.bf16.mxu1 %v4070_v41 }
 0x32f   :  { %1682 = vmatpush1.bf16.msra.mxu0 %v4074_v37  ;;  %1723 = vmatpush1.bf16.msra.mxu1 %v4076_v48 }
 0x330   :  { %v1500_v6 = vpop.f32.mrb[12].mxu0  ;;  %v1541_v51 = vpop.f32.mrb[36].mxu1  ;;  %1683 = vmatprep.subr.bf16.mxu0 %v4080_v59  ;;  %1724 = vmatprep.subr.bf16.mxu1 %v4082_v8 }
 0x331   :  { %v1501_v54 = vadd.f32 %v1500_v6, %v4311_v12  ;;  %v1502_v55 = vpop.f32.mrb[13].mxu0  ;;  %v1543_v56 = vpop.f32.mrb[37].mxu1  ;;  %v797_v6 = vsub.s32 3, %v3979_v44 }
 0x332   :  { %v1504_v57 = vpop.f32.mrb[14].mxu0  ;;  %v1545_v4 = vpop.f32.mrb[38].mxu1  ;;  %v1503_v52 = vadd.f32 %v1502_v55, %v4317_v15  ;;  %v5347_v55 = vld [vmem:[#allocation34_spill] sm:$0xff] }
 0x333   :  { %v2811_v50 = vmul.f32 -1.442695, %v1501_v54  ;;  %v1505_v7 = vpop.f32.mrb[15].mxu0  ;;  %v1546_v31 = vpop.f32.mrb[39].mxu1  ;;  %1684 = vmatpush1.bf16.msra.mxu0 %v4086_v63  ;;  %1725 = vmatpush1.bf16.msra.mxu1 %v4088_v1  ;;  %v5346_v54 = vld [vmem:[#allocation33_spill] sm:$0xff]  ;;  %v5348_v57 = vld [vmem:[#allocation35_spill] sm:$0xff] }
 0x334   :  { %1685 = vmatprep.subr.bf16.mxu0 %v4092_v61  ;;  %1726 = vmatprep.subr.bf16.mxu1 %v4094_v2  ;;  %v2812_v29 = vmul.f32 -1.442695, %v1503_v52  ;;  %v5349_v4 = vld [vmem:[#allocation36_spill] sm:$0xff]  ;;  %v4344_v7 = vrot.slane %v781_v42, %v797_v6  ;;  %v5351_v31 = vld [vmem:[#allocation37_spill] sm:$0xff]  ;;  %v5352_v52 = vld [vmem:[#allocation38_spill] sm:$0xff] }
 0x335   :  { %3356 = vpow2.f32 %v2811_v50 }
 0x336   :  { %3358 = vpow2.f32 %v2812_v29  ;;  %5350 = vst [vmem:[#allocation72_spill] sm:$0xff] %v4344_v7  ;;  %v5353_v29 = vld [vmem:[#allocation39_spill] sm:$0xff] }
 0x337   :  { %1686 = vmatpush1.bf16.msra.mxu0 %v4098_v62  ;;  %1727 = vmatpush1.bf16.msra.mxu1 %v4100_v3 }
 0x338   :  { %1687 = vmatprep.subr.bf16.mxu0 %v4104_v60  ;;  %1728 = vmatprep.subr.bf16.mxu1 %v4106_v47 }
 0x33b   :  { %1688 = vmatpush1.bf16.msra.mxu0 %v4110_v45  ;;  %1729 = vmatpush1.bf16.msra.mxu1 %v4112_v0 }
 0x33c   :  { %1689 = vmatprep.subr.bf16.mxu0 %v4116_v49  ;;  %1730 = vmatprep.subr.bf16.mxu1 %v4118_v23 }
 0x33f   :  { %v3357_v28 = vpop.eup %3356  ;;  %1690 = vmatpush1.bf16.msra.mxu0 %v4122_v24  ;;  %1731 = vmatpush1.bf16.msra.mxu1 %v4124_v22 }
 0x340   :  { %v1551_v30 = vadd.f32 1.0, %v3357_v28  ;;  %1691 = vmatprep.subr.bf16.mxu0 %v5344_v43  ;;  %1732 = vmatprep.subr.bf16.mxu1 %v5345_v16  ;;  %v3359_v50 = vpop.eup %3358  ;;  %v5354_v28 = vld [vmem:[#allocation40_spill] sm:$0xff]  ;;  %v5357_v16 = vld [vmem:[#allocation41_spill] sm:$0xff]  ;;  %v5359_v43 = vld [vmem:[#allocation43_spill] sm:$0xff] }
 0x342   :  { %3360 = vrcp.f32 %v1551_v30  ;;  %v5355_v30 = vsub.s32 2, %v3979_v44  ;;  %v5361_v44 = vld [vmem:[#allocation45_spill] sm:$0xff] }
 0x343   :  { %1692 = vmatpush1.bf16.msra.mxu0 %v5346_v54  ;;  %1733 = vmatpush1.bf16.msra.mxu1 %v5347_v55  ;;  %v1557_v55 = vadd.f32 1.0, %v3359_v50  ;;  %v5363_v50 = vld [vmem:[#allocation47_spill] sm:$0xff] }
 0x344   :  { %1693 = vmatprep.subr.bf16.mxu0 %v5348_v57  ;;  %1734 = vmatprep.subr.bf16.mxu1 %v5349_v4  ;;  %v4352_v54 = vrot.slane %v781_v42, %v5355_v30  ;;  %v1544_v57 = vadd.f32 %v1543_v56, %v4344_v7  ;;  %v5358_v4 = vld [vmem:[#allocation42_spill] sm:$0xff]  ;;  %v5364_v56 = vld [vmem:[#allocation48_spill] sm:$0xff]  ;;  %v5365_v30 = vld [vmem:[#allocation49_spill] sm:$0xff] }
 0x345   :  { %3362 = vrcp.f32 %v1557_v55  ;;  %v5362_v42 = vld [vmem:[#allocation46_spill] sm:$0xff]  ;;  %v5369_v55 = vld [vmem:[#allocation53_spill] sm:$0xff] }
 0x346   :  { %5356 = vst [vmem:[#allocation73_spill] sm:$0xff] %v4352_v54  ;;  %v5366_v7 = vld [vmem:[#allocation50_spill] sm:$0xff] }
 0x347   :  { %1694 = vmatpush1.bf16.msra.mxu0 %v5351_v31  ;;  %1735 = vmatpush1.bf16.msra.mxu1 %v5352_v52  ;;  %v5360_v31 = vld [vmem:[#allocation44_spill] sm:$0xff] }
 0x348   :  { %1695 = vmatprep.subr.bf16.mxu0 %v5353_v29  ;;  %1736 = vmatprep.subr.bf16.mxu1 %v5354_v28  ;;  %v1542_v29 = vadd.f32 %v1541_v51, %v4352_v54 }
 0x34b   :  { %1696 = vmatpush1.bf16.msra.mxu0 %v5357_v16  ;;  %1737 = vmatpush1.bf16.msra.mxu1 %v5358_v4 }
 0x34c   :  { %v3361_v6 = vpop.eup %3360  ;;  %1697 = vmatprep.subr.bf16.mxu0 %v5359_v43  ;;  %1738 = vmatprep.subr.bf16.mxu1 %v5360_v31  ;;  %v5367_v43 = vld [vmem:[#allocation51_spill] sm:$0xff]  ;;  %v5368_v31 = vld [vmem:[#allocation52_spill] sm:$0xff] }
 0x34d   :  { %v1560_v28 = vmul.f32 %v3361_v6, %v1544_v57  ;;  %v5370_v57 = vld [vmem:[#allocation55_spill] sm:$0xff] }
 0x34f   :  { %v1561_v52 = vadd.f32 %v1560_v28, %v1542_v29  ;;  %1698 = vmatpush1.bf16.msra.mxu0 %v5361_v44  ;;  %1739 = vmatpush1.bf16.msra.mxu1 %v5362_v42  ;;  %v3363_v51 = vpop.eup %3362  ;;  %v5371_v29 = vld [vmem:[#allocation56_spill] sm:$0xff] }
 0x350   :  { %1699 = vmatprep.subr.bf16.mxu0 %v5363_v50  ;;  %1740 = vmatprep.subr.bf16.mxu1 %v5364_v56  ;;  %v1563_v28 = vsub.f32 1.0, %v3363_v51 }
 0x351   :  { %3364 = vtanh.f32 %v1561_v52  ;;  %v5372_v52 = vld [vmem:[#allocation58_spill] sm:$0xff] }
 0x353   :  { %1700 = vmatpush1.bf16.msra.mxu0 %v5365_v30  ;;  %1741 = vmatpush1.bf16.msra.mxu1 %v5366_v7 }
 0x354   :  { %1701 = vmatprep.subr.bf16.mxu0 %v5367_v43  ;;  %1742 = vmatprep.subr.bf16.mxu1 %v5368_v31  ;;  %v5373_v43 = vld [vmem:[#allocation59_spill] sm:$0xff] }
 0x357   :  { %1702 = vmatpush1.bf16.msra.mxu0 %v5369_v55  ;;  %1743 = vmatpush1.bf16.msra.mxu1 %v4196_v14  ;;  %v3464_v55 = vld [vmem:[%s5074_s1 + $0x8] sm:$0xff] }
 0x358   :  { %1703 = vmatprep.subr.bf16.mxu0 %v5370_v57  ;;  %1744 = vmatprep.subr.bf16.mxu1 %v5371_v29  ;;  %v1565_v14 = vmul.f32 %v3464_v55, %v3363_v51  ;;  %v5375_v29 = vld [vmem:[#allocation61_spill] sm:$0xff]  ;;  %v4406_v55 = vld [vmem:[#allocation6 + $0x64] ss:$12 sps:$4 sm:$0xff]  }
 0x359   :  { %v5379_v51 = vld [vmem:[#allocation65_spill] sm:$0xff]  ;;  %5383 = vst [vmem:[#allocation42_spill] sm:$0xff] %v4406_v55 }
 0x35b   :  { %v3365_v6 = vpop.eup %3364  ;;  %1704 = vmatpush1.bf16.msra.mxu0 %v4206_v10  ;;  %1745 = vmatpush1.bf16.msra.mxu1 %v5372_v52  ;;  %v5376_v52 = vld [vmem:[#allocation62_spill] sm:$0xff] }
 0x35c   :  { %1705 = vmatprep.subr.bf16.mxu0 %v4212_v20  ;;  %1746 = vmatprep.subr.bf16.mxu1 %v5373_v43  ;;  %v1564_v31 = vmul.f32 %v3365_v6, %v1563_v28  ;;  %v5385_v28 = vld [vmem:[#allocation13_spill] sm:$0xff]  ;;  %v4418_v6 = vld [vmem:[#allocation6 + $0x78] ss:$12 sps:$4 sm:$0xff]  }
 0x35d   :  { %5387 = vst [vmem:[#allocation47_spill] sm:$0xff] %v4418_v6 }
 0x35e   :  { %v4379_v7 = vadd.f32 %v1565_v14, %v1564_v31  ;;  %v5377_v14 = vld [vmem:[#allocation64_spill] sm:$0xff]  ;;  %v5378_v31 = vmov 0  }
 0x35f   :  { %1706 = vmatpush1.bf16.msra.mxu0 %v4218_v19  ;;  %1747 = vmatpush1.bf16.msra.mxu1 %v5375_v29 }
 0x360   :  { %5374 = vst [vmem:[#allocation41_spill] sm:$0xff] %v4379_v7  ;;  %v1674_v10 = vpack.c.bf16 %v4379_v7, %v4379_v7  ;;  %1780 = vmatprep.subr.bf16.mxu0 %v5376_v52  ;;  %3034 = vmatprep.subr.bf16.mxu1 %v5331_v17 }
 0x362   :  { %1707 = vmatprep.mubr.bf16.mxu0 %v1674_v10  ;;  %1748 = vmatprep.mubr.bf16.mxu1 %v1674_v10  ;;  %v5381_v10 = vld [vmem:[#allocation69_spill] sm:$0xff] }
 0x363   :  { %1708 = vmatmul.mubr.bf16.vlgmr.msra.gmra.mrb[20].mxu0 %v4290_v32  ;;  %1749 = vmatmul.mubr.bf16.vlgmr.msra.gmra.mrb[44].mxu1 %v4290_v32  ;;  %v5382_v32 = vld [vmem:[#allocation12_spill] sm:$0xff] }
 0x364   :  { %1781 = vmatpush1.bf16.msra.mxu0 %v4232_v21  ;;  %3035 = vmatpush3.bf16.msra.mxu1 %v3918_v25  ;;  %v5380_v25 = vld [vmem:[#allocation68_spill] sm:$0xff] }
 0x365   :  { %1782 = vmatprep.subr.bf16.mxu0 %v5377_v14  ;;  %3036 = vmatprep.subr.bf16.mxu1 %v5331_v17 }
 0x366   :  { %1812 = vmatprep.mubr.bf16.mxu0 %v5378_v31  ;;  %3050 = vmatprep.mubr.msk.bf16.mxu1 %vm3658_vm9, %v5331_v17  ;;  %v5398_v31 = vld [vmem:[#allocation20_spill] sm:$0xff] }
 0x368   :  { %1783 = vmatpush1.bf16.msra.mxu0 %v5379_v51  ;;  %3037 = vmatpush3.bf16.msra.mxu1 %v3923_v26  ;;  %v4410_v26 = vld [vmem:[#allocation6 + $0x60] ss:$12 sps:$4 sm:$0xff]  }
 0x369   :  { %1784 = vmatprep.subr.bf16.mxu0 %v4247_v34  ;;  %3038 = vmatprep.subr.bf16.mxu1 %v5331_v17  ;;  %5384 = vst [vmem:[#allocation45_spill] sm:$0xff] %v4410_v26 }
 0x36c   :  { %1785 = vmatpush1.bf16.msra.mxu0 %v4251_v18  ;;  %3039 = vmatpush3.bf16.msra.mxu1 %v3929_v27  ;;  %v4414_v27 = vld [vmem:[#allocation6 + $0x7c] ss:$12 sps:$4 sm:$0xff]  }
 0x36d   :  { %1786 = vmatprep.subr.bf16.mxu0 %v5380_v25  ;;  %3040 = vmatprep.subr.bf16.mxu1 %v5331_v17  ;;  %5386 = vst [vmem:[#allocation46_spill] sm:$0xff] %v4414_v27  ;;  %v5397_v18 = vld [vmem:[#allocation19_spill] sm:$0xff] }
 0x370   :  { %1787 = vmatpush1.bf16.msra.mxu0 %v5381_v10  ;;  %3041 = vmatpush3.bf16.msra.mxu1 %v5382_v32  ;;  %v5388_v32 = vld [vmem:[#allocation14_spill] sm:$0xff] }
 0x371   :  { %1788 = vmatprep.subr.bf16.mxu0 %v4406_v55  ;;  %3042 = vmatprep.subr.bf16.mxu1 %v5331_v17  ;;  %v4422_v55 = vld [vmem:[#allocation6 + $0x94] ss:$12 sps:$4 sm:$0xff]  }
 0x372   :  { %5389 = vst [vmem:[#allocation48_spill] sm:$0xff] %v4422_v55  ;;  %v5396_v10 = vld [vmem:[#allocation18_spill] sm:$0xff] }
 0x374   :  { %1789 = vmatpush1.bf16.msra.mxu0 %v4410_v26  ;;  %3043 = vmatpush3.bf16.msra.mxu1 %v5385_v28  ;;  %v4426_v26 = vld [vmem:[#allocation6 + $0x90] ss:$12 sps:$4 sm:$0xff]  }
 0x375   :  { %1790 = vmatprep.subr.bf16.mxu0 %v4414_v27  ;;  %3044 = vmatprep.subr.bf16.mxu1 %v5331_v17  ;;  %5390 = vst [vmem:[#allocation49_spill] sm:$0xff] %v4426_v26  ;;  %v5391_v28 = vld [vmem:[#allocation15_spill] sm:$0xff] }
 0x376   :  { %v4430_v27 = vld [vmem:[#allocation6 + $0xac] ss:$12 sps:$4 sm:$0xff]  }
 0x377   :  { %5392 = vst [vmem:[#allocation55_spill] sm:$0xff] %v4430_v27 }
 0x378   :  { %1791 = vmatpush1.bf16.msra.mxu0 %v4418_v6  ;;  %3045 = vmatpush3.bf16.msra.mxu1 %v5388_v32  ;;  %v4434_v6 = vld [vmem:[#allocation6 + $0xa8] ss:$12 sps:$4 sm:$0xff]   ;;  %v5394_v32 = vld [vmem:[#allocation16_spill] sm:$0xff] }
 0x379   :  { %1792 = vmatprep.subr.bf16.mxu0 %v4422_v55  ;;  %3046 = vmatprep.subr.bf16.mxu1 %v5331_v17  ;;  %5393 = vst [vmem:[#allocation59_spill] sm:$0xff] %v4434_v6  ;;  %v5395_v55 = vld [vmem:[#allocation17_spill] sm:$0xff] }
 0x37c   :  { %1793 = vmatpush1.bf16.msra.mxu0 %v4426_v26  ;;  %3047 = vmatpush3.bf16.msra.mxu1 %v5391_v28 }
 0x37d   :  { %1794 = vmatprep.subr.bf16.mxu0 %v4430_v27  ;;  %3048 = vmatprep.subr.bf16.mxu1 %v5331_v17 }
 0x380   :  { %1795 = vmatpush1.bf16.msra.mxu0 %v4434_v6  ;;  %3049 = vmatpush3.bf16.msra.mxu1 %v5394_v32 }
 0x381   :  { %1884 = vmatprep.subr.bf16.mxu0 %v5395_v55  ;;  %1925 = vmatprep.subr.bf16.mxu1 %v5396_v10 }
 0x3f5   :  { %v1605_v25 = vpop.f32.mrb[16].mxu0  ;;  %v1646_v26 = vpop.f32.mrb[40].mxu1 }
 0x3f6   :  { %v1652_v28 = vadd.f32 %v1605_v25, %v5397_v18  ;;  %v1607_v34 = vpop.f32.mrb[17].mxu0  ;;  %v3032_v51 = vpop.f32.mrb[41].mxu1  ;;  %v1666_v7 = vadd.f32 %v4026_v33, %v1646_v26  ;;  %v5415_v26 = vld [vmem:[#allocation52_spill] sm:$0xff] }
 0x3f7   :  { %v1659_v27 = vadd.f32 %v1607_v34, %v5398_v31  ;;  %v1609_v14 = vpop.f32.mrb[18].mxu0  ;;  %v1649_v21 = vpop.f32.mrb[42].mxu1  ;;  %v5399_v51 = vld [vmem:[#allocation27_spill] sm:$0xff] }
 0x3f8   :  { %v2813_v17 = vmul.f32 -1.442695, %v1652_v28  ;;  %v1610_v52 = vpop.f32.mrb[19].mxu0  ;;  %v3033_v29 = vpop.f32.mrb[43].mxu1  ;;  %v5417_v28 = vld [vmem:[#allocation54_spill] sm:$0xff] }
 0x3f9   :  { %v2814_v6 = vmul.f32 -1.442695, %v1659_v27 }
 0x3fa   :  { %3366 = vpow2.f32 %v2813_v17 }
 0x3fb   :  { %3368 = vpow2.f32 %v2814_v6  ;;  %v5416_v6 = vld [vmem:[#allocation53_spill] sm:$0xff] }
 0x404   :  { %v3367_v32 = vpop.eup %3366 }
 0x405   :  { %v1656_v55 = vadd.f32 1.0, %v3367_v32  ;;  %v3369_v10 = vpop.eup %3368 }
 0x406   :  { %v1663_v19 = vadd.f32 1.0, %v3369_v10  ;;  %v5421_v10 = vld [vmem:[#allocation41_spill] sm:$0xff] }
 0x407   :  { %3370 = vrcp.f32 %v1656_v55 }
 0x408   :  { %3372 = vrcp.f32 %v1663_v19 }
 0x411   :  { %v3371_v18 = vpop.eup %3370 }
 0x412   :  { %v1667_v25 = vmul.f32 %v3371_v18, %v1666_v7  ;;  %v3373_v21 = vpop.eup %3372 }
 0x413   :  { %v1670_v14 = vsub.f32 1.0, %v3373_v21  ;;  %v1672_v17 = vmul.f32 %v3373_v21, %v4286_v53  ;;  %v5426_v21 = vmov 0.0  }
 0x414   :  { %v1668_v34 = vadd.f32 %v1667_v25, %v5399_v51  ;;  %v5422_v25 = vld [vmem:[#allocation60_spill] sm:$0xff]  ;;  %v5423_v51 = vld [vmem:[#allocation61_spill] sm:$0xff] }
 0x416   :  { %3374 = vtanh.f32 %v1668_v34  ;;  %v5425_v34 = vld [vmem:[#allocation62_spill] sm:$0xff] }
 0x420   :  { %v3375_v52 = vpop.eup %3374 }
 0x421   :  { %v1671_v29 = vmul.f32 %v3375_v52, %v1670_v14  ;;  %v5427_v52 = vld [vmem:[#allocation63_spill] sm:$0xff] }
 0x423   :  { %v4445_v31 = vadd.f32 %v1672_v17, %v1671_v29  ;;  %v4529_v29 = vld [vmem:[#allocation6 + $0x8] ss:$12 sps:$4 sm:$0xff]   ;;  %v5428_v17 = vld [vmem:[#allocation64_spill] sm:$0xff] }
 0x425   :  { %v4449_v27 = vpack.c.bf16 %v4445_v31, %v4445_v31 }
 0x427   :  { %1813 = vmatmul.mubr.bf16.vlgmr.msra.gmra.mrb[24].mxu0 %v4449_v27  ;;  %3051 = vmatmul.mubr.bf16.vlgmr.msra.gmra.mrb[48].mxu1 %v4449_v27 }
 0x428   :  { %1885 = vmatpush1.bf16.msra.mxu0 %v4032_v9  ;;  %1926 = vmatpush1.bf16.msra.mxu1 %v4034_v11 }
 0x429   :  { %1886 = vmatprep.subr.bf16.mxu0 %v4040_v46  ;;  %1927 = vmatprep.subr.bf16.mxu1 %v4042_v13 }
 0x42c   :  { %1887 = vmatpush1.bf16.msra.mxu0 %v4048_v58  ;;  %1928 = vmatpush1.bf16.msra.mxu1 %v4050_v36 }
 0x42d   :  { %1888 = vmatprep.subr.bf16.mxu0 %v4054_v5  ;;  %1929 = vmatprep.subr.bf16.mxu1 %v4056_v35 }
 0x430   :  { %1889 = vmatpush1.bf16.msra.mxu0 %v4062_v38  ;;  %1930 = vmatpush1.bf16.msra.mxu1 %v4064_v39 }
 0x431   :  { %1890 = vmatprep.subr.bf16.mxu0 %v4068_v40  ;;  %1931 = vmatprep.subr.bf16.mxu1 %v4070_v41  ;;  %v5400_v41 = vld [vmem:[#allocation31_spill] sm:$0xff] }
 0x434   :  { %1891 = vmatpush1.bf16.msra.mxu0 %v4074_v37  ;;  %1932 = vmatpush1.bf16.msra.mxu1 %v4076_v48  ;;  %v5402_v37 = vld [vmem:[#allocation33_spill] sm:$0xff] }
 0x435   :  { %1892 = vmatprep.subr.bf16.mxu0 %v4080_v59  ;;  %1933 = vmatprep.subr.bf16.mxu1 %v4082_v8  ;;  %v5406_v48 = vld [vmem:[#allocation37_spill] sm:$0xff]  ;;  %v5409_v59 = vld [vmem:[#allocation40_spill] sm:$0xff] }
 0x436   :  { %v1709_v19 = vpop.f32.mrb[20].mxu0  ;;  %v1750_v33 = vpop.f32.mrb[44].mxu1 }
 0x437   :  { %v1710_v9 = vadd.f32 %v1709_v19, %v4311_v12  ;;  %v1711_v11 = vpop.f32.mrb[21].mxu0  ;;  %v1752_v46 = vpop.f32.mrb[45].mxu1  ;;  %v5429_v19 = vmov 0  }
 0x438   :  { %v1713_v13 = vpop.f32.mrb[22].mxu0  ;;  %v1754_v58 = vpop.f32.mrb[46].mxu1  ;;  %1893 = vmatpush1.bf16.msra.mxu0 %v4086_v63  ;;  %1934 = vmatpush1.bf16.msra.mxu1 %v4088_v1  ;;  %v1712_v38 = vadd.f32 %v1711_v11, %v4317_v15  ;;  %v5410_v63 = vld [vmem:[#allocation72_spill] sm:$0xff]  ;;  %v5432_v11 = vld [vmem:[#allocation67_spill] sm:$0xff] }
 0x439   :  { %v2815_v36 = vmul.f32 -1.442695, %v1710_v9  ;;  %v1714_v5 = vpop.f32.mrb[23].mxu0  ;;  %v1755_v35 = vpop.f32.mrb[47].mxu1  ;;  %1894 = vmatprep.subr.bf16.mxu0 %v4092_v61  ;;  %1935 = vmatprep.subr.bf16.mxu1 %v4094_v2  ;;  %v1753_v1 = vadd.f32 %v1752_v46, %v5410_v63  ;;  %v5411_v61 = vld [vmem:[#allocation43_spill] sm:$0xff]  ;;  %v5412_v2 = vld [vmem:[#allocation44_spill] sm:$0xff] }
 0x43a   :  { %v2816_v39 = vmul.f32 -1.442695, %v1712_v38  ;;  %v4538_v9 = vld [vmem:[#allocation6 + $0x20] ss:$12 sps:$4 sm:$0xff]   ;;  %v4544_v46 = vld [vmem:[#allocation6 + $0x38] ss:$12 sps:$4 sm:$0xff]  }
 0x43b   :  { %3376 = vpow2.f32 %v2815_v36  ;;  %v5433_v13 = vld [vmem:[#allocation68_spill] sm:$0xff]  ;;  %v5434_v58 = vld [vmem:[#allocation69_spill] sm:$0xff]  ;;  %v4550_v36 = vld [vmem:[#allocation6 + $0x50] ss:$12 sps:$4 sm:$0xff]  }
 0x43c   :  { %1895 = vmatpush1.bf16.msra.mxu0 %v4098_v62  ;;  %1936 = vmatpush1.bf16.msra.mxu1 %v4100_v3  ;;  %3378 = vpow2.f32 %v2816_v39  ;;  %v1751_v3 = vadd.f32 %v1750_v33, %v4352_v54  ;;  %v5430_v33 = vld [vmem:[#allocation65_spill] sm:$0xff]  ;;  %v5435_v5 = vld [vmem:[#allocation42_spill] sm:$0xff] }
 0x43d   :  { %1896 = vmatprep.subr.bf16.mxu0 %v4104_v60  ;;  %1937 = vmatprep.subr.bf16.mxu1 %v4106_v47  ;;  %v5401_v60 = vld [vmem:[#allocation32_spill] sm:$0xff]  ;;  %v5436_v35 = vld [vmem:[#allocation45_spill] sm:$0xff]  ;;  %v5437_v39 = vld [vmem:[#allocation46_spill] sm:$0xff] }
 0x43e   :  { %v4556_v38 = vld [vmem:[#allocation6 + $0x68] ss:$12 sps:$4 sm:$0xff]  }
 0x440   :  { %1897 = vmatpush1.bf16.msra.mxu0 %v4110_v45  ;;  %1938 = vmatpush1.bf16.msra.mxu1 %v4112_v0  ;;  %v5403_v45 = vld [vmem:[#allocation34_spill] sm:$0xff]  ;;  %v5404_v0 = vld [vmem:[#allocation35_spill] sm:$0xff] }
 0x441   :  { %1898 = vmatprep.subr.bf16.mxu0 %v4116_v49  ;;  %1939 = vmatprep.subr.bf16.mxu1 %v4118_v23  ;;  %v5405_v49 = vld [vmem:[#allocation36_spill] sm:$0xff] }
 0x444   :  { %1899 = vmatpush1.bf16.msra.mxu0 %v4122_v24  ;;  %1940 = vmatpush1.bf16.msra.mxu1 %v4124_v22  ;;  %v5407_v24 = vld [vmem:[#allocation38_spill] sm:$0xff]  ;;  %v5408_v22 = vld [vmem:[#allocation39_spill] sm:$0xff] }
 0x445   :  { %v3377_v40 = vpop.eup %3376  ;;  %1900 = vmatprep.subr.bf16.mxu0 %v5400_v41  ;;  %1941 = vmatprep.subr.bf16.mxu1 %v5401_v60  ;;  %v4562_v41 = vld [vmem:[#allocation6 + $0x80] ss:$12 sps:$4 sm:$0xff]  }
 0x446   :  { %v1760_v47 = vadd.f32 1.0, %v3377_v40  ;;  %v3379_v23 = vpop.eup %3378  ;;  %v5438_v40 = vld [vmem:[#allocation47_spill] sm:$0xff]  ;;  %v5439_v60 = vld [vmem:[#allocation48_spill] sm:$0xff] }
 0x447   :  { %v1766_v8 = vadd.f32 1.0, %v3379_v23  ;;  %v4577_v23 = vld [vmem:[#allocation7 + $0x4] ss:$16 sps:$4 sm:$0xff]  }
 0x448   :  { %3380 = vrcp.f32 %v1760_v47  ;;  %1901 = vmatpush1.bf16.msra.mxu0 %v5402_v37  ;;  %1942 = vmatpush1.bf16.msra.mxu1 %v5403_v45  ;;  %v5440_v47 = vld [vmem:[#allocation49_spill] sm:$0xff]  ;;  %v4568_v37 = vld [vmem:[#allocation6 + $0x98] ss:$12 sps:$4 sm:$0xff]  }
 0x449   :  { %1902 = vmatprep.subr.bf16.mxu0 %v5404_v0  ;;  %1943 = vmatprep.subr.bf16.mxu1 %v5405_v49  ;;  %3382 = vrcp.f32 %v1766_v8  ;;  %v5441_v45 = vld [vmem:[#allocation55_spill] sm:$0xff] }
 0x44a   :  { %v5442_v0 = vld [vmem:[#allocation59_spill] sm:$0xff] }
 0x44b   :  { %v4574_v49 = vld [vmem:[#allocation6 + $0xb0] ss:$12 sps:$4 sm:$0xff]  }
 0x44c   :  { %1903 = vmatpush1.bf16.msra.mxu0 %v5406_v48  ;;  %1944 = vmatpush1.bf16.msra.mxu1 %v5407_v24  ;;  %v4580_v48 = vld [vmem:[#allocation7 + $0xc] ss:$16 sps:$4 sm:$0xff]  }
 0x44d   :  { %1904 = vmatprep.subr.bf16.mxu0 %v5408_v22  ;;  %1945 = vmatprep.subr.bf16.mxu1 %v5409_v59  ;;  %v5443_v59 = vld [vmem:[#allocation21_spill] sm:$0xff] }
 0x450   :  { %1905 = vmatpush1.bf16.msra.mxu0 %v5357_v16  ;;  %1946 = vmatpush1.bf16.msra.mxu1 %v5358_v4  ;;  %v5413_v16 = vld [vmem:[#allocation50_spill] sm:$0xff]  ;;  %v5414_v4 = vld [vmem:[#allocation51_spill] sm:$0xff] }
 0x451   :  { %1906 = vmatprep.subr.bf16.mxu0 %v5411_v61  ;;  %1947 = vmatprep.subr.bf16.mxu1 %v5412_v2  ;;  %v5444_v2 = vld [vmem:[#allocation22_spill] sm:$0xff] }
 0x452   :  { %v3381_v62 = vpop.eup %3380 }
 0x453   :  { %v1769_v53 = vmul.f32 %v3381_v62, %v1753_v1 }
 0x454   :  { %1907 = vmatpush1.bf16.msra.mxu0 %v5361_v44  ;;  %1948 = vmatpush1.bf16.msra.mxu1 %v5362_v42  ;;  %v3383_v44 = vpop.eup %3382  ;;  %v5418_v42 = vld [vmem:[#allocation56_spill] sm:$0xff] }
 0x455   :  { %v1770_v7 = vadd.f32 %v1769_v53, %v1751_v3  ;;  %1908 = vmatprep.subr.bf16.mxu0 %v5363_v50  ;;  %1949 = vmatprep.subr.bf16.mxu1 %v5364_v56  ;;  %v5419_v50 = vld [vmem:[#allocation57_spill] sm:$0xff]  ;;  %v5420_v56 = vld [vmem:[#allocation58_spill] sm:$0xff]  ;;  %v1774_v18 = vmul.f32 %v3383_v44, %v5421_v10 }
 0x456   :  { %v4691_v10 = vld [vmem:[#allocation7 + $0xe0] ss:$16 sps:$4 sm:$0xff]  }
 0x457   :  { %3384 = vtanh.f32 %v1770_v7  ;;  %5453 = vst [vmem:[#allocation20_spill] sm:$0xff] %v4691_v10 }
 0x458   :  { %1909 = vmatpush1.bf16.msra.mxu0 %v5365_v30  ;;  %1950 = vmatpush1.bf16.msra.mxu1 %v5413_v16  ;;  %v1772_v30 = vsub.f32 1.0, %v3383_v44 }
 0x459   :  { %1910 = vmatprep.subr.bf16.mxu0 %v5414_v4  ;;  %1951 = vmatprep.subr.bf16.mxu1 %v5415_v26 }
 0x45c   :  { %1911 = vmatpush1.bf16.msra.mxu0 %v5416_v6  ;;  %1952 = vmatpush1.bf16.msra.mxu1 %v5417_v28 }
 0x45d   :  { %1912 = vmatprep.subr.bf16.mxu0 %v5370_v57  ;;  %1953 = vmatprep.subr.bf16.mxu1 %v5418_v42 }
 0x460   :  { %1913 = vmatpush1.bf16.msra.mxu0 %v5419_v50  ;;  %1954 = vmatpush1.bf16.msra.mxu1 %v5420_v56  ;;  %v4588_v50 = vld [vmem:[%s5079_s6] ss:$0 sm:$0xff] }
 0x461   :  { %v3385_v32 = vpop.eup %3384  ;;  %1914 = vmatprep.subr.bf16.mxu0 %v4212_v20  ;;  %1955 = vmatprep.subr.bf16.mxu1 %v5373_v43  ;;  %5445 = vst [vmem:[#allocation13_spill] sm:$0xff] %v4588_v50 }
 0x462   :  { %v1773_v55 = vmul.f32 %v3385_v32, %v1772_v30 }
 0x464   :  { %1915 = vmatpush1.bf16.msra.mxu0 %v5422_v25  ;;  %1956 = vmatpush1.bf16.msra.mxu1 %v5423_v51  ;;  %v4520_v57 = vadd.f32 %v1774_v18, %v1773_v55  ;;  %v5446_v55 = vld [vmem:[#allocation28_spill] sm:$0xff] }
 0x465   :  { %1989 = vmatprep.subr.bf16.mxu0 %v5425_v34  ;;  %3054 = vmatprep.subr.bf16.mxu1 %v5426_v21 }
 0x466   :  { %5424 = vst [vmem:[#allocation12_spill] sm:$0xff] %v4520_v57  ;;  %v1883_v14 = vpack.c.bf16 %v4520_v57, %v4520_v57 }
 0x468   :  { %1916 = vmatprep.mubr.bf16.mxu0 %v1883_v14  ;;  %1957 = vmatprep.mubr.bf16.mxu1 %v1883_v14 }
 0x469   :  { %1917 = vmatmul.mubr.bf16.vlgmr.msra.gmra.mrb[28].mxu0 %v4449_v27  ;;  %1958 = vmatmul.mubr.bf16.vlgmr.msra.gmra.mrb[52].mxu1 %v4449_v27  ;;  %v5431_v27 = vld [vmem:[#allocation66_spill] sm:$0xff] }
 0x46a   :  { %1990 = vmatpush1.bf16.msra.mxu0 %v5427_v52  ;;  %3055 = vmatpush3.bf16.msra.mxu1 %v4529_v29 }
 0x46b   :  { %1991 = vmatprep.subr.bf16.mxu0 %v5428_v17  ;;  %3056 = vmatprep.subr.bf16.mxu1 %v5426_v21 }
 0x46c   :  { %2021 = vmatprep.mubr.bf16.mxu0 %v5429_v19  ;;  %3070 = vmatprep.mubr.msk.bf16.mxu1 %vm3658_vm9, %v5426_v21 }
 0x46e   :  { %1992 = vmatpush1.bf16.msra.mxu0 %v5430_v33  ;;  %3057 = vmatpush3.bf16.msra.mxu1 %v4538_v9 }
 0x46f   :  { %1993 = vmatprep.subr.bf16.mxu0 %v5431_v27  ;;  %3058 = vmatprep.subr.bf16.mxu1 %v5426_v21 }
 0x472   :  { %1994 = vmatpush1.bf16.msra.mxu0 %v5432_v11  ;;  %3059 = vmatpush3.bf16.msra.mxu1 %v4544_v46  ;;  %v4601_v11 = vld [vmem:[#allocation7] ss:$16 sps:$4 sm:$0xff]  }
 0x473   :  { %1995 = vmatprep.subr.bf16.mxu0 %v5433_v13  ;;  %3060 = vmatprep.subr.bf16.mxu1 %v5426_v21  ;;  %v4604_v13 = vld [vmem:[#allocation7 + $0x8] ss:$16 sps:$4 sm:$0xff]  }
 0x476   :  { %1996 = vmatpush1.bf16.msra.mxu0 %v5434_v58  ;;  %3061 = vmatpush3.bf16.msra.mxu1 %v4550_v36  ;;  %v4607_v58 = vld [vmem:[#allocation7 + $0x24] ss:$16 sps:$4 sm:$0xff]  }
 0x477   :  { %1997 = vmatprep.subr.bf16.mxu0 %v5435_v5  ;;  %3062 = vmatprep.subr.bf16.mxu1 %v5426_v21 }
 0x47a   :  { %1998 = vmatpush1.bf16.msra.mxu0 %v5436_v35  ;;  %3063 = vmatpush3.bf16.msra.mxu1 %v4556_v38 }
 0x47b   :  { %1999 = vmatprep.subr.bf16.mxu0 %v5437_v39  ;;  %3064 = vmatprep.subr.bf16.mxu1 %v5426_v21 }
 0x47e   :  { %2000 = vmatpush1.bf16.msra.mxu0 %v5438_v40  ;;  %3065 = vmatpush3.bf16.msra.mxu1 %v4562_v41 }
 0x47f   :  { %2001 = vmatprep.subr.bf16.mxu0 %v5439_v60  ;;  %3066 = vmatprep.subr.bf16.mxu1 %v5426_v21 }
 0x482   :  { %2002 = vmatpush1.bf16.msra.mxu0 %v5440_v47  ;;  %3067 = vmatpush3.bf16.msra.mxu1 %v4568_v37 }
 0x483   :  { %2003 = vmatprep.subr.bf16.mxu0 %v5441_v45  ;;  %3068 = vmatprep.subr.bf16.mxu1 %v5426_v21 }
 0x486   :  { %2004 = vmatpush1.bf16.msra.mxu0 %v5442_v0  ;;  %3069 = vmatpush3.bf16.msra.mxu1 %v4574_v49 }
 0x487   :  { %2093 = vmatprep.subr.bf16.mxu0 %v4577_v23  ;;  %2134 = vmatprep.subr.bf16.mxu1 %v4580_v48 }
 0x4fa   :  { %v1814_v24 = vpop.f32.mrb[24].mxu0  ;;  %v1855_v22 = vpop.f32.mrb[48].mxu1 }
 0x4fb   :  { %v1861_v8 = vadd.f32 %v1814_v24, %v5443_v59  ;;  %v1816_v1 = vpop.f32.mrb[25].mxu0  ;;  %v3052_v61 = vpop.f32.mrb[49].mxu1  ;;  %v1875_v56 = vadd.f32 %v4588_v50, %v1855_v22  ;;  %v4613_v24 = vld [vmem:[#allocation7 + $0x20] ss:$16 sps:$4 sm:$0xff]   ;;  %v4616_v22 = vld [vmem:[#allocation7 + $0x28] ss:$16 sps:$4 sm:$0xff]  }
 0x4fc   :  { %v1868_v62 = vadd.f32 %v1816_v1, %v5444_v2  ;;  %v1818_v3 = vpop.f32.mrb[26].mxu0  ;;  %v1858_v53 = vpop.f32.mrb[50].mxu1  ;;  %v4619_v59 = vld [vmem:[#allocation7 + $0x44] ss:$16 sps:$4 sm:$0xff]   ;;  %v4625_v1 = vld [vmem:[#allocation7 + $0x40] ss:$16 sps:$4 sm:$0xff]  }
 0x4fd   :  { %v2817_v7 = vmul.f32 -1.442695, %v1861_v8  ;;  %v1819_v16 = vpop.f32.mrb[27].mxu0  ;;  %v3053_v4 = vpop.f32.mrb[51].mxu1  ;;  %v4622_v8 = vld [vmem:[#allocation7 + $0x4c] ss:$16 sps:$4 sm:$0xff]  }
 0x4fe   :  { %v2818_v26 = vmul.f32 -1.442695, %v1868_v62  ;;  %v4628_v61 = vld [vmem:[#allocation7 + $0x48] ss:$16 sps:$4 sm:$0xff]   ;;  %v4631_v2 = vld [vmem:[#allocation7 + $0x64] ss:$16 sps:$4 sm:$0xff]  }
 0x4ff   :  { %3386 = vpow2.f32 %v2817_v7  ;;  %v4634_v62 = vld [vmem:[#allocation7 + $0x6c] ss:$16 sps:$4 sm:$0xff]   ;;  %v4637_v3 = vld [vmem:[#allocation7 + $0x60] ss:$16 sps:$4 sm:$0xff]   ;;  %v4640_v53 = vld [vmem:[#allocation7 + $0x68] ss:$16 sps:$4 sm:$0xff]  }
 0x500   :  { %3388 = vpow2.f32 %v2818_v26  ;;  %v4643_v7 = vld [vmem:[#allocation7 + $0x84] ss:$16 sps:$4 sm:$0xff]   ;;  %v4646_v16 = vld [vmem:[#allocation7 + $0x8c] ss:$16 sps:$4 sm:$0xff]  }
 0x509   :  { %v3387_v6 = vpop.eup %3386 }
 0x50a   :  { %v1865_v28 = vadd.f32 1.0, %v3387_v6  ;;  %v3389_v44 = vpop.eup %3388 }
 0x50b   :  { %v1872_v42 = vadd.f32 1.0, %v3389_v44 }
 0x50c   :  { %3390 = vrcp.f32 %v1865_v28 }
 0x50d   :  { %3392 = vrcp.f32 %v1872_v42  ;;  %v4654_v42 = vld [vmem:[#allocation7 + $0x80] ss:$16 sps:$4 sm:$0xff]  }
 0x516   :  { %v3391_v30 = vpop.eup %3390 }
 0x517   :  { %v1876_v32 = vmul.f32 %v3391_v30, %v1875_v56  ;;  %v3393_v25 = vpop.eup %3392  ;;  %v4657_v56 = vld [vmem:[#allocation7 + $0x88] ss:$16 sps:$4 sm:$0xff]  }
 0x518   :  { %v1879_v51 = vsub.f32 1.0, %v3393_v25  ;;  %v1881_v17 = vmul.f32 %v3393_v25, %v4445_v31  ;;  %v4610_v31 = vld [vmem:[#allocation7 + $0x2c] ss:$16 sps:$4 sm:$0xff]  }
 0x519   :  { %v1877_v18 = vadd.f32 %v1876_v32, %v5446_v55  ;;  %v4660_v55 = vld [vmem:[#allocation7 + $0xa4] ss:$16 sps:$4 sm:$0xff]  }
 0x51b   :  { %3394 = vtanh.f32 %v1877_v18  ;;  %v4663_v18 = vld [vmem:[#allocation7 + $0xac] ss:$16 sps:$4 sm:$0xff]  }
 0x525   :  { %v3395_v14 = vpop.eup %3394 }
 0x526   :  { %v1880_v52 = vmul.f32 %v3395_v14, %v1879_v51 }
 0x528   :  { %v4593_v33 = vadd.f32 %v1881_v17, %v1880_v52  ;;  %v4667_v17 = vld [vmem:[#allocation7 + $0xa0] ss:$16 sps:$4 sm:$0xff]  }
 0x52a   :  { %v4597_v27 = vpack.c.bf16 %v4593_v33, %v4593_v33 }
 0x52c   :  { %2022 = vmatmul.mubr.bf16.vlgmr.msra.gmra.mrb[32].mxu0 %v4597_v27  ;;  %3071 = vmatmul.mubr.bf16.vlgmr.msra.gmra.mrb[56].mxu1 %v4597_v27 }
 0x52d   :  { %2094 = vmatpush1.bf16.msra.mxu0 %v4601_v11  ;;  %2135 = vmatpush1.bf16.msra.mxu1 %v4604_v13 }
 0x52e   :  { %2095 = vmatprep.subr.bf16.mxu0 %v4607_v58  ;;  %2136 = vmatprep.subr.bf16.mxu1 %v4610_v31 }
 0x531   :  { %2096 = vmatpush1.bf16.msra.mxu0 %v4613_v24  ;;  %2137 = vmatpush1.bf16.msra.mxu1 %v4616_v22 }
 0x532   :  { %2097 = vmatprep.subr.bf16.mxu0 %v4619_v59  ;;  %2138 = vmatprep.subr.bf16.mxu1 %v4622_v8 }
 0x535   :  { %2098 = vmatpush1.bf16.msra.mxu0 %v4625_v1  ;;  %2139 = vmatpush1.bf16.msra.mxu1 %v4628_v61 }
 0x536   :  { %2099 = vmatprep.subr.bf16.mxu0 %v4631_v2  ;;  %2140 = vmatprep.subr.bf16.mxu1 %v4634_v62 }
 0x539   :  { %2100 = vmatpush1.bf16.msra.mxu0 %v4637_v3  ;;  %2141 = vmatpush1.bf16.msra.mxu1 %v4640_v53 }
 0x53a   :  { %2101 = vmatprep.subr.bf16.mxu0 %v4643_v7  ;;  %2142 = vmatprep.subr.bf16.mxu1 %v4646_v16 }
 0x53c   :  { %v1918_v4 = vpop.f32.mrb[28].mxu0  ;;  %v4649_v26 = vpop.f32.mrb[52].mxu1 }
 0x53d   :  { %v1919_v6 = vadd.f32 %v1918_v4, %v4311_v12  ;;  %v1920_v28 = vpop.f32.mrb[29].mxu0  ;;  %v4652_v44 = vpop.f32.mrb[53].mxu1  ;;  %2102 = vmatpush1.bf16.msra.mxu0 %v4654_v42  ;;  %2143 = vmatpush1.bf16.msra.mxu1 %v4657_v56  ;;  %v4670_v4 = vld [vmem:[#allocation7 + $0xa8] ss:$16 sps:$4 sm:$0xff]  }
 0x53e   :  { %v1922_v30 = vpop.f32.mrb[30].mxu0  ;;  %v1963_v32 = vpop.f32.mrb[54].mxu1  ;;  %2103 = vmatprep.subr.bf16.mxu0 %v4660_v55  ;;  %2144 = vmatprep.subr.bf16.mxu1 %v4663_v18  ;;  %v1921_v52 = vadd.f32 %v1920_v28, %v4317_v15  ;;  %v4682_v28 = vld [vmem:[#allocation7 + $0xc8] ss:$16 sps:$4 sm:$0xff]  }
 0x53f   :  { %v2819_v25 = vmul.f32 -1.442695, %v1919_v6  ;;  %v1923_v51 = vpop.f32.mrb[31].mxu0  ;;  %v1964_v14 = vpop.f32.mrb[55].mxu1  ;;  %v4673_v30 = vld [vmem:[#allocation7 + $0xc4] ss:$16 sps:$4 sm:$0xff]  }
 0x540   :  { %5447 = vst [vmem:[#allocation14_spill] sm:$0xff] %v4673_v30  ;;  %v4676_v32 = vld [vmem:[#allocation7 + $0xcc] ss:$16 sps:$4 sm:$0xff]   ;;  %v2820_v6 = vmul.f32 -1.442695, %v1921_v52  ;;  %5450 = vst [vmem:[#allocation17_spill] sm:$0xff] %v4682_v28 }
 0x541   :  { %3396 = vpow2.f32 %v2819_v25  ;;  %2104 = vmatpush1.bf16.msra.mxu0 %v4667_v17  ;;  %2145 = vmatpush1.bf16.msra.mxu1 %v4670_v4  ;;  %5448 = vst [vmem:[#allocation15_spill] sm:$0xff] %v4676_v32  ;;  %v4679_v51 = vld [vmem:[#allocation7 + $0xc0] ss:$16 sps:$4 sm:$0xff]   ;;  %v4685_v25 = vld [vmem:[#allocation7 + $0xe4] ss:$16 sps:$4 sm:$0xff]  }
 0x542   :  { %2105 = vmatprep.subr.bf16.mxu0 %v4673_v30  ;;  %2146 = vmatprep.subr.bf16.mxu1 %v4676_v32  ;;  %5449 = vst [vmem:[#allocation16_spill] sm:$0xff] %v4679_v51  ;;  %5451 = vst [vmem:[#allocation18_spill] sm:$0xff] %v4685_v25  ;;  %v4688_v14 = vld [vmem:[#allocation7 + $0xec] ss:$16 sps:$4 sm:$0xff]   ;;  %3398 = vpow2.f32 %v2820_v6  ;;  %v4694_v52 = vld [vmem:[#allocation7 + $0xe8] ss:$16 sps:$4 sm:$0xff]  }
 0x543   :  { %5452 = vst [vmem:[#allocation19_spill] sm:$0xff] %v4688_v14  ;;  %5454 = vst [vmem:[#allocation27_spill] sm:$0xff] %v4694_v52  ;;  %v4706_v6 = vld [vmem:[#allocation7 + $0x108] ss:$16 sps:$4 sm:$0xff]   ;;  %v4743_v30 = vld [vmem:[#allocation7 + $0x160] ss:$16 sps:$4 sm:$0xff]  }
 0x544   :  { %5458 = vst [vmem:[#allocation34_spill] sm:$0xff] %v4706_v6  ;;  %5469 = vst [vmem:[#allocation52_spill] sm:$0xff] %v4743_v30 }
 0x545   :  { %2106 = vmatpush1.bf16.msra.mxu0 %v4679_v51  ;;  %2147 = vmatpush1.bf16.msra.mxu1 %v4682_v28  ;;  %v4697_v51 = vld [vmem:[#allocation7 + $0x104] ss:$16 sps:$4 sm:$0xff]   ;;  %v4700_v28 = vld [vmem:[#allocation7 + $0x10c] ss:$16 sps:$4 sm:$0xff]  }
 0x546   :  { %2107 = vmatprep.subr.bf16.mxu0 %v4685_v25  ;;  %2148 = vmatprep.subr.bf16.mxu1 %v4688_v14  ;;  %5455 = vst [vmem:[#allocation31_spill] sm:$0xff] %v4697_v51  ;;  %5456 = vst [vmem:[#allocation32_spill] sm:$0xff] %v4700_v28  ;;  %v4703_v14 = vld [vmem:[#allocation7 + $0x100] ss:$16 sps:$4 sm:$0xff]  }
 0x547   :  { %5457 = vst [vmem:[#allocation33_spill] sm:$0xff] %v4703_v14 }
 0x549   :  { %2108 = vmatpush1.bf16.msra.mxu0 %v4691_v10  ;;  %2149 = vmatpush1.bf16.msra.mxu1 %v4694_v52  ;;  %v4709_v52 = vld [vmem:[#allocation7 + $0x124] ss:$16 sps:$4 sm:$0xff]  }
 0x54a   :  { %2109 = vmatprep.subr.bf16.mxu0 %v4697_v51  ;;  %2150 = vmatprep.subr.bf16.mxu1 %v4700_v28  ;;  %5459 = vst [vmem:[#allocation35_spill] sm:$0xff] %v4709_v52  ;;  %v4712_v51 = vld [vmem:[#allocation7 + $0x12c] ss:$16 sps:$4 sm:$0xff]   ;;  %v4715_v28 = vld [vmem:[#allocation7 + $0x120] ss:$16 sps:$4 sm:$0xff]  }
 0x54b   :  { %v3397_v25 = vpop.eup %3396  ;;  %5460 = vst [vmem:[#allocation36_spill] sm:$0xff] %v4712_v51  ;;  %5461 = vst [vmem:[#allocation37_spill] sm:$0xff] %v4715_v28  ;;  %v4721_v10 = vld [vmem:[#allocation7 + $0x144] ss:$16 sps:$4 sm:$0xff]  }
 0x54c   :  { %v1969_v32 = vadd.f32 1.0, %v3397_v25  ;;  %v4718_v25 = vld [vmem:[#allocation7 + $0x128] ss:$16 sps:$4 sm:$0xff]   ;;  %5463 = vst [vmem:[#allocation39_spill] sm:$0xff] %v4721_v10 }
 0x54d   :  { %2110 = vmatpush1.bf16.msra.mxu0 %v4703_v14  ;;  %2151 = vmatpush1.bf16.msra.mxu1 %v4706_v6  ;;  %5462 = vst [vmem:[#allocation38_spill] sm:$0xff] %v4718_v25  ;;  %v3399_v14 = vpop.eup %3398  ;;  %v4727_v6 = vld [vmem:[#allocation7 + $0x140] ss:$16 sps:$4 sm:$0xff]  }
 0x54e   :  { %3400 = vrcp.f32 %v1969_v32  ;;  %2111 = vmatprep.subr.bf16.mxu0 %v4709_v52  ;;  %2152 = vmatprep.subr.bf16.mxu1 %v4712_v51  ;;  %v4724_v32 = vld [vmem:[#allocation7 + $0x14c] ss:$16 sps:$4 sm:$0xff]   ;;  %v1975_v52 = vadd.f32 1.0, %v3399_v14  ;;  %5465 = vst [vmem:[#allocation43_spill] sm:$0xff] %v4727_v6  ;;  %v4730_v51 = vld [vmem:[#allocation7 + $0x148] ss:$16 sps:$4 sm:$0xff]  }
 0x54f   :  { %5464 = vst [vmem:[#allocation40_spill] sm:$0xff] %v4724_v32  ;;  %5466 = vst [vmem:[#allocation44_spill] sm:$0xff] %v4730_v51 }
 0x550   :  { %3402 = vrcp.f32 %v1975_v52  ;;  %v4758_v52 = vld [vmem:[#allocation7 + $0x188] ss:$16 sps:$4 sm:$0xff]  }
 0x551   :  { %2112 = vmatpush1.bf16.msra.mxu0 %v4715_v28  ;;  %2153 = vmatpush1.bf16.msra.mxu1 %v4718_v25  ;;  %v4733_v28 = vld [vmem:[#allocation7 + $0x164] ss:$16 sps:$4 sm:$0xff]   ;;  %v4736_v25 = vld [vmem:[#allocation7 + $0x16c] ss:$16 sps:$4 sm:$0xff]   ;;  %5474 = vst [vmem:[#allocation58_spill] sm:$0xff] %v4758_v52 }
 0x552   :  { %2113 = vmatprep.subr.bf16.mxu0 %v4721_v10  ;;  %2154 = vmatprep.subr.bf16.mxu1 %v4724_v32  ;;  %5467 = vst [vmem:[#allocation50_spill] sm:$0xff] %v4733_v28  ;;  %5468 = vst [vmem:[#allocation51_spill] sm:$0xff] %v4736_v25  ;;  %v1962_v32 = vadd.f32 %v4652_v44, %v5410_v63  ;;  %v1960_v10 = vadd.f32 %v4649_v26, %v4352_v54  ;;  %v4755_v26 = vld [vmem:[#allocation7 + $0x180] ss:$16 sps:$4 sm:$0xff]  }
 0x553   :  { %5473 = vst [vmem:[#allocation57_spill] sm:$0xff] %v4755_v26 }
 0x555   :  { %2114 = vmatpush1.bf16.msra.mxu0 %v4727_v6  ;;  %2155 = vmatpush1.bf16.msra.mxu1 %v4730_v51  ;;  %v4746_v51 = vld [vmem:[#allocation7 + $0x168] ss:$16 sps:$4 sm:$0xff]  }
 0x556   :  { %2115 = vmatprep.subr.bf16.mxu0 %v4733_v28  ;;  %2156 = vmatprep.subr.bf16.mxu1 %v4736_v25  ;;  %5470 = vst [vmem:[#allocation53_spill] sm:$0xff] %v4746_v51  ;;  %v4749_v28 = vld [vmem:[#allocation7 + $0x184] ss:$16 sps:$4 sm:$0xff]   ;;  %v4752_v25 = vld [vmem:[#allocation7 + $0x18c] ss:$16 sps:$4 sm:$0xff]  }
 0x557   :  { %5471 = vst [vmem:[#allocation54_spill] sm:$0xff] %v4749_v28  ;;  %5472 = vst [vmem:[#allocation56_spill] sm:$0xff] %v4752_v25 }
 0x558   :  { %v3401_v14 = vpop.eup %3400 }
 0x559   :  { %v1978_v6 = vmul.f32 %v3401_v14, %v1962_v32  ;;  %2116 = vmatpush1.bf16.msra.mxu0 %v4743_v30  ;;  %2157 = vmatpush1.bf16.msra.mxu1 %v4746_v51  ;;  %v4761_v32 = vld [vmem:[#allocation7 + $0x1a4] ss:$16 sps:$4 sm:$0xff]   ;;  %v4764_v14 = vld [vmem:[#allocation7 + $0x1ac] ss:$16 sps:$4 sm:$0xff]  }
 0x55a   :  { %2117 = vmatprep.subr.bf16.mxu0 %v4749_v28  ;;  %2158 = vmatprep.subr.bf16.mxu1 %v4752_v25  ;;  %5475 = vst [vmem:[#allocation60_spill] sm:$0xff] %v4761_v32  ;;  %5476 = vst [vmem:[#allocation61_spill] sm:$0xff] %v4764_v14  ;;  %v4767_v28 = vld [vmem:[#allocation7 + $0x1a0] ss:$16 sps:$4 sm:$0xff]  }
 0x55b   :  { %v1979_v44 = vadd.f32 %v1978_v6, %v1960_v10  ;;  %5477 = vst [vmem:[#allocation62_spill] sm:$0xff] %v4767_v28  ;;  %v4770_v10 = vld [vmem:[#allocation7 + $0x1a8] ss:$16 sps:$4 sm:$0xff]   ;;  %v4773_v6 = vld [vmem:[#allocation7 + $0x1c4] ss:$16 sps:$4 sm:$0xff]  }
 0x55c   :  { %5478 = vst [vmem:[#allocation63_spill] sm:$0xff] %v4770_v10  ;;  %5479 = vst [vmem:[#allocation64_spill] sm:$0xff] %v4773_v6  ;;  %v4788_v25 = vld [vmem:[#allocation7 + $0x1e0] ss:$16 sps:$4 sm:$0xff]  }
 0x55d   :  { %3404 = vtanh.f32 %v1979_v44  ;;  %2118 = vmatpush1.bf16.msra.mxu0 %v4755_v26  ;;  %2159 = vmatpush1.bf16.msra.mxu1 %v4758_v52  ;;  %v4776_v44 = vld [vmem:[#allocation7 + $0x1cc] ss:$16 sps:$4 sm:$0xff]   ;;  %v4779_v52 = vld [vmem:[#allocation7 + $0x1c0] ss:$16 sps:$4 sm:$0xff]  }
 0x55e   :  { %2119 = vmatprep.subr.bf16.mxu0 %v4761_v32  ;;  %2160 = vmatprep.subr.bf16.mxu1 %v4764_v14  ;;  %5480 = vst [vmem:[#allocation65_spill] sm:$0xff] %v4776_v44  ;;  %v3403_v32 = vpop.eup %3402  ;;  %5481 = vst [vmem:[#allocation66_spill] sm:$0xff] %v4779_v52  ;;  %v4782_v14 = vld [vmem:[#allocation7 + $0x1c8] ss:$16 sps:$4 sm:$0xff]  }
 0x55f   :  { %5482 = vst [vmem:[#allocation67_spill] sm:$0xff] %v4782_v14  ;;  %v1983_v26 = vmul.f32 %v3403_v32, %v4520_v57  ;;  %v5507_v57 = vld [vmem:[#allocation50_spill] sm:$0xff] }
 0x561   :  { %2120 = vmatpush1.bf16.msra.mxu0 %v4767_v28  ;;  %2161 = vmatpush1.bf16.msra.mxu1 %v4770_v10  ;;  %v1981_v10 = vsub.f32 1.0, %v3403_v32 }
 0x562   :  { %2121 = vmatprep.subr.bf16.mxu0 %v4773_v6  ;;  %2162 = vmatprep.subr.bf16.mxu1 %v4776_v44  ;;  %v4791_v44 = vld [vmem:[#allocation7 + $0x1e8] ss:$16 sps:$4 sm:$0xff]  }
 0x565   :  { %2122 = vmatpush1.bf16.msra.mxu0 %v4779_v52  ;;  %2163 = vmatpush1.bf16.msra.mxu1 %v4782_v14 }
 0x566   :  { %2123 = vmatprep.subr.bf16.mxu0 %v4212_v20  ;;  %2164 = vmatprep.subr.bf16.mxu1 %v5373_v43  ;;  %v3544_v43 = vld [vmem:[#allocation6] ss:$12 sps:$4 sm:$0xff]  }
 0x567   :  { %v3405_v28 = vpop.eup %3404 }
 0x568   :  { %v1982_v6 = vmul.f32 %v3405_v28, %v1981_v10  ;;  %v3545_v28 = vld [vmem:[#allocation6 + $0x1c] ss:$12 sps:$4 sm:$0xff]  }
 0x569   :  { %2124 = vmatpush1.bf16.msra.mxu0 %v4788_v25  ;;  %2165 = vmatpush1.bf16.msra.mxu1 %v4791_v44 }
 0x56a   :  { %v4794_v52 = vadd.f32 %v1983_v26, %v1982_v6  ;;  %2198 = vmatprep.subr.bf16.mxu0 %v5425_v34  ;;  %3074 = vmatprep.subr.bf16.mxu1 %v5426_v21  ;;  %v3546_v34 = vld [vmem:[#allocation6 + $0x18] ss:$12 sps:$4 sm:$0xff]   ;;  %v3547_v26 = vld [vmem:[#allocation6 + $0x34] ss:$12 sps:$4 sm:$0xff]  }
 0x56c   :  { %v2092_v20 = vpack.c.bf16 %v4794_v52, %v4794_v52 }
 0x56e   :  { %2125 = vmatprep.mubr.bf16.mxu0 %v2092_v20  ;;  %2166 = vmatprep.mubr.bf16.mxu1 %v2092_v20 }
 0x56f   :  { %2126 = vmatmul.mubr.bf16.vlgmr.msra.gmra.mrb[36].mxu0 %v4597_v27  ;;  %2167 = vmatmul.mubr.bf16.vlgmr.msra.gmra.mrb[60].mxu1 %v4597_v27  ;;  %v3548_v27 = vld [vmem:[#allocation6 + $0x30] ss:$12 sps:$4 sm:$0xff]  }
 0x570   :  { %2199 = vmatpush1.bf16.msra.mxu0 %v3544_v43  ;;  %3075 = vmatpush3.bf16.msra.mxu1 %v4529_v29  ;;  %v3549_v29 = vld [vmem:[#allocation6 + $0x4c] ss:$12 sps:$4 sm:$0xff]  }
 0x571   :  { %2200 = vmatprep.subr.bf16.mxu0 %v3545_v28  ;;  %3076 = vmatprep.subr.bf16.mxu1 %v5426_v21 }
 0x572   :  { %2230 = vmatprep.mubr.bf16.mxu0 %v5429_v19  ;;  %3090 = vmatprep.mubr.msk.bf16.mxu1 %vm3658_vm9, %v5426_v21  ;;  %v3550_v19 = vld [vmem:[#allocation6 + $0x48] ss:$12 sps:$4 sm:$0xff]  }
 0x574   :  { %2201 = vmatpush1.bf16.msra.mxu0 %v3546_v34  ;;  %3077 = vmatpush3.bf16.msra.mxu1 %v4538_v9  ;;  %v5485_v34 = vld [vmem:[#allocation29_spill] sm:$0xff] }
 0x575   :  { %2202 = vmatprep.subr.bf16.mxu0 %v3547_v26  ;;  %3078 = vmatprep.subr.bf16.mxu1 %v5426_v21 }
 0x578   :  { %2203 = vmatpush1.bf16.msra.mxu0 %v3548_v27  ;;  %3079 = vmatpush3.bf16.msra.mxu1 %v4544_v46 }
 0x579   :  { %2204 = vmatprep.subr.bf16.mxu0 %v3549_v29  ;;  %3080 = vmatprep.subr.bf16.mxu1 %v5426_v21 }
 0x57c   :  { %2205 = vmatpush1.bf16.msra.mxu0 %v3550_v19  ;;  %3081 = vmatpush3.bf16.msra.mxu1 %v4550_v36  ;;  %v5483_v36 = vld [vmem:[#allocation23_spill] sm:$0xff] }
 0x57d   :  { %2206 = vmatprep.subr.bf16.mxu0 %v5435_v5  ;;  %3082 = vmatprep.subr.bf16.mxu1 %v5426_v21 }
 0x580   :  { %2207 = vmatpush1.bf16.msra.mxu0 %v5436_v35  ;;  %3083 = vmatpush3.bf16.msra.mxu1 %v4556_v38 }
 0x581   :  { %2208 = vmatprep.subr.bf16.mxu0 %v5437_v39  ;;  %3084 = vmatprep.subr.bf16.mxu1 %v5426_v21  ;;  %v5484_v39 = vld [vmem:[#allocation24_spill] sm:$0xff] }
 0x584   :  { %2209 = vmatpush1.bf16.msra.mxu0 %v5438_v40  ;;  %3085 = vmatpush3.bf16.msra.mxu1 %v4562_v41 }
 0x585   :  { %2210 = vmatprep.subr.bf16.mxu0 %v5439_v60  ;;  %3086 = vmatprep.subr.bf16.mxu1 %v5426_v21 }
 0x588   :  { %2211 = vmatpush1.bf16.msra.mxu0 %v5440_v47  ;;  %3087 = vmatpush3.bf16.msra.mxu1 %v4568_v37 }
 0x589   :  { %2212 = vmatprep.subr.bf16.mxu0 %v5441_v45  ;;  %3088 = vmatprep.subr.bf16.mxu1 %v5426_v21  ;;  %v5509_v21 = vld [vmem:[#allocation54_spill] sm:$0xff] }
 0x58c   :  { %2213 = vmatpush1.bf16.msra.mxu0 %v5442_v0  ;;  %3089 = vmatpush3.bf16.msra.mxu1 %v4574_v49 }
 0x58d   :  { %2302 = vmatprep.subr.bf16.mxu0 %v4577_v23  ;;  %2343 = vmatprep.subr.bf16.mxu1 %v4580_v48 }
 0x5ff   :  { %v2023_v9 = vpop.f32.mrb[32].mxu0  ;;  %v2064_v46 = vpop.f32.mrb[56].mxu1 }
 0x600   :  { %v2070_v5 = vadd.f32 %v2023_v9, %v5483_v36  ;;  %v2025_v35 = vpop.f32.mrb[33].mxu0  ;;  %v3072_v38 = vpop.f32.mrb[57].mxu1  ;;  %v2084_v20 = vadd.f32 %v4588_v50, %v2064_v46 }
 0x601   :  { %v2077_v40 = vadd.f32 %v2025_v35, %v5484_v39  ;;  %v2027_v41 = vpop.f32.mrb[34].mxu0  ;;  %v2067_v60 = vpop.f32.mrb[58].mxu1 }
 0x602   :  { %v2821_v47 = vmul.f32 -1.442695, %v2070_v5  ;;  %v2028_v37 = vpop.f32.mrb[35].mxu0  ;;  %v3073_v45 = vpop.f32.mrb[59].mxu1 }
 0x603   :  { %v2822_v0 = vmul.f32 -1.442695, %v2077_v40 }
 0x604   :  { %3406 = vpow2.f32 %v2821_v47 }
 0x605   :  { %3408 = vpow2.f32 %v2822_v0 }
 0x60e   :  { %v3407_v49 = vpop.eup %3406 }
 0x60f   :  { %v2074_v32 = vadd.f32 1.0, %v3407_v49  ;;  %v3409_v10 = vpop.eup %3408  ;;  %v5487_v49 = vld [vmem:[#allocation14_spill] sm:$0xff] }
 0x610   :  { %v2081_v6 = vadd.f32 1.0, %v3409_v10 }
 0x611   :  { %3410 = vrcp.f32 %v2074_v32  ;;  %v5488_v32 = vld [vmem:[#allocation15_spill] sm:$0xff] }
 0x612   :  { %3412 = vrcp.f32 %v2081_v6  ;;  %v5489_v6 = vld [vmem:[#allocation16_spill] sm:$0xff] }
 0x61b   :  { %v3411_v43 = vpop.eup %3410 }
 0x61c   :  { %v2085_v28 = vmul.f32 %v3411_v43, %v2084_v20  ;;  %v3413_v27 = vpop.eup %3412  ;;  %v5490_v20 = vld [vmem:[#allocation17_spill] sm:$0xff]  ;;  %v5491_v43 = vld [vmem:[#allocation18_spill] sm:$0xff] }
 0x61d   :  { %v2088_v29 = vsub.f32 1.0, %v3413_v27  ;;  %v2090_v36 = vmul.f32 %v3413_v27, %v4593_v33  ;;  %v5495_v27 = vld [vmem:[#allocation31_spill] sm:$0xff] }
 0x61e   :  { %v2086_v26 = vadd.f32 %v2085_v28, %v5485_v34  ;;  %v5492_v28 = vld [vmem:[#allocation19_spill] sm:$0xff]  ;;  %v5493_v34 = vld [vmem:[#allocation20_spill] sm:$0xff] }
 0x620   :  { %3414 = vtanh.f32 %v2086_v26  ;;  %v5494_v26 = vld [vmem:[#allocation27_spill] sm:$0xff] }
 0x62a   :  { %v3415_v19 = vpop.eup %3414 }
 0x62b   :  { %v2089_v9 = vmul.f32 %v3415_v19, %v2088_v29  ;;  %v5496_v29 = vld [vmem:[#allocation32_spill] sm:$0xff] }
 0x62d   :  { %v4835_v5 = vadd.f32 %v2090_v36, %v2089_v9  ;;  %v5497_v36 = vld [vmem:[#allocation33_spill] sm:$0xff] }
 0x62f   :  { %5486 = vst [vmem:[#allocation68_spill] sm:$0xff] %v4835_v5  ;;  %v4839_v35 = vpack.c.bf16 %v4835_v5, %v4835_v5 }
 0x631   :  { %2231 = vmatmul.mubr.bf16.vlgmr.msra.gmra.mrb[40].mxu0 %v4839_v35  ;;  %3091 = vmatmul.mubr.bf16.vlgmr.msra.gmra.mrb[64].mxu1 %v4839_v35 }
 0x632   :  { %2303 = vmatpush1.bf16.msra.mxu0 %v4601_v11  ;;  %2344 = vmatpush1.bf16.msra.mxu1 %v4604_v13 }
 0x633   :  { %2304 = vmatprep.subr.bf16.mxu0 %v4607_v58  ;;  %2345 = vmatprep.subr.bf16.mxu1 %v4610_v31 }
 0x636   :  { %2305 = vmatpush1.bf16.msra.mxu0 %v4613_v24  ;;  %2346 = vmatpush1.bf16.msra.mxu1 %v4616_v22 }
 0x637   :  { %2306 = vmatprep.subr.bf16.mxu0 %v4619_v59  ;;  %2347 = vmatprep.subr.bf16.mxu1 %v4622_v8 }
 0x63a   :  { %2307 = vmatpush1.bf16.msra.mxu0 %v4625_v1  ;;  %2348 = vmatpush1.bf16.msra.mxu1 %v4628_v61 }
 0x63b   :  { %2308 = vmatprep.subr.bf16.mxu0 %v4631_v2  ;;  %2349 = vmatprep.subr.bf16.mxu1 %v4634_v62 }
 0x63e   :  { %2309 = vmatpush1.bf16.msra.mxu0 %v4637_v3  ;;  %2350 = vmatpush1.bf16.msra.mxu1 %v4640_v53 }
 0x63f   :  { %2310 = vmatprep.subr.bf16.mxu0 %v4643_v7  ;;  %2351 = vmatprep.subr.bf16.mxu1 %v4646_v16 }
 0x642   :  { %v2127_v33 = vpop.f32.mrb[36].mxu0  ;;  %v2168_v46 = vpop.f32.mrb[60].mxu1  ;;  %2311 = vmatpush1.bf16.msra.mxu0 %v4654_v42  ;;  %2352 = vmatpush1.bf16.msra.mxu1 %v4657_v56 }
 0x643   :  { %v2128_v38 = vadd.f32 %v2127_v33, %v4311_v12  ;;  %v2129_v39 = vpop.f32.mrb[37].mxu0  ;;  %v2170_v40 = vpop.f32.mrb[61].mxu1  ;;  %2312 = vmatprep.subr.bf16.mxu0 %v4660_v55  ;;  %2353 = vmatprep.subr.bf16.mxu1 %v4663_v18  ;;  %v5498_v33 = vld [vmem:[#allocation34_spill] sm:$0xff]  ;;  %v2169_v5 = vadd.f32 %v2168_v46, %v4352_v54  ;;  %v5517_v46 = vld [vmem:[#allocation64_spill] sm:$0xff] }
 0x644   :  { %v2131_v41 = vpop.f32.mrb[38].mxu0  ;;  %v2172_v60 = vpop.f32.mrb[62].mxu1  ;;  %v2130_v0 = vadd.f32 %v2129_v39, %v4317_v15  ;;  %v5500_v39 = vld [vmem:[#allocation36_spill] sm:$0xff]  ;;  %v5508_v15 = vld [vmem:[#allocation51_spill] sm:$0xff] }
 0x645   :  { %v2823_v47 = vmul.f32 -1.442695, %v2128_v38  ;;  %v2132_v37 = vpop.f32.mrb[39].mxu0  ;;  %v2173_v45 = vpop.f32.mrb[63].mxu1  ;;  %v5499_v38 = vld [vmem:[#allocation35_spill] sm:$0xff]  ;;  %v5501_v41 = vld [vmem:[#allocation37_spill] sm:$0xff] }
 0x646   :  { %2313 = vmatpush1.bf16.msra.mxu0 %v4667_v17  ;;  %2354 = vmatpush1.bf16.msra.mxu1 %v4670_v4  ;;  %v2824_v10 = vmul.f32 -1.442695, %v2130_v0  ;;  %v5502_v60 = vld [vmem:[#allocation38_spill] sm:$0xff]  ;;  %v5504_v37 = vld [vmem:[#allocation40_spill] sm:$0xff]  ;;  %v5505_v0 = vld [vmem:[#allocation43_spill] sm:$0xff] }
 0x647   :  { %3416 = vpow2.f32 %v2823_v47  ;;  %2314 = vmatprep.subr.bf16.mxu0 %v5487_v49  ;;  %2355 = vmatprep.subr.bf16.mxu1 %v5488_v32  ;;  %v5503_v47 = vld [vmem:[#allocation39_spill] sm:$0xff] }
 0x648   :  { %3418 = vpow2.f32 %v2824_v10  ;;  %v5506_v10 = vld [vmem:[#allocation44_spill] sm:$0xff] }
 0x64a   :  { %2315 = vmatpush1.bf16.msra.mxu0 %v5489_v6  ;;  %2356 = vmatpush1.bf16.msra.mxu1 %v5490_v20 }
 0x64b   :  { %2316 = vmatprep.subr.bf16.mxu0 %v5491_v43  ;;  %2357 = vmatprep.subr.bf16.mxu1 %v5492_v28 }
 0x64e   :  { %2317 = vmatpush1.bf16.msra.mxu0 %v5493_v34  ;;  %2358 = vmatpush1.bf16.msra.mxu1 %v5494_v26 }
 0x64f   :  { %2318 = vmatprep.subr.bf16.mxu0 %v5495_v27  ;;  %2359 = vmatprep.subr.bf16.mxu1 %v5496_v29 }
 0x651   :  { %v3417_v19 = vpop.eup %3416 }
 0x652   :  { %v2178_v9 = vadd.f32 1.0, %v3417_v19  ;;  %2319 = vmatpush1.bf16.msra.mxu0 %v5497_v36  ;;  %2360 = vmatpush1.bf16.msra.mxu1 %v5498_v33  ;;  %v3419_v45 = vpop.eup %3418 }
 0x653   :  { %2320 = vmatprep.subr.bf16.mxu0 %v5499_v38  ;;  %2361 = vmatprep.subr.bf16.mxu1 %v5500_v39  ;;  %v2184_v19 = vadd.f32 1.0, %v3419_v45 }
 0x654   :  { %3420 = vrcp.f32 %v2178_v9  ;;  %v2171_v9 = vadd.f32 %v2170_v40, %v5410_v63  ;;  %v5513_v40 = vld [vmem:[#allocation60_spill] sm:$0xff]  ;;  %v5514_v63 = vld [vmem:[#allocation61_spill] sm:$0xff] }
 0x655   :  { %3422 = vrcp.f32 %v2184_v19 }
 0x656   :  { %2321 = vmatpush1.bf16.msra.mxu0 %v5501_v41  ;;  %2362 = vmatpush1.bf16.msra.mxu1 %v5502_v60 }
 0x657   :  { %2322 = vmatprep.subr.bf16.mxu0 %v5503_v47  ;;  %2363 = vmatprep.subr.bf16.mxu1 %v5504_v37 }
 0x65a   :  { %2323 = vmatpush1.bf16.msra.mxu0 %v5505_v0  ;;  %2364 = vmatpush1.bf16.msra.mxu1 %v5506_v10  ;;  %v5510_v0 = vld [vmem:[#allocation56_spill] sm:$0xff]  ;;  %v5511_v10 = vld [vmem:[#allocation57_spill] sm:$0xff] }
 0x65b   :  { %2324 = vmatprep.subr.bf16.mxu0 %v5507_v57  ;;  %2365 = vmatprep.subr.bf16.mxu1 %v5508_v15  ;;  %v5512_v57 = vld [vmem:[#allocation58_spill] sm:$0xff] }
 0x65e   :  { %v3421_v12 = vpop.eup %3420  ;;  %2325 = vmatpush1.bf16.msra.mxu0 %v4743_v30  ;;  %2366 = vmatpush1.bf16.msra.mxu1 %v4746_v51  ;;  %v5515_v30 = vld [vmem:[#allocation62_spill] sm:$0xff]  ;;  %v5516_v51 = vld [vmem:[#allocation63_spill] sm:$0xff] }
 0x65f   :  { %v2187_v50 = vmul.f32 %v3421_v12, %v2171_v9  ;;  %2326 = vmatprep.subr.bf16.mxu0 %v5509_v21  ;;  %2367 = vmatprep.subr.bf16.mxu1 %v5510_v0  ;;  %v5518_v12 = vld [vmem:[#allocation65_spill] sm:$0xff]  ;;  %v3423_v19 = vpop.eup %3422  ;;  %v5519_v9 = vld [vmem:[#allocation66_spill] sm:$0xff] }
 0x661   :  { %v2188_v45 = vadd.f32 %v2187_v50, %v2169_v5  ;;  %v4905_v50 = vld [vmem:[#allocation7 + $0x1e4] ss:$16 sps:$4 sm:$0xff]   ;;  %v4908_v5 = vld [vmem:[#allocation7 + $0x1ec] ss:$16 sps:$4 sm:$0xff]  }
 0x662   :  { %2327 = vmatpush1.bf16.msra.mxu0 %v5511_v10  ;;  %2368 = vmatpush1.bf16.msra.mxu1 %v5512_v57  ;;  %5520 = vst [vmem:[#allocation69_spill] sm:$0xff] %v4905_v50 }
 0x663   :  { %3424 = vtanh.f32 %v2188_v45  ;;  %2328 = vmatprep.subr.bf16.mxu0 %v5513_v40  ;;  %2369 = vmatprep.subr.bf16.mxu1 %v5514_v63  ;;  %v2190_v45 = vsub.f32 1.0, %v3423_v19 }
 0x666   :  { %2329 = vmatpush1.bf16.msra.mxu0 %v5515_v30  ;;  %2370 = vmatpush1.bf16.msra.mxu1 %v5516_v51 }
 0x667   :  { %2330 = vmatprep.subr.bf16.mxu0 %v5517_v46  ;;  %2371 = vmatprep.subr.bf16.mxu1 %v5518_v12  ;;  %v2192_v46 = vmul.f32 %v3423_v19, %v4794_v52 }
 0x66a   :  { %2331 = vmatpush1.bf16.msra.mxu0 %v5519_v9  ;;  %2372 = vmatpush1.bf16.msra.mxu1 %v4782_v14 }
 0x66b   :  { %2332 = vmatprep.subr.bf16.mxu0 %v4905_v50  ;;  %2373 = vmatprep.subr.bf16.mxu1 %v4908_v5 }
 0x66d   :  { %v3425_v54 = vpop.eup %3424 }
 0x66e   :  { %2333 = vmatpush1.bf16.msra.mxu0 %v4788_v25  ;;  %2374 = vmatpush1.bf16.msra.mxu1 %v4791_v44  ;;  %v2191_v12 = vmul.f32 %v3425_v54, %v2190_v45  ;;  %v5521_v54 = vld [vmem:[#allocation43_spill] sm:$0xff] }
 0x66f   :  { %2405 = vmatprep.subr.bf16.mxu0 %v4577_v23  ;;  %2446 = vmatprep.subr.bf16.mxu1 %v4580_v48  ;;  %v5522_v23 = vld [vmem:[#allocation44_spill] sm:$0xff]  ;;  %v5523_v48 = vld [vmem:[#allocation50_spill] sm:$0xff] }
 0x670   :  { %v4916_v14 = vadd.f32 %v2192_v46, %v2191_v12 }
 0x672   :  { %v2301_v50 = vpack.c.bf16 %v4916_v14, %v4916_v14 }
 0x674   :  { %2334 = vmatprep.mubr.bf16.mxu0 %v2301_v50  ;;  %2375 = vmatprep.mubr.bf16.mxu1 %v2301_v50  ;;  %v5538_v50 = vld [vmem:[#allocation72_spill] sm:$0xff] }
 0x675   :  { %2335 = vmatmul.mubr.bf16.vlgmr.msra.gmra.mrb[44].mxu0 %v4839_v35  ;;  %2376 = vmatmul.mubr.bf16.vlgmr.msra.gmra.mrb[68].mxu1 %v4839_v35 }
 0x676   :  { %2406 = vmatpush1.bf16.msra.mxu0 %v4601_v11  ;;  %2447 = vmatpush1.bf16.msra.mxu1 %v4604_v13  ;;  %v5524_v11 = vld [vmem:[#allocation52_spill] sm:$0xff]  ;;  %v5525_v13 = vld [vmem:[#allocation53_spill] sm:$0xff] }
 0x677   :  { %2407 = vmatprep.subr.bf16.mxu0 %v4607_v58  ;;  %2448 = vmatprep.subr.bf16.mxu1 %v4610_v31  ;;  %v5527_v58 = vld [vmem:[#allocation65_spill] sm:$0xff] }
 0x678   :  { %v5529_v31 = vld [vmem:[#allocation69_spill] sm:$0xff] }
 0x67a   :  { %2408 = vmatpush1.bf16.msra.mxu0 %v4613_v24  ;;  %2449 = vmatpush1.bf16.msra.mxu1 %v4616_v22  ;;  %v5531_v22 = vld [vmem:[#allocation25_spill] sm:$0xff] }
 0x67b   :  { %2409 = vmatprep.subr.bf16.mxu0 %v4619_v59  ;;  %2450 = vmatprep.subr.bf16.mxu1 %v4622_v8 }
 0x67e   :  { %2410 = vmatpush1.bf16.msra.mxu0 %v4625_v1  ;;  %2451 = vmatpush1.bf16.msra.mxu1 %v4628_v61  ;;  %v5532_v61 = vld [vmem:[#allocation26_spill] sm:$0xff] }
 0x67f   :  { %2411 = vmatprep.subr.bf16.mxu0 %v4631_v2  ;;  %2452 = vmatprep.subr.bf16.mxu1 %v4634_v62 }
 0x682   :  { %2412 = vmatpush1.bf16.msra.mxu0 %v4637_v3  ;;  %2453 = vmatpush1.bf16.msra.mxu1 %v4640_v53 }
 0x683   :  { %2413 = vmatprep.subr.bf16.mxu0 %v4643_v7  ;;  %2454 = vmatprep.subr.bf16.mxu1 %v4646_v16 }
 0x686   :  { %2414 = vmatpush1.bf16.msra.mxu0 %v4654_v42  ;;  %2455 = vmatpush1.bf16.msra.mxu1 %v4657_v56 }
 0x687   :  { %2415 = vmatprep.subr.bf16.mxu0 %v4660_v55  ;;  %2456 = vmatprep.subr.bf16.mxu1 %v4663_v18 }
 0x68a   :  { %2416 = vmatpush1.bf16.msra.mxu0 %v4667_v17  ;;  %2457 = vmatpush1.bf16.msra.mxu1 %v4670_v4  ;;  %v5533_v4 = vld [vmem:[#allocation13_spill] sm:$0xff] }
 0x68b   :  { %2417 = vmatprep.subr.bf16.mxu0 %v5487_v49  ;;  %2458 = vmatprep.subr.bf16.mxu1 %v5488_v32 }
 0x68e   :  { %2418 = vmatpush1.bf16.msra.mxu0 %v5489_v6  ;;  %2459 = vmatpush1.bf16.msra.mxu1 %v5490_v20 }
 0x68f   :  { %2419 = vmatprep.subr.bf16.mxu0 %v5491_v43  ;;  %2460 = vmatprep.subr.bf16.mxu1 %v5492_v28  ;;  %v5535_v43 = vld [vmem:[#allocation68_spill] sm:$0xff] }
 0x692   :  { %2420 = vmatpush1.bf16.msra.mxu0 %v5493_v34  ;;  %2461 = vmatpush1.bf16.msra.mxu1 %v5494_v26 }
 0x693   :  { %2421 = vmatprep.subr.bf16.mxu0 %v5495_v27  ;;  %2462 = vmatprep.subr.bf16.mxu1 %v5496_v29  ;;  %v5536_v29 = vld [vmem:[#allocation70_spill] sm:$0xff] }
 0x696   :  { %2422 = vmatpush1.bf16.msra.mxu0 %v5497_v36  ;;  %2463 = vmatpush1.bf16.msra.mxu1 %v5498_v33 }
 0x697   :  { %2423 = vmatprep.subr.bf16.mxu0 %v5499_v38  ;;  %2464 = vmatprep.subr.bf16.mxu1 %v5500_v39 }
 0x69a   :  { %2424 = vmatpush1.bf16.msra.mxu0 %v5501_v41  ;;  %2465 = vmatpush1.bf16.msra.mxu1 %v5502_v60 }
 0x69b   :  { %2425 = vmatprep.subr.bf16.mxu0 %v5503_v47  ;;  %2466 = vmatprep.subr.bf16.mxu1 %v5504_v37 }
 0x69e   :  { %2426 = vmatpush1.bf16.msra.mxu0 %v5521_v54  ;;  %2467 = vmatpush1.bf16.msra.mxu1 %v5522_v23  ;;  %v5539_v54 = vld [vmem:[#allocation73_spill] sm:$0xff] }
 0x69f   :  { %2427 = vmatprep.subr.bf16.mxu0 %v5523_v48  ;;  %2468 = vmatprep.subr.bf16.mxu1 %v5508_v15  ;;  %v5526_v15 = vld [vmem:[#allocation64_spill] sm:$0xff] }
 0x6a2   :  { %2428 = vmatpush1.bf16.msra.mxu0 %v5524_v11  ;;  %2469 = vmatpush1.bf16.msra.mxu1 %v5525_v13 }
 0x6a3   :  { %2429 = vmatprep.subr.bf16.mxu0 %v5509_v21  ;;  %2470 = vmatprep.subr.bf16.mxu1 %v5510_v0  ;;  %v5528_v21 = vld [vmem:[#allocation67_spill] sm:$0xff] }
 0x6a4   :  { %v5537_v0 = vld [vmem:[#allocation71_spill] sm:$0xff] }
 0x6a6   :  { %2430 = vmatpush1.bf16.msra.mxu0 %v5511_v10  ;;  %2471 = vmatpush1.bf16.msra.mxu1 %v5512_v57 }
 0x6a7   :  { %2431 = vmatprep.subr.bf16.mxu0 %v5513_v40  ;;  %2472 = vmatprep.subr.bf16.mxu1 %v5514_v63  ;;  %v5530_v63 = vmov 0.0  }
 0x6aa   :  { %2432 = vmatpush1.bf16.msra.mxu0 %v5515_v30  ;;  %2473 = vmatpush1.bf16.msra.mxu1 %v5516_v51 }
 0x6ab   :  { %2433 = vmatprep.subr.bf16.mxu0 %v5526_v15  ;;  %2474 = vmatprep.subr.bf16.mxu1 %v5527_v58 }
 0x6ae   :  { %2434 = vmatpush1.bf16.msra.mxu0 %v5519_v9  ;;  %2475 = vmatpush1.bf16.msra.mxu1 %v5528_v21 }
 0x6af   :  { %2435 = vmatprep.subr.bf16.mxu0 %v5529_v31  ;;  %2476 = vmatprep.subr.bf16.mxu1 %v4908_v5 }
 0x6b2   :  { %2436 = vmatpush1.bf16.msra.mxu0 %v4788_v25  ;;  %2477 = vmatpush1.bf16.msra.mxu1 %v4791_v44  ;;  %v5534_v44 = vld [vmem:[#allocation30_spill] sm:$0xff] }
 0x6b3   :  { %3094 = vmatprep.subr.bf16.mxu0 %v5530_v63 }
 0x704   :  { %v2232_v57 = vpop.f32.mrb[40].mxu0  ;;  %v2273_v24 = vpop.f32.mrb[64].mxu1 }
 0x705   :  { %v2279_v59 = vadd.f32 %v2232_v57, %v5531_v22  ;;  %v2234_v8 = vpop.f32.mrb[41].mxu0  ;;  %v3092_v1 = vpop.f32.mrb[65].mxu1  ;;  %v2293_v30 = vadd.f32 %v5533_v4, %v2273_v24  ;;  %v3328_v22 = vld [vmem:[%s5082_s9] sm:$0xff]  }
 0x706   :  { %v2286_v2 = vadd.f32 %v2234_v8, %v5532_v61  ;;  %v2236_v62 = vpop.f32.mrb[42].mxu0  ;;  %v2276_v3 = vpop.f32.mrb[66].mxu1  ;;  %v3329_v8 = vld [vmem:[%s5082_s9 + $0x8] sm:$0xff]   ;;  %v3330_v1 = vld [vmem:[%s5082_s9 + $0x10] sm:$0xff]   ;;  %v3331_v61 = vld [vmem:[%s5082_s9 + $0x18] sm:$0xff]  }
 0x707   :  { %v2825_v53 = vmul.f32 -1.442695, %v2279_v59  ;;  %v2237_v7 = vpop.f32.mrb[43].mxu0  ;;  %v3093_v16 = vpop.f32.mrb[67].mxu1  ;;  %v3333_v62 = vld [vmem:[%s5082_s9 + $0x28] sm:$0xff]   ;;  %v3334_v3 = vld [vmem:[%s5082_s9 + $0x30] sm:$0xff]  }
 0x708   :  { %v2826_v42 = vmul.f32 -1.442695, %v2286_v2  ;;  %v3332_v2 = vld [vmem:[%s5082_s9 + $0x20] sm:$0xff]   ;;  %v5540_v7 = vld [vmem:[#allocation41_spill] sm:$0xff] }
 0x709   :  { %3426 = vpow2.f32 %v2825_v53  ;;  %v3335_v53 = vld [vmem:[%s5082_s9 + $0x38] sm:$0xff]   ;;  %v5541_v16 = vld [vmem:[#allocation12_spill] sm:$0xff] }
 0x70a   :  { %3428 = vpow2.f32 %v2826_v42  ;;  %v2506_v42 = vpack.c.bf16 %v5541_v16, %v5540_v7 }
 0x713   :  { %v3427_v56 = vpop.eup %3426 }
 0x714   :  { %v2283_v55 = vadd.f32 1.0, %v3427_v56  ;;  %v3429_v18 = vpop.eup %3428  ;;  %v2507_v56 = vpack.c.bf16 %v4916_v14, %v4794_v52 }
 0x715   :  { %v2290_v17 = vadd.f32 1.0, %v3429_v18 }
 0x716   :  { %3430 = vrcp.f32 %v2283_v55 }
 0x717   :  { %3432 = vrcp.f32 %v2290_v17 }
 0x720   :  { %v3431_v51 = vpop.eup %3430 }
 0x721   :  { %v2294_v25 = vmul.f32 %v3431_v51, %v2293_v30  ;;  %v3433_v49 = vpop.eup %3432 }
 0x722   :  { %v2297_v32 = vsub.f32 1.0, %v3433_v49  ;;  %v2299_v28 = vmul.f32 %v3433_v49, %v5535_v43 }
 0x723   :  { %v2295_v35 = vadd.f32 %v2294_v25, %v5534_v44 }
 0x725   :  { %3434 = vtanh.f32 %v2295_v35 }
 0x72f   :  { %v3435_v6 = vpop.eup %3434 }
 0x730   :  { %v2298_v20 = vmul.f32 %v3435_v6, %v2297_v32 }
 0x732   :  { %v2300_v34 = vadd.f32 %v2299_v28, %v2298_v20 }
 0x734   :  { %2643 = vst [vmem:[%s5085_s12] sm:$0xff] %v2300_v34  ;;  %v2403_v59 = vpack.c.bf16 %v2300_v34, %v2300_v34 }
 0x748   :  { %v2336_v26 = vpop.f32.mrb[44].mxu0  ;;  %v2377_v27 = vpop.f32.mrb[68].mxu1 }
 0x749   :  { %v2337_v36 = vadd.f32 %v2336_v26, %v5536_v29  ;;  %v2338_v33 = vpop.f32.mrb[45].mxu0  ;;  %v2379_v38 = vpop.f32.mrb[69].mxu1  ;;  %v2378_v23 = vadd.f32 %v2377_v27, %v5539_v54  ;;  %v2831_v27 = vld [vmem:[%s5083_s10] ss:$0 sm:$0xff] }
 0x74a   :  { %v2340_v39 = vpop.f32.mrb[46].mxu0  ;;  %v2381_v41 = vpop.f32.mrb[70].mxu1  ;;  %v2339_v10 = vadd.f32 %v2338_v33, %v5537_v0  ;;  %v2380_v5 = vadd.f32 %v2379_v38, %v5538_v50 }
 0x74b   :  { %v2827_v60 = vmul.f32 -1.442695, %v2337_v36  ;;  %v2341_v47 = vpop.f32.mrb[47].mxu0  ;;  %v2382_v37 = vpop.f32.mrb[71].mxu1 }
 0x74c   :  { %v2828_v40 = vmul.f32 -1.442695, %v2339_v10 }
 0x74d   :  { %3436 = vpow2.f32 %v2827_v60 }
 0x74e   :  { %3438 = vpow2.f32 %v2828_v40 }
 0x757   :  { %v3437_v46 = vpop.eup %3436 }
 0x758   :  { %v2387_v12 = vadd.f32 1.0, %v3437_v46  ;;  %v3439_v19 = vpop.eup %3438 }
 0x759   :  { %v2393_v9 = vadd.f32 1.0, %v3439_v19 }
 0x75a   :  { %3440 = vrcp.f32 %v2387_v12 }
 0x75b   :  { %3442 = vrcp.f32 %v2393_v9 }
 0x764   :  { %v3441_v45 = vpop.eup %3440 }
 0x765   :  { %v2396_v48 = vmul.f32 %v3441_v45, %v2380_v5  ;;  %v3443_v13 = vpop.eup %3442 }
 0x766   :  { %v2399_v15 = vsub.f32 1.0, %v3443_v13  ;;  %v2401_v31 = vmul.f32 %v3443_v13, %v4916_v14 }
 0x767   :  { %v2397_v11 = vadd.f32 %v2396_v48, %v2378_v23 }
 0x769   :  { %3444 = vtanh.f32 %v2397_v11 }
 0x773   :  { %v3445_v58 = vpop.eup %3444 }
 0x774   :  { %v2400_v21 = vmul.f32 %v3445_v58, %v2399_v15 }
 0x776   :  { %v4998_v57 = vadd.f32 %v2401_v31, %v2400_v21 }
 0x778   :  { %v2404_v24 = vpack.c.bf16 %v4998_v57, %v4998_v57 }
 0x77a   :  { %2437 = vmatprep.mubr.bf16.mxu0 %v2404_v24  ;;  %2478 = vmatprep.mubr.bf16.mxu1 %v2404_v24 }
 0x77b   :  { %2438 = vmatmul.mubr.bf16.vlgmr.msra.gmra.mrb[48].mxu0 %v2403_v59  ;;  %2479 = vmatmul.mubr.bf16.vlgmr.msra.gmra.mrb[72].mxu1 %v2403_v59 }
 0x77c   :  { %3095 = vmatpush3.bf16.msra.mxu0 %v3328_v22  ;;  %3110 = vmatprep.mubr.msk.bf16.mxu0 %vm3658_vm9, %v5530_v63 }
 0x77d   :  { %3096 = vmatprep.subr.bf16.mxu0 %v5530_v63 }
 0x780   :  { %3097 = vmatpush3.bf16.msra.mxu0 %v3329_v8 }
 0x781   :  { %3098 = vmatprep.subr.bf16.mxu0 %v5530_v63 }
 0x784   :  { %3099 = vmatpush3.bf16.msra.mxu0 %v3330_v1 }
 0x785   :  { %3100 = vmatprep.subr.bf16.mxu0 %v5530_v63 }
 0x788   :  { %3101 = vmatpush3.bf16.msra.mxu0 %v3331_v61 }
 0x789   :  { %3102 = vmatprep.subr.bf16.mxu0 %v5530_v63 }
 0x78c   :  { %3103 = vmatpush3.bf16.msra.mxu0 %v3332_v2 }
 0x78d   :  { %3104 = vmatprep.subr.bf16.mxu0 %v5530_v63 }
 0x790   :  { %3105 = vmatpush3.bf16.msra.mxu0 %v3333_v62 }
 0x791   :  { %3106 = vmatprep.subr.bf16.mxu0 %v5530_v63 }
 0x794   :  { %3107 = vmatpush3.bf16.msra.mxu0 %v3334_v3 }
 0x795   :  { %3108 = vmatprep.subr.bf16.mxu0 %v5530_v63 }
 0x798   :  { %3109 = vmatpush3.bf16.msra.mxu0 %v3335_v53 }
 0x79b   :  { %3111 = vmatmul.mubr.bf16.vlgmr.msra.gmra.mrb[52].mxu0 %v2506_v42 }
 0x79c   :  { %3114 = vmatprep.mubr.msk.bf16.mxu0 %vm3658_vm9, %v5530_v63 }
 0x7a3   :  { %3115 = vmatmul.mubr.bf16.gmra.mrb[56].mxu0 %v2507_v56 }
 0x7a4   :  { %3118 = vmatprep.mubr.msk.bf16.mxu0 %vm3658_vm9, %v5530_v63 }
 0x84e   :  { %v2439_v55 = vpop.f32.mrb[48].mxu0  ;;  %v2480_v18 = vpop.f32.mrb[72].mxu1 }
 0x84f   :  { %v2440_v17 = vadd.f32 %v2439_v55, %v5536_v29  ;;  %v2441_v4 = vpop.f32.mrb[49].mxu0  ;;  %v2482_v30 = vpop.f32.mrb[73].mxu1  ;;  %v2481_v34 = vadd.f32 %v2480_v18, %v5539_v54 }
 0x850   :  { %v2443_v51 = vpop.f32.mrb[50].mxu0  ;;  %v2484_v25 = vpop.f32.mrb[74].mxu1  ;;  %v2442_v32 = vadd.f32 %v2441_v4, %v5537_v0  ;;  %v2483_v43 = vadd.f32 %v2482_v30, %v5538_v50 }
 0x851   :  { %v2829_v44 = vmul.f32 -1.442695, %v2440_v17  ;;  %v2444_v35 = vpop.f32.mrb[51].mxu0  ;;  %v2485_v49 = vpop.f32.mrb[75].mxu1 }
 0x852   :  { %v2830_v6 = vmul.f32 -1.442695, %v2442_v32 }
 0x853   :  { %3446 = vpow2.f32 %v2829_v44 }
 0x854   :  { %3448 = vpow2.f32 %v2830_v6 }
 0x85d   :  { %v3447_v52 = vpop.eup %3446 }
 0x85e   :  { %v2490_v14 = vadd.f32 1.0, %v3447_v52  ;;  %v3449_v63 = vpop.eup %3448 }
 0x85f   :  { %v2496_v20 = vadd.f32 1.0, %v3449_v63 }
 0x860   :  { %3450 = vrcp.f32 %v2490_v14 }
 0x861   :  { %3452 = vrcp.f32 %v2496_v20 }
 0x86a   :  { %v3451_v28 = vpop.eup %3450 }
 0x86b   :  { %v2499_v26 = vmul.f32 %v3451_v28, %v2483_v43  ;;  %v3453_v47 = vpop.eup %3452 }
 0x86c   :  { %v2502_v46 = vsub.f32 1.0, %v3453_v47  ;;  %v2504_v5 = vmul.f32 %v3453_v47, %v4998_v57 }
 0x86d   :  { %v2500_v29 = vadd.f32 %v2499_v26, %v2481_v34 }
 0x86e   :  { %v2614_v36 = vpop.f32.mrb[52].mxu0 }
 0x86f   :  { %3454 = vtanh.f32 %v2500_v29  ;;  %v2615_v33 = vadd.f32 %v2831_v27, %v2614_v36  ;;  %v3112_v38 = vpop.f32.mrb[53].mxu0 }
 0x870   :  { %v2617_v39 = vpop.f32.mrb[54].mxu0 }
 0x871   :  { %2637 = vst [vmem:[%s5084_s11] sm:$0xff] %v2615_v33  ;;  %v2618_v41 = vadd.f32 %v2831_v27, %v2617_v39  ;;  %v3113_v60 = vpop.f32.mrb[55].mxu0 }
 0x873   :  { %2638 = vst [vmem:[%s5084_s11 + $0x8] sm:$0xff] %v2618_v41 }
 0x876   :  { %v2622_v37 = vpop.f32.mrb[56].mxu0 }
 0x877   :  { %v2623_v0 = vadd.f32 %v2831_v27, %v2622_v37  ;;  %v3116_v10 = vpop.f32.mrb[57].mxu0 }
 0x878   :  { %v2625_v40 = vpop.f32.mrb[58].mxu0 }
 0x879   :  { %v3455_v12 = vpop.eup %3454  ;;  %2639 = vst [vmem:[%s5084_s11 + $0x10] sm:$0xff] %v2623_v0  ;;  %v2626_v19 = vadd.f32 %v2831_v27, %v2625_v40  ;;  %v3117_v9 = vpop.f32.mrb[59].mxu0 }
 0x87a   :  { %v2503_v50 = vmul.f32 %v3455_v12, %v2502_v46 }
 0x87b   :  { %2640 = vst [vmem:[%s5084_s11 + $0x18] sm:$0xff] %v2626_v19 }
 0x87c   :  { %v2505_v45 = vadd.f32 %v2504_v5, %v2503_v50 }
 0x87e   :  { %v2508_v54 = vpack.c.bf16 %v2505_v45, %v4998_v57  ;;  %2840 = vst [vmem:[%s5085_s12 + $0x8] sm:$0xff] %v2505_v45 }
 0x880   :  { %3119 = vmatmul.mubr.bf16.gmra.mrb[60].mxu0 %v2508_v54 }
 0x953   :  { %v2630_v23 = vpop.f32.mrb[60].mxu0 }
 0x954   :  { %v2631_v48 = vadd.f32 %v2831_v27, %v2630_v23  ;;  %v3120_v11 = vpop.f32.mrb[61].mxu0 }
 0x955   :  { %v2633_v13 = vpop.f32.mrb[62].mxu0 }
 0x956   :  { %2641 = vst [vmem:[%s5084_s11 + $0x20] sm:$0xff] %v2631_v48  ;;  %v2634_v15 = vadd.f32 %v2831_v27, %v2633_v13  ;;  %v3121_v58 = vpop.f32.mrb[63].mxu0 }
 0x958   :  { %2642 = vst [vmem:[%s5084_s11 + $0x28] sm:$0xff] %v2634_v15 }
 0x959   :  { %2654 = vsyncpa [#allocation3], 1 }
 0x95a   :  { %2655 = vsyncpa [#allocation5], 1 }
 0x95b   :  { %2656 = vsyncpa [#allocation8], 1 }

</bundles_post_ra>
